<compile_context>
chip_gen: v7x
topology: tpu7x:2x2x1
jax: 0.10.0
libtpu: 0.0.40
codegen_flags: <defaults>
</compile_context>

<pallas_src>
import math

import jax
import jax.numpy as jnp
from jax.experimental import pallas as pl
from jax.experimental.pallas import tpu as pltpu

LANE = 128


def _round_up(x, m):
    return ((x + m - 1) // m) * m


def _pad_gate_cols(w, h_real, h_pad):
    """[..., 4*h_real] -> [..., 4*h_pad]; each gate block zero-padded to h_pad."""
    parts = []
    for k in range(4):
        blk = w[..., k * h_real:(k + 1) * h_real]
        blk = jnp.pad(blk, [(0, 0)] * (w.ndim - 1) + [(0, h_pad - h_real)])
        parts.append(blk)
    return jnp.concatenate(parts, axis=-1)


# ----------------------------------------------------------------------------
# Pallas kernel: one full hetero GC-LSTM layer (all dst node types fused).
# ----------------------------------------------------------------------------
def _layer_kernel(src_idx_ref,                       # SMEM scalar-prefetch (used by index_maps only)
                  a_ref, x_ref, w_ref, h_ref, c_ref, ws_ref, b_ref,
                  h_out, c_out,
                  m_acc, z_acc):
    r = pl.program_id(2)          # relation index      (reduction)
    s = pl.program_id(3)          # source row tile     (reduction)
    nr = pl.num_programs(2)
    ns = pl.num_programs(3)

    @pl.when(jnp.logical_and(r == 0, s == 0))
    def _():
        z_acc[...] = jnp.zeros_like(z_acc)

    @pl.when(s == 0)
    def _():
        m_acc[...] = jnp.zeros_like(m_acc)

    # (A @ X): accumulate the narrow (width C_src) message over source tiles.
    m_acc[...] += jnp.dot(a_ref[0, 0], x_ref[0],
                          preferred_element_type=jnp.float32)

    # ... @ W_rel once per relation, into the 4H-wide gate accumulator.
    @pl.when(s == ns - 1)
    def _():
        z_acc[...] += jnp.dot(m_acc[...].astype(jnp.bfloat16), w_ref[0, 0],
                              preferred_element_type=jnp.float32)

    # Finalize: self term + bias, fused gates, LSTM state update.
    @pl.when(jnp.logical_and(r == nr - 1, s == ns - 1))
    def _():
        h = h_ref[0]
        c = c_ref[0]
        z = (z_acc[...]
             + jnp.dot(h.astype(jnp.bfloat16), ws_ref[0],
                       preferred_element_type=jnp.float32)
             + b_ref[0])
        hp = h.shape[-1]                       # padded hidden width (lane-dense)
        # Gate column layout: [ i | f | o | g ]  ->  one wide sigmoid, one tanh.
        sig = jax.nn.sigmoid(z[:, :3 * hp])
        i_g = sig[:, 0 * hp:1 * hp]
        f_g = sig[:, 1 * hp:2 * hp]
        o_g = sig[:, 2 * hp:3 * hp]
        g_g = jnp.tanh(z[:, 3 * hp:4 * hp])
        c_new = f_g * c + i_g * g_g
        h_new = o_g * jnp.tanh(c_new)
        h_out[0] = h_new
        c_out[0] = c_new


def _run_layer(src_idx, a_stack, x_all, w_stack, h_stack, c_stack,
               ws_stack, b_stack, *, tile_n=128, tile_s=128):
    """One hetero GC-LSTM layer: all dst node types in one tiled pallas_call."""
    T, R, n_pad, _ = a_stack.shape
    c_pad = w_stack.shape[2]
    g = w_stack.shape[3]
    h_pad = h_stack.shape[-1]
    nd = n_pad // tile_n
    ns = n_pad // tile_s

    a_spec = pl.BlockSpec((1, 1, tile_n, tile_s),
                          lambda t, j, r, s, si: (t, r, j, s))
    # Source features indexed by the scalar-prefetched (dst_type, rel) -> src_type table.
    x_spec = pl.BlockSpec((1, tile_s, c_pad),
                          lambda t, j, r, s, si: (si[t * R + r], s, 0))
    w_spec = pl.BlockSpec((1, 1, c_pad, g),
                          lambda t, j, r, s, si: (t, r, 0, 0))
    h_spec = pl.BlockSpec((1, tile_n, h_pad),
                          lambda t, j, r, s, si: (t, j, 0))
    ws_spec = pl.BlockSpec((1, h_pad, g),
                           lambda t, j, r, s, si: (t, 0, 0))
    b_spec = pl.BlockSpec((1, 1, g),
                          lambda t, j, r, s, si: (t, 0, 0))
    out_spec = pl.BlockSpec((1, tile_n, h_pad),
                            lambda t, j, r, s, si: (t, j, 0))

    h_new, c_new = pl.pallas_call(
        _layer_kernel,
        out_shape=(jax.ShapeDtypeStruct(h_stack.shape, jnp.float32),
                   jax.ShapeDtypeStruct(c_stack.shape, jnp.float32)),
        grid_spec=pltpu.PrefetchScalarGridSpec(
            num_scalar_prefetch=1,
            grid=(T, nd, R, ns),
            in_specs=[a_spec, x_spec, w_spec, h_spec, h_spec, ws_spec, b_spec],
            out_specs=(out_spec, out_spec),
            scratch_shapes=[pltpu.VMEM((tile_n, c_pad), jnp.float32),
                            pltpu.VMEM((tile_n, g), jnp.float32)]),
        # args: (src_idx, A, X, W, h, c, W_self, b) -> alias h->h_out, c->c_out.
        input_output_aliases={4: 0, 5: 1},
        compiler_params=pltpu.CompilerParams(
            dimension_semantics=("parallel", "parallel",
                                 "arbitrary", "arbitrary")),
    )(src_idx, a_stack, x_all, w_stack, h_stack, c_stack, ws_stack, b_stack)
    return h_new, c_new


# ----------------------------------------------------------------------------
# GC module: parameter init + forward (multi-layer stack), mirrors torch GC.
# Gate column convention everywhere: [ i | f | o | g ].
# ----------------------------------------------------------------------------
def init_gc_params(key, in_channels_dict, out_channels, num_layers, metadata,
                   bias=True):
    node_types, edge_types = metadata
    params = []
    for layer in range(num_layers):
        in_ch = (in_channels_dict if layer == 0
                 else {t: out_channels for t in node_types})
        layer_p = {"rel": {}, "self": {}, "bias": {}}
        for et in edge_types:
            src, _, _ = et
            key, k = jax.random.split(key)
            layer_p["rel"][et] = 0.1 * jax.random.normal(
                k, (in_ch[src], 4 * out_channels), jnp.float32)
        for t in node_types:
            key, k1, k2 = jax.random.split(key, 3)
            layer_p["self"][t] = 0.1 * jax.random.normal(
                k1, (out_channels, 4 * out_channels), jnp.float32)
            if bias:
                layer_p["bias"][t] = 0.1 * jax.random.normal(
                    k2, (1, 4 * out_channels), jnp.float32)
            else:
                layer_p["bias"][t] = jnp.zeros((1, 4 * out_channels), jnp.float32)
        params.append(layer_p)
    return params


def gc_forward(params, x_dict, adj_dict, hidden_state, metadata, out_channels,
               return_all_layers=True, tile_n=128, tile_s=128):
    node_types, edge_types = metadata
    num_layers = len(params)
    T = len(node_types)
    t_idx = {t: i for i, t in enumerate(node_types)}
    n_nodes = {t: x_dict[t].shape[0] for t in node_types}

    h_real = out_channels
    h_pad = _round_up(h_real, LANE)
    g = 4 * h_pad
    n_pad = _round_up(max(n_nodes.values()), math.lcm(tile_n, tile_s))

    # Incoming relations per destination type, padded to a common R_max.
    rels = {t: [et for et in edge_types if et[2] == t] for t in node_types}
    r_max = max(1, max(len(v) for v in rels.values()))

    # Stacked dense adjacency (bf16) + scalar-prefetch src-type table.
    a_stack = jnp.zeros((T, r_max, n_pad, n_pad), jnp.bfloat16)
    src_idx = [0] * (T * r_max)
    for t in node_types:
        ti = t_idx[t]
        for ri, et in enumerate(rels[t]):
            a = adj_dict[et]
            a_stack = a_stack.at[ti, ri, :a.shape[0], :a.shape[1]].set(
                a.astype(jnp.bfloat16))
            src_idx[ti * r_max + ri] = t_idx[et[0]]
    src_idx = jnp.asarray(src_idx, jnp.int32)

    def stack_state(state_dict):
        out = jnp.zeros((T, n_pad, h_pad), jnp.float32)
        if state_dict is None:
            return out
        for t in node_types:
            s = state_dict[t]
            out = out.at[t_idx[t], :s.shape[0], :s.shape[1]].set(
                s.astype(jnp.float32))
        return out

    if hidden_state is None:
        hidden_state = [None] * num_layers   # zero-init h, c per layer

    # Layer-0 source features, padded + bf16 (lane-dense channel dim).
    c0_pad = _round_up(max(x_dict[t].shape[1] for t in node_types), LANE)
    x_all = jnp.zeros((T, n_pad, c0_pad), jnp.bfloat16)
    for t in node_types:
        x = x_dict[t]
        x_all = x_all.at[t_idx[t], :x.shape[0], :x.shape[1]].set(
            x.astype(jnp.bfloat16))

    last_state_list = []
    for layer in range(num_layers):
        lp = params[layer]
        c_pad = x_all.shape[-1]

        w_stack = jnp.zeros((T, r_max, c_pad, g), jnp.bfloat16)
        ws_stack = jnp.zeros((T, h_pad, g), jnp.bfloat16)
        b_stack = jnp.zeros((T, 1, g), jnp.float32)
        for t in node_types:
            ti = t_idx[t]
            for ri, et in enumerate(rels[t]):
                w = _pad_gate_cols(lp["rel"][et], h_real, h_pad)
                w_stack = w_stack.at[ti, ri, :w.shape[0], :].set(
                    w.astype(jnp.bfloat16))
            ws = _pad_gate_cols(lp["self"][t], h_real, h_pad)
            ws_stack = ws_stack.at[ti, :ws.shape[0], :].set(
                ws.astype(jnp.bfloat16))
            b_stack = b_stack.at[ti].set(_pad_gate_cols(lp["bias"][t],
                                                        h_real, h_pad))

        hs = hidden_state[layer]
        h_stack = stack_state(None if hs is None else hs[0])
        c_stack = stack_state(None if hs is None else hs[1])

        h_stack, c_stack = _run_layer(
            src_idx, a_stack, x_all, w_stack, h_stack, c_stack,
            ws_stack, b_stack, tile_n=tile_n, tile_s=tile_s)

        h_dict = {t: h_stack[t_idx[t], :n_nodes[t], :h_real] for t in node_types}
        c_dict = {t: c_stack[t_idx[t], :n_nodes[t], :h_real] for t in node_types}
        last_state_list.append([h_dict, c_dict])

        # Next layer consumes the padded hidden state directly (still lane-dense).
        x_all = h_stack.astype(jnp.bfloat16)

    if not return_all_layers:
        last_state_list = last_state_list[-1:]
    return last_state_list


# ----------------------------------------------------------------------------
# Glue: dense adjacency from (edge_index, edge_attr) — plain JAX scatter.
# ----------------------------------------------------------------------------
def build_dense_adj(edge_index, edge_attr, n_dst, n_src):
    src, dst = edge_index[0], edge_index[1]
    a = jnp.zeros((n_dst, n_src), jnp.float32)
    return a.at[dst, src].add(edge_attr)


# ----------------------------------------------------------------------------
# Pure-JAX f32 reference (same gate layout [i|f|o|g], zero-init hidden).
# ----------------------------------------------------------------------------
def _reference_forward(params, x_dict, adj_dict, metadata, out_channels):
    node_types, edge_types = metadata
    H = out_channels
    cur_x = x_dict
    outs = []
    for layer in range(len(params)):
        lp = params[layer]
        new_h, new_c = {}, {}
        for t in node_types:
            n_t = x_dict[t].shape[0]
            h0 = jnp.zeros((n_t, H), jnp.float32)
            c0 = jnp.zeros((n_t, H), jnp.float32)
            z = jnp.dot(h0, lp["self"][t]) + lp["bias"][t]
            for et in edge_types:
                if et[2] != t:
                    continue
                z = z + adj_dict[et] @ (cur_x[et[0]] @ lp["rel"][et])
            i_g = jax.nn.sigmoid(z[:, 0 * H:1 * H])
            f_g = jax.nn.sigmoid(z[:, 1 * H:2 * H])
            o_g = jax.nn.sigmoid(z[:, 2 * H:3 * H])
            g_g = jnp.tanh(z[:, 3 * H:4 * H])
            new_c[t] = f_g * c0 + i_g * g_g
            new_h[t] = o_g * jnp.tanh(new_c[t])
        cur_x = new_h
        outs.append([new_h, new_c])
    return outs


if __name__ == "__main__":
    key = jax.random.PRNGKey(0)

    node_types = ["a", "b"]
    edge_types = [("a", "to", "a"), ("a", "to", "b"),
                  ("b", "to", "a"), ("b", "to", "b")]
    metadata = (node_types, edge_types)

    num_nodes = {"a": 16, "b": 8}
    in_channels_dict = {"a": 4, "b": 6}
    out_channels = 8
    num_layers = 2
    num_edges = 20

    x_dict = {}
    for t in node_types:
        key, k = jax.random.split(key)
        x_dict[t] = jax.random.normal(k, (num_nodes[t], in_channels_dict[t]),
                                      jnp.float32)

    edge_index_dict, edge_attr_dict, adj_dict = {}, {}, {}
    for et in edge_types:
        src_t, _, dst_t = et
        key, k1, k2, k3 = jax.random.split(key, 4)
        src_i = jax.random.randint(k1, (num_edges,), 0, num_nodes[src_t])
        dst_i = jax.random.randint(k2, (num_edges,), 0, num_nodes[dst_t])
        attr = jax.random.uniform(k3, (num_edges,), jnp.float32)
        edge_index_dict[et] = jnp.stack([src_i, dst_i])
        edge_attr_dict[et] = attr
        adj_dict[et] = build_dense_adj(edge_index_dict[et], attr,
                                       num_nodes[dst_t], num_nodes[src_t])

    params = init_gc_params(jax.random.PRNGKey(0), in_channels_dict, out_channels,
                            num_layers, metadata, bias=True)

    last_state_list = gc_forward(params, x_dict, adj_dict, None, metadata,
                                 out_channels, return_all_layers=True)
    for leaf in jax.tree_util.tree_leaves(last_state_list):
        jax.block_until_ready(leaf)

    # Shape sanity.
    assert last_state_list[0][0]["a"].shape == (num_nodes["a"], out_channels)
    assert last_state_list[-1][1]["b"].shape == (num_nodes["b"], out_channels)

    # Numerics vs pure-JAX f32 reference (loose tolerance: bf16 MXU inputs).
    ref = _reference_forward(params, x_dict, adj_dict, metadata, out_channels)
    for layer in range(num_layers):
        for t in node_types:
            for idx in (0, 1):
                got = last_state_list[layer][idx][t]
                want = ref[layer][idx][t]
                err = float(jnp.max(jnp.abs(got - want)))
                assert err < 5e-2, (layer, t, idx, err)

    print("KERNEL_OK")
</pallas_src>

<mosaic_0001>
module attributes {stable_mosaic.version = 11 : i64} {
  func.func @_layer_kernel(%arg0: i32, %arg1: i32, %arg2: i32, %arg3: i32, %arg4: memref<4xi32, #tpu.memory_space<smem>>, %arg5: memref<1x1x128x128xbf16, #tpu.memory_space<vmem>>, %arg6: memref<1x128x128xbf16, #tpu.memory_space<vmem>>, %arg7: memref<1x1x128x512xbf16, #tpu.memory_space<vmem>>, %arg8: memref<1x128x128xf32, #tpu.memory_space<vmem>>, %arg9: memref<1x128x128xf32, #tpu.memory_space<vmem>>, %arg10: memref<1x128x512xbf16, #tpu.memory_space<vmem>>, %arg11: memref<1x1x512xf32, #tpu.memory_space<vmem>>, %arg12: memref<1x128x128xf32, #tpu.memory_space<vmem>>, %arg13: memref<1x128x128xf32, #tpu.memory_space<vmem>>, %arg14: memref<128x128xf32, #tpu.memory_space<vmem>>, %arg15: memref<128x512xf32, #tpu.memory_space<vmem>>) attributes {dimension_semantics = [#tpu.dimension_semantics<parallel>, #tpu.dimension_semantics<parallel>, #tpu.dimension_semantics<arbitrary>, #tpu.dimension_semantics<arbitrary>], iteration_bounds = array<i64: 2, 1, 2, 1>, scalar_prefetch = 1 : i64, scratch_operands = 2 : i64, tpu.core_type = #tpu.core_type<tc>, window_params = [{transform_indices = @transform_0, window_bounds = array<i64: 1, 1, 128, 128>}, {transform_indices = @transform_1, window_bounds = array<i64: 1, 128, 128>}, {transform_indices = @transform_2, window_bounds = array<i64: 1, 1, 128, 512>}, {transform_indices = @transform_3, window_bounds = array<i64: 1, 128, 128>}, {transform_indices = @transform_4, window_bounds = array<i64: 1, 128, 128>}, {transform_indices = @transform_5, window_bounds = array<i64: 1, 128, 512>}, {transform_indices = @transform_6, window_bounds = array<i64: 1, 1, 512>}, {transform_indices = @transform_7, window_bounds = array<i64: 1, 128, 128>}, {transform_indices = @transform_8, window_bounds = array<i64: 1, 128, 128>}]} {
    %c0_i32 = arith.constant 0 : i32
    %0 = arith.cmpi eq, %arg2, %c0_i32 : i32
    %c0_i32_0 = arith.constant 0 : i32
    %1 = arith.cmpi eq, %arg3, %c0_i32_0 : i32
    %2 = arith.andi %0, %1 : i1
    %3 = arith.extui %2 : i1 to i32
    %c0_i32_1 = arith.constant 0 : i32
    %4 = arith.cmpi ne, %3, %c0_i32_1 : i32
    scf.if %4 {
      %cst_18 = arith.constant 0.000000e+00 : f32
      %24 = vector.broadcast %cst_18 : f32 to vector<128x512xf32>
      %c0_19 = arith.constant 0 : index
      %c0_20 = arith.constant 0 : index
      %25 = vector.load %arg15[%c0_19, %c0_20] : memref<128x512xf32, #tpu.memory_space<vmem>>, vector<128x512xf32>
      tpu.vector_store %arg15[%c0_19, %c0_20], %24 {strides = array<i32>} : memref<128x512xf32, #tpu.memory_space<vmem>>, vector<128x512xf32>,
    } else {
    }
    %c0_i32_2 = arith.constant 0 : i32
    %5 = arith.cmpi eq, %arg3, %c0_i32_2 : i32
    %6 = arith.extui %5 : i1 to i32
    %c0_i32_3 = arith.constant 0 : i32
    %7 = arith.cmpi ne, %6, %c0_i32_3 : i32
    scf.if %7 {
      %cst_18 = arith.constant 0.000000e+00 : f32
      %24 = vector.broadcast %cst_18 : f32 to vector<128x128xf32>
      %c0_19 = arith.constant 0 : index
      %c0_20 = arith.constant 0 : index
      %25 = vector.load %arg14[%c0_19, %c0_20] : memref<128x128xf32, #tpu.memory_space<vmem>>, vector<128x128xf32>
      tpu.vector_store %arg14[%c0_19, %c0_20], %24 {strides = array<i32>} : memref<128x128xf32, #tpu.memory_space<vmem>>, vector<128x128xf32>,
    } else {
    }
    %c0 = arith.constant 0 : index
    %c0_4 = arith.constant 0 : index
    %8 = vector.load %arg14[%c0, %c0_4] : memref<128x128xf32, #tpu.memory_space<vmem>>, vector<128x128xf32>
    %c0_5 = arith.constant 0 : index
    %c0_6 = arith.constant 0 : index
    %c0_7 = arith.constant 0 : index
    %c0_8 = arith.constant 0 : index
    %9 = vector.load %arg5[%c0_5, %c0_6, %c0_7, %c0_8] : memref<1x1x128x128xbf16, #tpu.memory_space<vmem>>, vector<1x1x128x128xbf16>
    %10 = vector.shape_cast %9 : vector<1x1x128x128xbf16> to vector<128x128xbf16>
    %c0_9 = arith.constant 0 : index
    %c0_10 = arith.constant 0 : index
    %c0_11 = arith.constant 0 : index
    %11 = vector.load %arg6[%c0_9, %c0_10, %c0_11] : memref<1x128x128xbf16, #tpu.memory_space<vmem>>, vector<1x128x128xbf16>
    %12 = vector.shape_cast %11 : vector<1x128x128xbf16> to vector<128x128xbf16>
    %cst = arith.constant dense<0.000000e+00> : vector<128x128xf32>
    %13 = tpu.matmul %10, %12, %cst {dimension_numbers = #tpu.dot_dimension_numbers<[1], [0], [0], [1], [0, 0, 1, 1], [], []>} : vector<128x128xbf16>, vector<128x128xbf16>, vector<128x128xf32> -> vector<128x128xf32>
    %14 = arith.addf %8, %13 : vector<128x128xf32>
    %c0_12 = arith.constant 0 : index
    %c0_13 = arith.constant 0 : index
    %15 = vector.load %arg14[%c0_12, %c0_13] : memref<128x128xf32, #tpu.memory_space<vmem>>, vector<128x128xf32>
    tpu.vector_store %arg14[%c0_12, %c0_13], %14 {strides = array<i32>} : memref<128x128xf32, #tpu.memory_space<vmem>>, vector<128x128xf32>,
    %c0_i32_14 = arith.constant 0 : i32
    %16 = arith.cmpi eq, %arg3, %c0_i32_14 : i32
    %17 = arith.extui %16 : i1 to i32
    %c0_i32_15 = arith.constant 0 : i32
    %18 = arith.cmpi ne, %17, %c0_i32_15 : i32
    scf.if %18 {
      %c0_18 = arith.constant 0 : index
      %c0_19 = arith.constant 0 : index
      %24 = vector.load %arg15[%c0_18, %c0_19] : memref<128x512xf32, #tpu.memory_space<vmem>>, vector<128x512xf32>
      %c0_20 = arith.constant 0 : index
      %c0_21 = arith.constant 0 : index
      %25 = vector.load %arg14[%c0_20, %c0_21] : memref<128x128xf32, #tpu.memory_space<vmem>>, vector<128x128xf32>
      %26 = arith.truncf %25 : vector<128x128xf32> to vector<128x128xbf16>
      %c0_22 = arith.constant 0 : index
      %c0_23 = arith.constant 0 : index
      %c0_24 = arith.constant 0 : index
      %c0_25 = arith.constant 0 : index
      %27 = vector.load %arg7[%c0_22, %c0_23, %c0_24, %c0_25] : memref<1x1x128x512xbf16, #tpu.memory_space<vmem>>, vector<1x1x128x512xbf16>
      %28 = vector.shape_cast %27 : vector<1x1x128x512xbf16> to vector<128x512xbf16>
      %cst_26 = arith.constant dense<0.000000e+00> : vector<128x512xf32>
      %29 = tpu.matmul %26, %28, %cst_26 {dimension_numbers = #tpu.dot_dimension_numbers<[1], [0], [0], [1], [0, 0, 1, 1], [], []>} : vector<128x128xbf16>, vector<128x512xbf16>, vector<128x512xf32> -> vector<128x512xf32>
      %30 = arith.addf %24, %29 : vector<128x512xf32>
      %c0_27 = arith.constant 0 : index
      %c0_28 = arith.constant 0 : index
      %31 = vector.load %arg15[%c0_27, %c0_28] : memref<128x512xf32, #tpu.memory_space<vmem>>, vector<128x512xf32>
      tpu.vector_store %arg15[%c0_27, %c0_28], %30 {strides = array<i32>} : memref<128x512xf32, #tpu.memory_space<vmem>>, vector<128x512xf32>,
    } else {
    }
    %c1_i32 = arith.constant 1 : i32
    %19 = arith.cmpi eq, %arg2, %c1_i32 : i32
    %c0_i32_16 = arith.constant 0 : i32
    %20 = arith.cmpi eq, %arg3, %c0_i32_16 : i32
    %21 = arith.andi %19, %20 : i1
    %22 = arith.extui %21 : i1 to i32
    %c0_i32_17 = arith.constant 0 : i32
    %23 = arith.cmpi ne, %22, %c0_i32_17 : i32
    scf.if %23 {
      %c0_18 = arith.constant 0 : index
      %c0_19 = arith.constant 0 : index
      %c0_20 = arith.constant 0 : index
      %24 = vector.load %arg8[%c0_18, %c0_19, %c0_20] : memref<1x128x128xf32, #tpu.memory_space<vmem>>, vector<1x128x128xf32>
      %25 = vector.shape_cast %24 : vector<1x128x128xf32> to vector<128x128xf32>
      %c0_21 = arith.constant 0 : index
      %c0_22 = arith.constant 0 : index
      %c0_23 = arith.constant 0 : index
      %26 = vector.load %arg9[%c0_21, %c0_22, %c0_23] : memref<1x128x128xf32, #tpu.memory_space<vmem>>, vector<1x128x128xf32>
      %27 = vector.shape_cast %26 : vector<1x128x128xf32> to vector<128x128xf32>
      %c0_24 = arith.constant 0 : index
      %c0_25 = arith.constant 0 : index
      %28 = vector.load %arg15[%c0_24, %c0_25] : memref<128x512xf32, #tpu.memory_space<vmem>>, vector<128x512xf32>
      %29 = arith.truncf %25 : vector<128x128xf32> to vector<128x128xbf16>
      %c0_26 = arith.constant 0 : index
      %c0_27 = arith.constant 0 : index
      %c0_28 = arith.constant 0 : index
      %30 = vector.load %arg10[%c0_26, %c0_27, %c0_28] : memref<1x128x512xbf16, #tpu.memory_space<vmem>>, vector<1x128x512xbf16>
      %31 = vector.shape_cast %30 : vector<1x128x512xbf16> to vector<128x512xbf16>
      %cst_29 = arith.constant dense<0.000000e+00> : vector<128x512xf32>
      %32 = tpu.matmul %29, %31, %cst_29 {dimension_numbers = #tpu.dot_dimension_numbers<[1], [0], [0], [1], [0, 0, 1, 1], [], []>} : vector<128x128xbf16>, vector<128x512xbf16>, vector<128x512xf32> -> vector<128x512xf32>
      %33 = arith.addf %28, %32 : vector<128x512xf32>
      %c0_30 = arith.constant 0 : index
      %c0_31 = arith.constant 0 : index
      %c0_32 = arith.constant 0 : index
      %34 = vector.load %arg11[%c0_30, %c0_31, %c0_32] : memref<1x1x512xf32, #tpu.memory_space<vmem>>, vector<1x1x512xf32>
      %35 = vector.shape_cast %34 : vector<1x1x512xf32> to vector<1x512xf32>
      %36 = vector.broadcast %35 : vector<1x512xf32> to vector<128x512xf32>
      %37 = arith.addf %33, %36 : vector<128x512xf32>
      %38 = vector.extract_strided_slice %37 {offsets = [0, 0], sizes = [128, 384], strides = [1, 1]} : vector<128x512xf32> to vector<128x384xf32>
      %39 = arith.negf %38 : vector<128x384xf32>
      %40 = math.exp %39 : vector<128x384xf32>
      %cst_33 = arith.constant 1.000000e+00 : f32
      %41 = vector.broadcast %cst_33 : f32 to vector<128x384xf32>
      %42 = arith.addf %41, %40 : vector<128x384xf32>
      %43 = arith.divf %41, %42 : vector<128x384xf32>
      %44 = vector.extract_strided_slice %43 {offsets = [0, 0], sizes = [128, 128], strides = [1, 1]} : vector<128x384xf32> to vector<128x128xf32>
      %45 = vector.extract_strided_slice %43 {offsets = [0, 128], sizes = [128, 128], strides = [1, 1]} : vector<128x384xf32> to vector<128x128xf32>
      %46 = vector.extract_strided_slice %43 {offsets = [0, 256], sizes = [128, 128], strides = [1, 1]} : vector<128x384xf32> to vector<128x128xf32>
      %47 = vector.extract_strided_slice %37 {offsets = [0, 384], sizes = [128, 128], strides = [1, 1]} : vector<128x512xf32> to vector<128x128xf32>
      %48 = math.tanh %47 : vector<128x128xf32>
      %49 = arith.mulf %45, %27 : vector<128x128xf32>
      %50 = arith.mulf %44, %48 : vector<128x128xf32>
      %51 = arith.addf %49, %50 : vector<128x128xf32>
      %52 = math.tanh %51 : vector<128x128xf32>
      %53 = arith.mulf %46, %52 : vector<128x128xf32>
      %c0_34 = arith.constant 0 : index
      %c0_35 = arith.constant 0 : index
      %c0_36 = arith.constant 0 : index
      %54 = vector.load %arg12[%c0_34, %c0_35, %c0_36] : memref<1x128x128xf32, #tpu.memory_space<vmem>>, vector<1x128x128xf32>
      %55 = vector.shape_cast %54 : vector<1x128x128xf32> to vector<128x128xf32>
      %56 = vector.shape_cast %53 : vector<128x128xf32> to vector<1x128x128xf32>
      tpu.vector_store %arg12[%c0_34, %c0_35, %c0_36], %56 {strides = array<i32>} : memref<1x128x128xf32, #tpu.memory_space<vmem>>, vector<1x128x128xf32>,
      %c0_37 = arith.constant 0 : index
      %c0_38 = arith.constant 0 : index
      %c0_39 = arith.constant 0 : index
      %57 = vector.load %arg13[%c0_37, %c0_38, %c0_39] : memref<1x128x128xf32, #tpu.memory_space<vmem>>, vector<1x128x128xf32>
      %58 = vector.shape_cast %57 : vector<1x128x128xf32> to vector<128x128xf32>
      %59 = vector.shape_cast %51 : vector<128x128xf32> to vector<1x128x128xf32>
      tpu.vector_store %arg13[%c0_37, %c0_38, %c0_39], %59 {strides = array<i32>} : memref<1x128x128xf32, #tpu.memory_space<vmem>>, vector<1x128x128xf32>,
    } else {
    }
    return
  }
  func.func @transform_0(%arg0: i32, %arg1: i32, %arg2: i32, %arg3: i32, %arg4: memref<4xi32, #tpu.memory_space<smem>>) -> (i32, i32, i32, i32) {
    %c0_i32 = arith.constant 0 : i32
    return %arg0, %arg2, %arg1, %arg3 : i32, i32, i32, i32
  }
  func.func @transform_1(%arg0: i32, %arg1: i32, %arg2: i32, %arg3: i32, %arg4: memref<4xi32, #tpu.memory_space<smem>>) -> (i32, i32, i32) {
    %c2_i32 = arith.constant 2 : i32
    %0 = arith.muli %arg0, %c2_i32 : i32
    %1 = arith.addi %0, %arg2 : i32
    %2 = arith.index_cast %1 : i32 to index
    %3 = memref.load %arg4[%2] : memref<4xi32, #tpu.memory_space<smem>>
    %c0_i32 = arith.constant 0 : i32
    %c0_i32_0 = arith.constant 0 : i32
    return %3, %arg3, %c0_i32 : i32, i32, i32
  }
  func.func @transform_2(%arg0: i32, %arg1: i32, %arg2: i32, %arg3: i32, %arg4: memref<4xi32, #tpu.memory_space<smem>>) -> (i32, i32, i32, i32) {
    %c0_i32 = arith.constant 0 : i32
    %c0_i32_0 = arith.constant 0 : i32
    %c0_i32_1 = arith.constant 0 : i32
    return %arg0, %arg2, %c0_i32, %c0_i32_0 : i32, i32, i32, i32
  }
  func.func @transform_3(%arg0: i32, %arg1: i32, %arg2: i32, %arg3: i32, %arg4: memref<4xi32, #tpu.memory_space<smem>>) -> (i32, i32, i32) {
    %c0_i32 = arith.constant 0 : i32
    %c0_i32_0 = arith.constant 0 : i32
    return %arg0, %arg1, %c0_i32 : i32, i32, i32
  }
  func.func @transform_4(%arg0: i32, %arg1: i32, %arg2: i32, %arg3: i32, %arg4: memref<4xi32, #tpu.memory_space<smem>>) -> (i32, i32, i32) {
    %c0_i32 = arith.constant 0 : i32
    %c0_i32_0 = arith.constant 0 : i32
    return %arg0, %arg1, %c0_i32 : i32, i32, i32
  }
  func.func @transform_5(%arg0: i32, %arg1: i32, %arg2: i32, %arg3: i32, %arg4: memref<4xi32, #tpu.memory_space<smem>>) -> (i32, i32, i32) {
    %c0_i32 = arith.constant 0 : i32
    %c0_i32_0 = arith.constant 0 : i32
    %c0_i32_1 = arith.constant 0 : i32
    return %arg0, %c0_i32, %c0_i32_0 : i32, i32, i32
  }
  func.func @transform_6(%arg0: i32, %arg1: i32, %arg2: i32, %arg3: i32, %arg4: memref<4xi32, #tpu.memory_space<smem>>) -> (i32, i32, i32) {
    %c0_i32 = arith.constant 0 : i32
    %c0_i32_0 = arith.constant 0 : i32
    %c0_i32_1 = arith.constant 0 : i32
    return %arg0, %c0_i32, %c0_i32_0 : i32, i32, i32
  }
  func.func @transform_7(%arg0: i32, %arg1: i32, %arg2: i32, %arg3: i32, %arg4: memref<4xi32, #tpu.memory_space<smem>>) -> (i32, i32, i32) {
    %c0_i32 = arith.constant 0 : i32
    %c0_i32_0 = arith.constant 0 : i32
    return %arg0, %arg1, %c0_i32 : i32, i32, i32
  }
  func.func @transform_8(%arg0: i32, %arg1: i32, %arg2: i32, %arg3: i32, %arg4: memref<4xi32, #tpu.memory_space<smem>>) -> (i32, i32, i32) {
    %c0_i32 = arith.constant 0 : i32
    %c0_i32_0 = arith.constant 0 : i32
    return %arg0, %arg1, %c0_i32 : i32, i32, i32
  }
}

</mosaic_0001>

<bundles_post_ra>
// kernel: tpu_custom_call.1
= control target key start
LH: loop header
LB: loop body
LE: loop exit
PB: predicated region body
PF: predicated region fallthrough
CT: control target
= control target key end

     0   :  { %s5342_s0 = inlined_call_operand.vmem [shape: s32[4], index: 0, kind: input, shape index: {}]   ;;  %s5343_s1 = inlined_call_operand.hbm [shape: bf16[2,2,128,128], index: 1, kind: input, shape index: {}]   ;;  %s5344_s2 = inlined_call_operand.hbm [shape: bf16[2,128,128], index: 2, kind: input, shape index: {}]   ;;  %s5345_s3 = inlined_call_operand.vmem [shape: bf16[2,2,128,512], index: 3, kind: input, shape index: {}]   ;;  %s5346_s4 = inlined_call_operand.hbm [shape: f32[2,128,128], index: 4, kind: input, shape index: {}, may-alias: {4,8}]   ;;  %s5347_s5 = inlined_call_operand.hbm [shape: f32[2,128,128], index: 5, kind: input, shape index: {}, may-alias: {5,9}]   ;;  %s5348_s6 = inlined_call_operand.hbm [shape: bf16[2,128,512], index: 6, kind: input, shape index: {}]   ;;  %s5349_s7 = inlined_call_operand.vmem [shape: f32[2,1,512], index: 7, kind: input, shape index: {}]   ;;  %s5350_s8 = inlined_call_operand.hbm [shape: f32[2,128,128], index: 8, kind: output, shape index: {0}, may-alias: {4,8}]   ;;  %s5351_s9 = inlined_call_operand.hbm [shape: f32[2,128,128], index: 9, kind: output, shape index: {1}, may-alias: {5,9}]  }
   0x1   :  { %5386 = sst [smem:[#allocation43_spill]] %s5343_s1  ;;  %s15_s11 = sshll.u32 %s5342_s0, 4  ;;  %s16_s11 = int_to_ptr.vmem [resolvable:$true] %s15_s11 }
   0x2   :  { %5387 = sst [smem:[#allocation44_spill]] %s5344_s2  ;;  %s3792_s12 = scalar_lea.vmem %s16_s11, 16 }
   0x3   :  { %5388 = sst [smem:[#allocation45_spill]] %s5345_s3  ;;  %p3793_p0 = scmp.ne.s32.totalorder %s16_s11, %s3792_s12 }
   0x4   :  { %5389 = sst [smem:[#allocation46_spill]] %s5346_s4  ;;  %p3797_p1 = scmp.lt.s32.totalorder %s16_s11, %s16_s11 }
   0x5   :  { %5390 = sst [smem:[#allocation47_spill]] %s5347_s5  ;;  %p3798_p2 = scmp.lt.s32.totalorder %s3792_s12, %s3792_s12 }
   0x6   :  { %5391 = sst [smem:[#allocation48_spill]] %s5349_s7 }
   0x7   :  { %5392 = sst [smem:[#allocation49_spill]] %s5350_s8  ;;  %p3799_p3 = por %p3798_p2, %p3797_p1 }
   0x8   :  { %5393 = sst [smem:[#allocation50_spill]] %s5351_s9 }
   0x9   :  { %p3800_p4 = pnand %p3799_p3, %p3793_p0 }
   0xb   :  { %3803 = shalt.err (!%p3800_p4)  }
   0xc   :  { %s4148_s13 = smov [#allocation5]  }
   0xd   :  { %18 = dma.vmem_to_smem %s16_s11, 16, %s4148_s13, [#allocation4] }
   0xe   :  { %4066 = dma.done.wait [#allocation4], 16 }
   0xf   :  { %4067 = vsyncadd [#allocation4], 4294967280 }
  0x10   :  { %20 = sfence }
  0x11   :  { %21 = vsyncpa [#allocation7], 0 }
  0x12   :  { %23 = vsyncpa [#allocation7 + $0x1], 0 }
  0x13   :  { %24 = vsyncpa [#allocation10], 0 }
  0x14   :  { %26 = vsyncpa [#allocation10 + $0x1], 0 }
  0x15   :  { %27 = vsyncpa [#allocation13], 0 }
  0x16   :  { %29 = vsyncpa [#allocation13 + $0x1], 0 }
  0x17   :  { %30 = vsyncpa [#allocation8], 0 }
  0x18   :  { %32 = vsyncpa [#allocation8 + $0x1], 0 }
  0x19   :  { %33 = vsyncpa [#allocation17], 0 }
  0x1a   :  { %35 = vsyncpa [#allocation17 + $0x1], 0  ;;  %s4220_s0 = smov 0   ;;  %s4222_s14 = smov 0  }
  0x1b   :  { %s4224_s15 = smov 0   ;;  %s4226_s16 = smov 0  }
  0x1c   :  { %s4228_s17 = smov 0   ;;  %s4230_s18 = smov 0  }
  0x1d   :  { %s4232_s19 = smov 0   ;;  %s4234_s20 = smov 0  }
  0x1e   :  { %s4236_s21 = smov 0   ;;  %s4238_s22 = smov 0  }
  0x1f   :  { %s4240_s23 = smov 0   ;;  %s4242_s24 = smov 0  }
  0x20   :  { %s4244_s25 = smov 0   ;;  %s4246_s26 = smov 0  }
  0x21 LB: > { %5394 = sst [smem:[#allocation27_spill]] %s4094_s0  ;;  %s4291_s27 = sadd.s32 4294967295, %s4146_s26   ;;  %s4146_s26 = sphi %s4246_s26, %s41_s26   ;;  %s4142_s25 = sphi %s4244_s25, %s5485_s25   ;;  %s4138_s24 = sphi %s4242_s24, %s5484_s24   ;;  %s4134_s23 = sphi %s4240_s23, %s5483_s23   ;;  %s4130_s22 = sphi %s4238_s22, %s5482_s22   ;;  %s4126_s21 = sphi %s4236_s21, %s5481_s21   ;;  %s4122_s20 = sphi %s4234_s20, %s5480_s20   ;;  %s4118_s19 = sphi %s4232_s19, %s5479_s19   ;;  %s4114_s18 = sphi %s4230_s18, %s5475_s18   ;;  %s4110_s17 = sphi %s4228_s17, %s5474_s17   ;;  %s4106_s16 = sphi %s4226_s16, %s5473_s16   ;;  %s4102_s15 = sphi %s4224_s15, %s5472_s15   ;;  %s4098_s14 = sphi %s4222_s14, %s5471_s14   ;;  %s4094_s0 = sphi %s4220_s0, %s5470_s0  }
  0x22   : > { %5395 = sst [smem:[#allocation28_spill]] %s4098_s14  ;;  %s59_s28 = sadd.s32 1, %s4138_s24 }
  0x23   : > { %5396 = sst [smem:[#allocation29_spill]] %s4102_s15  ;;  %p61_p5 = scmp.ge.s32.totalorder %s59_s28, 2 }
  0x24   : > { %5397 = sst [smem:[#allocation30_spill]] %s4110_s17  ;;  %s67_s29 = sadd.s32 1, %s4142_s25 }
  0x25   : > { %5398 = sst [smem:[#allocation31_spill]] %s4114_s18  ;;  %p5363_p6 = scmp.eq.s32.totalorder %s4146_s26, 0 }
  0x26   : > { %5399 = sst [smem:[#allocation32_spill]] %s4130_s22  ;;  %p5362_p7 = scmp.eq.s32.totalorder %s4291_s27, 0 }
  0x27   : > { %5400 = sst [smem:[#allocation33_spill]] %s4134_s23  ;;  %s5487_s28 = smov (%p61_p5, %s59_s28), 0 }
  0x28   : > { %5401 = sst [smem:[#allocation34_spill]] %s5487_s28  ;;  %s5489_s29 = smov (!%p61_p5, %s67_s29), %s4142_s25 }
  0x29   : > { %s3014_s30 = sshll.u32 %s4142_s25, 1  ;;  %s114_s10 = sadd.s32 1, %s4114_s18 }
  0x2a   : > { %p69_p8 = scmp.ge.s32.totalorder %s5489_s29, 2  ;;  %s104_s11 = sadd.s32 %s4138_s24, %s3014_s30 }
  0x2b   : > { %s105_s12 = sld [smem:[#allocation5 + %s104_s11]]  ;;  %p121_p9 = scmp.ne.s32.totalorder %s4114_s18, %s4110_s17 }
  0x2c   : > { %s5491_s29 = smov (%p69_p8, %s5489_s29), 0  ;;  %p127_p11 = scmp.ne.s32.totalorder %s4110_s17, %s4106_s16 }
  0x2d   : > { %5402 = sst [smem:[#allocation35_spill]] %s5491_s29  ;;  %p4309_p10 = por %p121_p9, %p5363_p6 }
  0x2e   : > { %s3015_s9 = sshll.u32 %s5491_s29, 1  ;;  %p4319_p12 = por %p127_p11, %p5362_p7 }
  0x2f   : > { %s107_s8 = sadd.s32 %s3015_s9, %s5487_s28  ;;  %p5361_p13 = scmp.lt.s32.totalorder %s4146_s26, 4 }
  0x30   : > { %s5404_s30 = scalar_select %p4319_p12, 1, 0 }
  0x31   : > { %s108_s3 = sld [smem:[#allocation5 + %s107_s8]]  ;;  %s371_s22 = sand.u32 1, %s4114_s18  }
  0x32   : > { %5405 = sst [smem:[#allocation36_spill]] %s5404_s30  ;;  %s3022_s23 = sshll.u32 %s371_s22, 6 }
  0x33   : > { %p4330_p0 = pnand %p5361_p13, %p4309_p10  ;;  %s373_s8 = scalar_lea.vmem [#allocation9], %s3022_s23 }
  0x34   : > { %s3258_s9 = scalar_select %p4309_p10, [#allocation5], [#allocation18] }
  0x35   : > { %s385_s17 = sshll.u32 %s373_s8, 4  ;;  %s5493_s11 = smov (!%p4309_p10, %s104_s11), 0  ;;  %s4336_s17 = int_to_ptr.vmem [resolvable:$true] %s385_s17 }
  0x36   : > { %s5495_s9 = smov (!%p5361_p13, %s3258_s9), [#allocation19]  ;;  %s5497_s11 = smov (!%p5361_p13, %s5493_s11), 0 }
  0x37   : > { %s109_s30 = ssub.s32 %s105_s12, %s108_s3  ;;  %p3035_p2 = scmp.ge.s32.totalorder %s4146_s26, 1 }
  0x38   : > { %p112_p1 = scmp.eq.s32.totalorder %s109_s30, 0  ;;  %s376_s3 = sld [smem:[%s5495_s9 + %s5497_s11]] }
  0x39   : > { %p479_p3 = scmp.lt.s32.totalorder %s4146_s26, 5  ;;  %s4356_s30 = ssub.s32 %s4142_s25, %s5491_s29 }
  0x3a   : > { %s4341_s22 = scalar_select %p112_p1, %s4114_s18, %s114_s10  }
  0x3b   : > { %p4349_p4 = pnand %p3035_p2, %p479_p3  ;;  %s5409_s2 = sld [smem:[#allocation44_spill]] }
  0x3c   : > { %5407 = sst [smem:[#allocation37_spill]] %s4341_s22  ;;  %s5410_s11 = sand.u32 1, %s4146_s26  }
  0x3d   : > { %s5408_s23 = scalar_select %p4349_p4, 1, 0 }
  0x3e   : > { %s3185_s10 = sshll.u32 %s376_s3, 10  ;;  %s4369_s9 = scalar_lea.sflag [#allocation10], %s5410_s11 }
  0x3f   : > { %p3806_p10 = pneg %p4330_p0 }
  0x41   : > { %s4363_s22 = scalar_lea.hbm %s5409_s2, %s3185_s10  ;;  %s3809_s10 = scalar_lea.hbm %s5409_s2, 2048 }
  0x42   : > { %s3804_s12 = scalar_lea.hbm %s4363_s22, 1024  ;;  %p3810_p2 = scmp.lt.u32.totalorder %s4363_s22, %s5409_s2 }
  0x43   : > { %p3805_p9 = scmp.ne.s32.totalorder %s4363_s22, %s3804_s12  ;;  %p3811_p3 = scmp.lt.u32.totalorder %s3809_s10, %s3804_s12 }
  0x44   : > { %p3813_p7 = scmp.lt.u32.totalorder %s3804_s12, %s4363_s22 }
  0x45   : > { %p3807_p11 = pnand %p3806_p10, %p3805_p9  ;;  %p3812_p13 = por %p3811_p3, %p3810_p2 }
  0x47   : > { %p3808_p1 = pneg %p3807_p11  ;;  %p3814_p8 = por %p3813_p7, %p3812_p13 }
  0x49   : > { %p3815_p6 = pnand %p3814_p8, %p3808_p1 }
  0x4b   : > { %3818 = shalt.err (!%p3815_p6)
}
  0x4c   : > { %s3819_s11 = scalar_lea.vmem %s4336_s17, 1024  ;;  %s4149_s3 = smov [#allocation9]  }
  0x4d   : > { %p3820_p9 = scmp.ne.s32.totalorder %s4336_s17, %s3819_s11  ;;  %s3824_s7 = sshll.u32 %s4149_s3, 4  ;;  %s3825_s7 = int_to_ptr.vmem [resolvable:$false] %s3824_s7 }
  0x4e   : > { %s3826_s13 = scalar_lea.vmem %s3825_s7, 2048  ;;  %p3827_p12 = scmp.lt.s32.totalorder %s4336_s17, %s3825_s7 }
  0x4f   : > { %p3822_p11 = pnand %p3820_p9, %p3806_p10  ;;  %p3828_p2 = scmp.lt.s32.totalorder %s3826_s13, %s3819_s11 }
  0x51   : > { %p3823_p5 = pneg %p3822_p11  ;;  %p3829_p3 = por %p3828_p2, %p3827_p12 }
  0x53   : > { %p3830_p7 = pnand %p3829_p3, %p3823_p5 }
  0x55   : > { %3833 = shalt.err (!%p3830_p7)
}
  0x56   : > { %s5365_s12 = smov 64   ;;  %s5366_s10 = smov 4  }
  0x57   : > { %3281 = dma.hbm_to_vmem [thread:$0]  (!%p4330_p0), %s4363_s22, 1024, %s4336_s17, %s4369_s9, %s5365_s12, %s5365_s12, %s5366_s10  }
  0x58   : > { %s5411_s8 = sadd.s32 1, %s4102_s15  ;;  %p5412_p6 = scmp.eq.s32.totalorder %s4356_s30, 0 }
  0x59   : > { %p5414_p12 = scmp.eq.s32.totalorder %s4146_s26, 0  ;;  %p5415_p13 = scmp.ne.s32.totalorder %s4102_s15, %s4098_s14 }
  0x5a   : > { %s4405_s11 = scalar_select %p5412_p6, %s4102_s15, %s5411_s8  }
  0x5b   : > { %p4412_p5 = por %p5415_p13, %p5414_p12  ;;  %p183_p8 = scmp.ne.s32.totalorder %s4098_s14, %s4094_s0 }
  0x5c   : > { %5413 = sst [smem:[#allocation38_spill]] %s4405_s11  ;;  %p289_p10 = scmp.eq.s32.totalorder %s4291_s27, 3 }
  0x5d   : > { %s5417_s7 = sadd.s32 4294967294, %s4146_s26   ;;  %p5418_p9 = scmp.eq.s32.totalorder %s4291_s27, 0 }
  0x5e   : > { %p295_p1 = scmp.eq.s32.totalorder %s5417_s7, 3  ;;  %s409_s17 = sand.u32 1, %s4102_s15  }
  0x5f   : > { %p4423_p11 = por %p183_p8, %p5418_p9  ;;  %p5421_p0 = pmov %p5415_p13 }
  0x60   : > { %p4435_p3 = por %p295_p1, %p183_p8  ;;  %s3026_s8 = sshll.u32 %s409_s17, 7 }
  0x61   : > { %s5419_s16 = scalar_select %p4423_p11, 1, 0 }
  0x62   : > { %p4431_p2 = por %p289_p10, %p5421_p0  ;;  %s3186_s12 = sshll.u32 %s4142_s25, 11 }
  0x63   : > { %5420 = sst [smem:[#allocation39_spill]] %s5419_s16  ;;  %s5426_s4 = sld [smem:[#allocation46_spill]] }
  0x64   : > { %s5422_s22 = scalar_select %p4431_p2, 1, 0 }
  0x65   : > { %s5424_s13 = scalar_select %p4435_p3, 1, 0 }
  0x66   : > { %5423 = sst [smem:[#allocation40_spill]] %s5422_s22  ;;  %s411_s29 = scalar_lea.vmem [#allocation11], %s3026_s8 }
  0x67   : > { %5425 = sst [smem:[#allocation41_spill]] %s5424_s13  ;;  %s420_s18 = sshll.u32 %s411_s29, 4  ;;  %s4453_s18 = int_to_ptr.vmem [resolvable:$true] %s420_s18 }
  0x68   : > { %p5427_p7 = scmp.lt.s32.totalorder %s4146_s26, 4  ;;  %s5429_s5 = sld [smem:[#allocation47_spill]] }
  0x69   : > { %s4443_s2 = scalar_lea.hbm %s5426_s4, %s3186_s12  ;;  %s434_s10 = scalar_lea.vmem [#allocation12], %s3026_s8 }
  0x6a   : > { %p4449_p6 = pnand %p5427_p7, %p4412_p5  ;;  %s443_s29 = sshll.u32 %s434_s10, 4  ;;  %s4460_s29 = int_to_ptr.vmem [resolvable:$true] %s443_s29 }
  0x6b   : > { %s4462_s3 = sshll.u32 %s409_s17, 8  ;;  %s5430_s7 = sand.u32 1, %s4146_s26  }
  0x6c   : > { %s5428_s11 = scalar_select %p4449_p6, 1, 0 }
  0x6d   : > { %s4466_s22 = scalar_lea.sflag [#allocation13], %s5430_s7  ;;  %p4472_p13 = pneg %p4449_p6 }
  0x6e   : > { %s4458_s0 = scalar_lea.hbm %s5429_s5, %s3186_s12  ;;  %s3839_s8 = scalar_lea.hbm %s5429_s5, 4096 }
  0x6f   : > { %s3834_s16 = scalar_lea.hbm %s4458_s0, 2048  ;;  %p3840_p10 = scmp.lt.u32.totalorder %s4458_s0, %s5429_s5 }
  0x70   : > { %p3835_p12 = scmp.ne.s32.totalorder %s4458_s0, %s3834_s16  ;;  %p3841_p1 = scmp.lt.u32.totalorder %s3839_s8, %s3834_s16 }
  0x71   : > { %p3843_p0 = scmp.lt.u32.totalorder %s3834_s16, %s4458_s0 }
  0x72   : > { %p3837_p5 = pnand %p4472_p13, %p3835_p12  ;;  %p3842_p9 = por %p3841_p1, %p3840_p10 }
  0x74   : > { %p3838_p8 = pneg %p3837_p5  ;;  %p3844_p7 = por %p3843_p0, %p3842_p9 }
  0x76   : > { %p3845_p3 = pnand %p3844_p7, %p3838_p8 }
  0x78   : > { %3848 = shalt.err (!%p3845_p3)
}
  0x79   : > { %s3849_s7 = scalar_lea.vmem %s4460_s29, 2048  ;;  %s4152_s12 = smov [#allocation12]  }
  0x7a   : > { %p3850_p12 = scmp.ne.s32.totalorder %s4460_s29, %s3849_s7  ;;  %s3854_s13 = sshll.u32 %s4152_s12, 4  ;;  %s3855_s13 = int_to_ptr.vmem [resolvable:$false] %s3854_s13 }
  0x7b   : > { %s3856_s17 = scalar_lea.vmem %s3855_s13, 4096  ;;  %p3857_p11 = scmp.lt.s32.totalorder %s4460_s29, %s3855_s13 }
  0x7c   : > { %p3852_p5 = pnand %p3850_p12, %p4472_p13  ;;  %p3858_p4 = scmp.lt.s32.totalorder %s3856_s17, %s3849_s7 }
  0x7e   : > { %p3853_p2 = pneg %p3852_p5  ;;  %p3859_p10 = por %p3858_p4, %p3857_p11 }
  0x80   : > { %p3860_p1 = pnand %p3859_p10, %p3853_p2 }
  0x82   : > { %3863 = shalt.err (!%p3860_p1)
}
  0x83   : > { %s5378_s16 = smov 128   ;;  %s5379_s8 = smov 8  }
  0x84   : > { %3287 = dma.hbm_to_vmem [thread:$0]  (!%p4449_p6), %s4458_s0, 2048, %s4460_s29, %s4466_s22, %s5378_s16, %s5378_s16, %s5379_s8  }
  0x85   : > { %s72_s10 = ssub.s32 %s4138_s24, %s5487_s28  ;;  %s80_s7 = sadd.s32 1, %s4126_s21 }
  0x86   : > { %s73_s12 = sor.u32 %s72_s10, %s4356_s30  ;;  %p87_p4 = scmp.ne.s32.totalorder %s4126_s21, %s4122_s20 }
  0x87   : > { %p78_p11 = scmp.eq.s32.totalorder %s73_s12, 0  ;;  %p93_p2 = scmp.ne.s32.totalorder %s4122_s20, %s4118_s19 }
  0x88   : > { %p5432_p3 = scmp.eq.s32.totalorder %s4146_s26, 0  ;;  %s5382_s17 = sand.u32 1, %s4126_s21  }
  0x89   : > { %s4515_s5 = scalar_select %p78_p11, %s4126_s21, %s80_s7  }
  0x8a   : > { %p4509_p8 = por %p5432_p3, %p87_p4  ;;  %p5435_p9 = scmp.eq.s32.totalorder %s4291_s27, 0 }
  0x8b   : > { %5434 = sst [smem:[#allocation42_spill]] %s4515_s5  ;;  %s3018_s30 = sshll.u32 %s5382_s17, 6 }
  0x8c   : > { %p4519_p0 = por %p5435_p9, %p93_p2  ;;  %s3019_s19 = sshll.u32 %s4138_s24, 4 }
  0x8d   : > { %s3020_s29 = sshll.u32 %s4142_s25, 5  ;;  %s347_s12 = scalar_lea.vmem [#allocation6], %s3018_s30 }
  0x8e   : > { %s5436_s0 = scalar_select %p4519_p0, 1, 0 }
  0x8f   : > { %s356_s10 = sadd.s32 %s3020_s29, %s3019_s19  ;;  %s359_s16 = sshll.u32 %s347_s12, 4  ;;  %s4527_s16 = int_to_ptr.vmem [resolvable:$true] %s359_s16 }
  0x90   : > { %s3021_s8 = sshll.u32 %s356_s10, 6  ;;  %s5437_s1 = sld [smem:[#allocation43_spill]] }
  0x91   : > { %p5438_p7 = scmp.lt.s32.totalorder %s4146_s26, 4  ;;  %s3864_s17 = scalar_lea.hbm %s4443_s2, 2048 }
  0x92   : > { %p3865_p5 = scmp.ne.s32.totalorder %s4443_s2, %s3864_s17  ;;  %s3869_s29 = scalar_lea.hbm %s5426_s4, 4096 }
  0x93   : > { %p4538_p12 = pnand %p5438_p7, %p4509_p8  ;;  %p3870_p4 = scmp.lt.u32.totalorder %s4443_s2, %s5426_s4 }
  0x94   : > { %p3867_p10 = pnand %p3865_p5, %p4472_p13  ;;  %p3871_p11 = scmp.lt.u32.totalorder %s3869_s29, %s3864_s17 }
  0x95   : > { %s5439_s14 = scalar_select %p4538_p12, 1, 0 }
  0x96   : > { %s4532_s5 = scalar_lea.hbm %s5437_s1, %s3021_s8  ;;  %p3868_p1 = pneg %p3867_p10 }
  0x97   : > { %p3872_p2 = por %p3871_p11, %p3870_p4  ;;  %p3873_p3 = scmp.lt.u32.totalorder %s3864_s17, %s4443_s2 }
  0x99   : > { %p3874_p8 = por %p3873_p3, %p3872_p2 }
  0x9b   : > { %p3875_p9 = pnand %p3874_p8, %p3868_p1 }
  0x9d   : > { %3878 = shalt.err (!%p3875_p9)
}
  0x9e   : > { %s3879_s28 = scalar_lea.vmem %s4453_s18, 2048  ;;  %s4155_s8 = smov [#allocation11]  }
  0x9f   : > { %p3880_p7 = scmp.ne.s32.totalorder %s4453_s18, %s3879_s28  ;;  %s3884_s13 = sshll.u32 %s4155_s8, 4  ;;  %s3885_s13 = int_to_ptr.vmem [resolvable:$false] %s3884_s13 }
  0xa0   : > { %s3886_s7 = scalar_lea.vmem %s3885_s13, 4096  ;;  %p3887_p0 = scmp.lt.s32.totalorder %s4453_s18, %s3885_s13 }
  0xa1   : > { %p3882_p5 = pnand %p3880_p7, %p4472_p13  ;;  %p3888_p12 = scmp.lt.s32.totalorder %s3886_s7, %s3879_s28 }
  0xa3   : > { %p3883_p10 = pneg %p3882_p5  ;;  %p3889_p4 = por %p3888_p12, %p3887_p0 }
  0xa5   : > { %p3890_p11 = pnand %p3889_p4, %p3883_p10 }
  0xa7   : > { %3893 = shalt.err (!%p3890_p11)
}
  0xa8   : > { %s5440_s17 = smov 8   ;;  %s5441_s30 = smov 128  }
  0xa9   : > { %3284 = dma.hbm_to_vmem [thread:$0]  (!%p4449_p6), %s4443_s2, 2048, %s4453_s18, %s4369_s9, %s5441_s30, %s5441_s30, %s5440_s17  }
  0xaa   : > { %s5442_s19 = sand.u32 1, %s4126_s21   ;;  %s3894_s10 = scalar_lea.hbm %s4532_s5, 1024 }
  0xab   : > { %s4569_s29 = scalar_lea.sflag [#allocation7], %s5442_s19  ;;  %p3895_p0 = scmp.ne.s32.totalorder %s4532_s5, %s3894_s10 }
  0xac   : > { %p5443_p12 = scmp.ne.s32.totalorder %s5439_s14, 0  ;;  %s3899_s8 = scalar_lea.hbm %s5437_s1, 4096 }
  0xad   : > { %p3900_p8 = scmp.lt.u32.totalorder %s4532_s5, %s5437_s1  ;;  %p3901_p9 = scmp.lt.u32.totalorder %s3899_s8, %s3894_s10 }
  0xae   : > { %p3896_p1 = pneg %p5443_p12  ;;  %p3903_p5 = scmp.lt.u32.totalorder %s3894_s10, %s4532_s5 }
  0xaf   : > { %p3902_p7 = por %p3901_p9, %p3900_p8 }
  0xb0   : > { %p3897_p2 = pnand %p3896_p1, %p3895_p0 }
  0xb1   : > { %p3904_p10 = por %p3903_p5, %p3902_p7 }
  0xb2   : > { %p3898_p3 = pneg %p3897_p2 }
  0xb4   : > { %p3905_p4 = pnand %p3904_p10, %p3898_p3 }
  0xb6   : > { %3908 = shalt.err (!%p3905_p4)
}
  0xb7   : > { %s3909_s2 = scalar_lea.vmem %s4527_s16, 1024  ;;  %s4156_s18 = smov [#allocation6]  }
  0xb8   : > { %p3910_p11 = scmp.ne.s32.totalorder %s4527_s16, %s3909_s2  ;;  %s3914_s9 = sshll.u32 %s4156_s18, 4  ;;  %s3915_s9 = int_to_ptr.vmem [resolvable:$false] %s3914_s9 }
  0xb9   : > { %s3916_s17 = scalar_lea.vmem %s3915_s9, 2048  ;;  %p3917_p6 = scmp.lt.s32.totalorder %s4527_s16, %s3915_s9 }
  0xba   : > { %p3912_p0 = pnand %p3910_p11, %p3896_p1  ;;  %p3918_p8 = scmp.lt.s32.totalorder %s3916_s17, %s3909_s2 }
  0xbc   : > { %p3913_p2 = pneg %p3912_p0  ;;  %p3919_p9 = por %p3918_p8, %p3917_p6 }
  0xbe   : > { %p3920_p7 = pnand %p3919_p9, %p3913_p2 }
  0xc0   : > { %3923 = shalt.err (!%p3920_p7)
}
  0xc1   : > { %s5444_s30 = smov 4   ;;  %s5445_s19 = smov 64  }
  0xc2   : > { %3276 = dma.hbm_to_vmem [thread:$0]  (!%p5443_p12), %s4532_s5, 1024, %s4527_s16, %s4569_s29, %s5445_s19, %s5445_s19, %s5444_s30  }
  0xc3   : > { %s3188_s10 = sshll.u32 %s4142_s25, 12  ;;  %s457_s12 = scalar_lea.vmem [#allocation14], %s4462_s3 }
  0xc4   : > { %s464_s28 = sshll.u32 %s457_s12, 4  ;;  %s4605_s7 = scalar_lea.hbm %s5348_s6, %s3188_s10  ;;  %s4607_s28 = int_to_ptr.vmem [resolvable:$true] %s464_s28 }
  0xc5   : > { %s3924_s14 = scalar_lea.hbm %s4605_s7, 4096  ;;  %s3929_s3 = scalar_lea.hbm %s5348_s6, 8192 }
  0xc6   : > { %p3925_p6 = scmp.ne.s32.totalorder %s4605_s7, %s3924_s14  ;;  %p3930_p12 = scmp.lt.u32.totalorder %s4605_s7, %s5348_s6 }
  0xc7   : > { %p3931_p5 = scmp.lt.u32.totalorder %s3929_s3, %s3924_s14  ;;  %p3933_p4 = scmp.lt.u32.totalorder %s3924_s14, %s4605_s7 }
  0xc8   : > { %p3927_p1 = pnand %p3925_p6, %p4472_p13 }
  0xc9   : > { %p3932_p10 = por %p3931_p5, %p3930_p12 }
  0xca   : > { %p3928_p3 = pneg %p3927_p1 }
  0xcb   : > { %p3934_p11 = por %p3933_p4, %p3932_p10 }
  0xcd   : > { %p3935_p0 = pnand %p3934_p11, %p3928_p3 }
  0xcf   : > { %3938 = shalt.err (!%p3935_p0)
}
  0xd0   : > { %s3939_s18 = scalar_lea.vmem %s4607_s28, 4096  ;;  %s4157_s9 = smov [#allocation14]  }
  0xd1   : > { %p3940_p2 = scmp.ne.s32.totalorder %s4607_s28, %s3939_s18  ;;  %s3944_s17 = sshll.u32 %s4157_s9, 4  ;;  %s3945_s17 = int_to_ptr.vmem [resolvable:$false] %s3944_s17 }
  0xd2   : > { %s3946_s30 = scalar_lea.vmem %s3945_s17, 8192  ;;  %p3947_p7 = scmp.lt.s32.totalorder %s4607_s28, %s3945_s17 }
  0xd3   : > { %p3942_p8 = pnand %p3940_p2, %p4472_p13  ;;  %p3948_p6 = scmp.lt.s32.totalorder %s3946_s30, %s3939_s18 }
  0xd5   : > { %p3943_p9 = pneg %p3942_p8  ;;  %p3949_p1 = por %p3948_p6, %p3947_p7 }
  0xd7   : > { %p3950_p12 = pnand %p3949_p1, %p3943_p9 }
  0xd9   : > { %3953 = shalt.err (!%p3950_p12)
}
  0xda   : > { %s4158_s19 = smov 256   ;;  %s4159_s10 = smov 16  }
  0xdb   : > { %p5446_p3 = scmp.ne.s32.totalorder %s5428_s11, 0  ;;  %p5447_p13 = scmp.ne.s32.totalorder %s5408_s23, 0 }
  0xdc   : > { %s485_s15 = sand.u32 (!%p5447_p13), 1, %s4122_s20   ;;  %p5448_p5 = scmp.ne.s32.totalorder (!%p5447_p13), %s5436_s0, 0 }
  0xdd   : > { %3290 = dma.hbm_to_vmem [thread:$0]  (!%p5446_p3), %s4605_s7, 4096, %s4607_s28, %s4466_s22, %s4158_s19, %s4158_s19, %s4159_s10  }
  0xde   : > { %483 = sbr.rel (%p5447_p13) target bundleno = 1250 (0x4e2), region = 48  ;;  %s3036_s12 = sshll.u32 (!%p5447_p13), %s485_s15, 6 }
  0xdf   : > { %s486_s8 = scalar_lea.sflag (!%p5447_p13), [#allocation7], %s485_s15  ;;  %s4634_s13 = scalar_lea.vmem (!%p5447_p13), [#allocation6], %s3036_s12 }
  0xe5   : > { %4069 = dma.done.wait (%p5448_p5), %s486_s8, 1024  }
  0xe6   : > { %4071 = vsyncadd (%p5448_p5), %s486_s8, 4294966272  ;;  %s5449_s14 = sld [smem:[#allocation30_spill]]  ;;  %s5450_s5 = sld [smem:[#allocation36_spill]] }
  0xe7   : > { %s494_s11 = sand.u32 1, %s4291_s27  }
  0xe8   : > { %s495_s23 = scalar_lea.sflag [#allocation10], %s494_s11 }
  0xec   : > { %s496_s22 = sand.u32 1, %s5449_s14   ;;  %p5451_p10 = scmp.ne.s32.totalorder %s5450_s5, 0 }
  0xed   : > { %s3037_s28 = sshll.u32 %s496_s22, 6 }
  0xee   : > { %s4642_s7 = scalar_lea.vmem [#allocation9], %s3037_s28 }
  0xef   : > { %4073 = dma.done.wait (%p5451_p10), %s495_s23, 1024  }
  0xf0   : > { %4075 = vsyncadd (%p5451_p10), %s495_s23, 4294966272  ;;  %s5452_s16 = sld [smem:[#allocation28_spill]]  ;;  %s5453_s3 = sld [smem:[#allocation39_spill]] }
  0xf6   : > { %s4649_s29 = sand.u32 1, %s5452_s16   ;;  %p5454_p4 = scmp.ne.s32.totalorder %s5453_s3, 0 }
  0xf7   : > { %s3038_s0 = sshll.u32 %s4649_s29, 7 }
  0xf8   : > { %s4652_s2 = scalar_lea.vmem [#allocation11], %s3038_s0 }
  0xf9   : > { %4077 = dma.done.wait (%p5454_p4), %s495_s23, 2048  }
  0xfa   : > { %4079 = vsyncadd (%p5454_p4), %s495_s23, 4294965248  ;;  %s513_s27 = scalar_lea.sflag [#allocation13], %s494_s11  ;;  %s4658_s18 = scalar_lea.vmem [#allocation12], %s3038_s0 }
  0xfb   : > { %4081 = dma.done.wait (%p5454_p4), %s513_s27, 6144  }
  0xfc   : > { %4083 = vsyncadd (%p5454_p4), %s513_s27, 4294961152  ;;  %s5455_s9 = sld [smem:[#allocation33_spill]]  ;;  %s5456_s17 = sld [smem:[#allocation32_spill]] }
  0xfd   : > { %s3040_s30 = sshll.u32 %s4649_s29, 8  ;;  %s5457_s14 = sld [smem:[#allocation48_spill]] }
  0xfe   : > { %s5458_s16 = sld [smem:[#allocation45_spill]]  ;;  %s4680_s27 = scalar_lea.vmem [#allocation14], %s3040_s30 }
  0xff   : > { %s4682_s1 = scalar_lea.vmem [#allocation15], %s3038_s0  ;;  %s4684_s4 = scalar_lea.vmem [#allocation16], %s3038_s0 }
 0x102   : > { %p601_p11 = scmp.lt.s32.totalorder %s5455_s9, 1  ;;  %p603_p0 = scmp.lt.s32.totalorder %s5456_s17, 1 }
 0x103   : > { %p619_p2 = scmp.eq.s32.totalorder %s5456_s17, 0 }
 0x104   : > { %s5499_s9 = smov (!%p601_p11, %s5455_s9), 1  ;;  %s5501_s17 = smov (!%p603_p0, %s5456_s17), 1 }
 0x105   : > { %s3044_s19 = sshll.u32 %s5499_s9, 7  ;;  %s3046_s10 = sshll.u32 %s5499_s9, 2  ;;  %v4160_v0 = vmov (%p619_p2), 0.0  }
 0x106   : > { %s3043_s15 = sshll.u32 %s5501_s17, 6  ;;  %s4673_s5 = scalar_lea.vmem %s5457_s14, %s3046_s10  ;;  %625 = vst [vmem:[#allocation3] sm:$0xff] (%p619_p2), %v4160_v0  ;;  %626 = vst [vmem:[#allocation3 + $0x8] sm:$0xff] (%p619_p2), %v4160_v0 }
 0x107   : > { %s607_s11 = sadd.s32 %s3044_s19, %s3043_s15  ;;  %624 = sbr.rel (!%p619_p2) target bundleno = 294 (0x126), region = 72  ;;  %627 = vst [vmem:[#allocation3 + $0x10] sm:$0xff] (%p619_p2), %v4160_v0  ;;  %628 = vst [vmem:[#allocation3 + $0x18] sm:$0xff] (%p619_p2), %v4160_v0 }
 0x108   : > { %s3045_s22 = sshll.u32 %s607_s11, 2  ;;  %629 = vst [vmem:[#allocation3 + $0x20] sm:$0xff] (%p619_p2), %v4160_v0  ;;  %630 = vst [vmem:[#allocation3 + $0x28] sm:$0xff] (%p619_p2), %v4160_v0 }
 0x109   : > { %s4678_s3 = scalar_lea.vmem %s5458_s16, %s3045_s22  ;;  %631 = vst [vmem:[#allocation3 + $0x30] sm:$0xff] (%p619_p2), %v4160_v0  ;;  %632 = vst [vmem:[#allocation3 + $0x38] sm:$0xff] (%p619_p2), %v4160_v0 }
 0x10a   : > { %633 = vst [vmem:[#allocation3 + $0x40] sm:$0xff] (%p619_p2), %v4160_v0  ;;  %634 = vst [vmem:[#allocation3 + $0x48] sm:$0xff] (%p619_p2), %v4160_v0 }
 0x10b   : > { %635 = vst [vmem:[#allocation3 + $0x50] sm:$0xff] (%p619_p2), %v4160_v0  ;;  %636 = vst [vmem:[#allocation3 + $0x58] sm:$0xff] (%p619_p2), %v4160_v0 }
 0x10c   : > { %637 = vst [vmem:[#allocation3 + $0x60] sm:$0xff] (%p619_p2), %v4160_v0  ;;  %638 = vst [vmem:[#allocation3 + $0x68] sm:$0xff] (%p619_p2), %v4160_v0 }
 0x10d   : > { %639 = vst [vmem:[#allocation3 + $0x70] sm:$0xff] (%p619_p2), %v4160_v0  ;;  %640 = vst [vmem:[#allocation3 + $0x78] sm:$0xff] (%p619_p2), %v4160_v0 }
 0x10e   : > { %641 = vst [vmem:[#allocation3 + $0x80] sm:$0xff] %v4160_v0  ;;  %642 = vst [vmem:[#allocation3 + $0x88] sm:$0xff] %v4160_v0 }
 0x10f   : > { %643 = vst [vmem:[#allocation3 + $0x90] sm:$0xff] %v4160_v0  ;;  %644 = vst [vmem:[#allocation3 + $0x98] sm:$0xff] %v4160_v0 }
 0x110   : > { %645 = vst [vmem:[#allocation3 + $0xa0] sm:$0xff] %v4160_v0  ;;  %646 = vst [vmem:[#allocation3 + $0xa8] sm:$0xff] %v4160_v0 }
 0x111   : > { %647 = vst [vmem:[#allocation3 + $0xb0] sm:$0xff] %v4160_v0  ;;  %648 = vst [vmem:[#allocation3 + $0xb8] sm:$0xff] %v4160_v0 }
 0x112   : > { %649 = vst [vmem:[#allocation3 + $0xc0] sm:$0xff] %v4160_v0  ;;  %650 = vst [vmem:[#allocation3 + $0xc8] sm:$0xff] %v4160_v0 }
 0x113   : > { %651 = vst [vmem:[#allocation3 + $0xd0] sm:$0xff] %v4160_v0  ;;  %652 = vst [vmem:[#allocation3 + $0xd8] sm:$0xff] %v4160_v0 }
 0x114   : > { %653 = vst [vmem:[#allocation3 + $0xe0] sm:$0xff] %v4160_v0  ;;  %654 = vst [vmem:[#allocation3 + $0xe8] sm:$0xff] %v4160_v0 }
 0x115   : > { %655 = vst [vmem:[#allocation3 + $0xf0] sm:$0xff] %v4160_v0  ;;  %656 = vst [vmem:[#allocation3 + $0xf8] sm:$0xff] %v4160_v0 }
 0x116   : > { %657 = vst [vmem:[#allocation3 + $0x100] sm:$0xff] %v4160_v0  ;;  %658 = vst [vmem:[#allocation3 + $0x108] sm:$0xff] %v4160_v0 }
 0x117   : > { %659 = vst [vmem:[#allocation3 + $0x110] sm:$0xff] %v4160_v0  ;;  %660 = vst [vmem:[#allocation3 + $0x118] sm:$0xff] %v4160_v0 }
 0x118   : > { %661 = vst [vmem:[#allocation3 + $0x120] sm:$0xff] %v4160_v0  ;;  %662 = vst [vmem:[#allocation3 + $0x128] sm:$0xff] %v4160_v0 }
 0x119   : > { %663 = vst [vmem:[#allocation3 + $0x130] sm:$0xff] %v4160_v0  ;;  %664 = vst [vmem:[#allocation3 + $0x138] sm:$0xff] %v4160_v0 }
 0x11a   : > { %665 = vst [vmem:[#allocation3 + $0x140] sm:$0xff] %v4160_v0  ;;  %666 = vst [vmem:[#allocation3 + $0x148] sm:$0xff] %v4160_v0 }
 0x11b   : > { %667 = vst [vmem:[#allocation3 + $0x150] sm:$0xff] %v4160_v0  ;;  %668 = vst [vmem:[#allocation3 + $0x158] sm:$0xff] %v4160_v0 }
 0x11c   : > { %669 = vst [vmem:[#allocation3 + $0x160] sm:$0xff] %v4160_v0  ;;  %670 = vst [vmem:[#allocation3 + $0x168] sm:$0xff] %v4160_v0 }
 0x11d   : > { %671 = vst [vmem:[#allocation3 + $0x170] sm:$0xff] %v4160_v0  ;;  %672 = vst [vmem:[#allocation3 + $0x178] sm:$0xff] %v4160_v0 }
 0x11e   : > { %673 = vst [vmem:[#allocation3 + $0x180] sm:$0xff] %v4160_v0  ;;  %674 = vst [vmem:[#allocation3 + $0x188] sm:$0xff] %v4160_v0 }
 0x11f   : > { %675 = vst [vmem:[#allocation3 + $0x190] sm:$0xff] %v4160_v0  ;;  %676 = vst [vmem:[#allocation3 + $0x198] sm:$0xff] %v4160_v0 }
 0x120   : > { %677 = vst [vmem:[#allocation3 + $0x1a0] sm:$0xff] %v4160_v0  ;;  %678 = vst [vmem:[#allocation3 + $0x1a8] sm:$0xff] %v4160_v0 }
 0x121   : > { %679 = vst [vmem:[#allocation3 + $0x1b0] sm:$0xff] %v4160_v0  ;;  %680 = vst [vmem:[#allocation3 + $0x1b8] sm:$0xff] %v4160_v0 }
 0x122   : > { %681 = vst [vmem:[#allocation3 + $0x1c0] sm:$0xff] %v4160_v0  ;;  %682 = vst [vmem:[#allocation3 + $0x1c8] sm:$0xff] %v4160_v0 }
 0x123   : > { %683 = vst [vmem:[#allocation3 + $0x1d0] sm:$0xff] %v4160_v0  ;;  %684 = vst [vmem:[#allocation3 + $0x1d8] sm:$0xff] %v4160_v0 }
 0x124   : > { %685 = vst [vmem:[#allocation3 + $0x1e0] sm:$0xff] %v4160_v0  ;;  %686 = vst [vmem:[#allocation3 + $0x1e8] sm:$0xff] %v4160_v0 }
 0x125   : > { %687 = vst [vmem:[#allocation3 + $0x1f0] sm:$0xff] %v4160_v0  ;;  %688 = vst [vmem:[#allocation3 + $0x1f8] sm:$0xff] %v4160_v0 }
 0x126 PF: > { %v3424_v1 = vld [vmem:[%s4642_s7] sm:$0xff]   ;;  %v3425_v2 = vld [vmem:[%s4642_s7 + $0x8] sm:$0xff]   ;;  %v3426_v3 = vld [vmem:[%s4642_s7 + $0x10] sm:$0xff]   ;;  %v4161_v49 = vmov 0  }
 0x127   : > { %3209 = vmatprep.subr.bf16.mxu0 %v3424_v1  ;;  %v3427_v4 = vld [vmem:[%s4642_s7 + $0x18] sm:$0xff]   ;;  %v3432_v5 = vld [vmem:[%s4634_s13] sm:$0xff]   ;;  %v3429_v7 = vld [vmem:[%s4642_s7 + $0x28] sm:$0xff]   ;;  %1296 = vmatprep.mubr.bf16.mxu1 %v4161_v49 }
 0x128   : > { %3210 = vmatpush3.bf16.msra.mxu0 %v3424_v1  ;;  %3225 = vmatprep.mubr.bf16.mxu0 %v3432_v5  ;;  %v3428_v6 = vld [vmem:[%s4642_s7 + $0x20] sm:$0xff]   ;;  %v3430_v12 = vld [vmem:[%s4642_s7 + $0x30] sm:$0xff]   ;;  %v3431_v14 = vld [vmem:[%s4642_s7 + $0x38] sm:$0xff]  }
 0x129   : > { %3211 = vmatprep.subr.bf16.mxu0 %v3425_v2  ;;  %v3440_v8 = vld [vmem:[%s4678_s3 + $0x4] ss:$16 sps:$4 sm:$0xff]   ;;  %v3442_v9 = vld [vmem:[%s4678_s3] ss:$16 sps:$4 sm:$0xff]   ;;  %v4767_v17 = vld [vmem:[%s4678_s3 + $0xc] ss:$16 sps:$4 sm:$0xff]  }
 0x12a   : > { %1264 = vmatprep.subr.bf16.mxu1 %v3440_v8  ;;  %v3446_v10 = vld [vmem:[%s4678_s3 + $0x24] ss:$16 sps:$4 sm:$0xff]   ;;  %v3448_v11 = vld [vmem:[%s4678_s3 + $0x20] ss:$16 sps:$4 sm:$0xff]   ;;  %v3433_v20 = vld [vmem:[%s4634_s13 + $0x8] sm:$0xff]  }
 0x12b   : > { %1265 = vmatpush1.bf16.msra.mxu1 %v3442_v9  ;;  %v3452_v13 = vld [vmem:[%s4678_s3 + $0x44] ss:$16 sps:$4 sm:$0xff]   ;;  %v3454_v15 = vld [vmem:[%s4678_s3 + $0x40] ss:$16 sps:$4 sm:$0xff]   ;;  %v4774_v22 = vld [vmem:[%s4678_s3 + $0x8] ss:$16 sps:$4 sm:$0xff]  }
 0x12c   : > { %3212 = vmatpush3.bf16.msra.mxu0 %v3425_v2  ;;  %1266 = vmatprep.subr.bf16.mxu1 %v3446_v10  ;;  %v3458_v16 = vld [vmem:[%s4678_s3 + $0x64] ss:$16 sps:$4 sm:$0xff]   ;;  %v3460_v18 = vld [vmem:[%s4678_s3 + $0x60] ss:$16 sps:$4 sm:$0xff]   ;;  %v4777_v23 = vld [vmem:[%s4678_s3 + $0x2c] ss:$16 sps:$4 sm:$0xff]  }
 0x12d   : > { %3213 = vmatprep.subr.bf16.mxu0 %v3426_v3  ;;  %v3464_v19 = vld [vmem:[%s4678_s3 + $0x84] ss:$16 sps:$4 sm:$0xff]   ;;  %v3466_v24 = vld [vmem:[%s4678_s3 + $0x80] ss:$16 sps:$4 sm:$0xff]   ;;  %v4783_v26 = vld [vmem:[%s4678_s3 + $0x28] ss:$16 sps:$4 sm:$0xff]  }
 0x12e   : > { %v3434_v21 = vld [vmem:[%s4634_s13 + $0x10] sm:$0xff]   ;;  %v4788_v27 = vld [vmem:[%s4678_s3 + $0x4c] ss:$16 sps:$4 sm:$0xff]   ;;  %v3436_v31 = vld [vmem:[%s4634_s13 + $0x20] sm:$0xff]  }
 0x12f   : > { %1267 = vmatpush1.bf16.msra.mxu1 %v3448_v11  ;;  %v3470_v25 = vld [vmem:[%s4678_s3 + $0xa4] ss:$16 sps:$4 sm:$0xff]   ;;  %v3472_v28 = vld [vmem:[%s4678_s3 + $0xa0] ss:$16 sps:$4 sm:$0xff]   ;;  %v3435_v30 = vld [vmem:[%s4634_s13 + $0x18] sm:$0xff]  }
 0x130   : > { %3214 = vmatpush3.bf16.msra.mxu0 %v3426_v3  ;;  %1268 = vmatprep.subr.bf16.mxu1 %v3452_v13  ;;  %v3476_v29 = vld [vmem:[%s4678_s3 + $0xc4] ss:$16 sps:$4 sm:$0xff]   ;;  %v4796_v32 = vld [vmem:[%s4678_s3 + $0x48] ss:$16 sps:$4 sm:$0xff]   ;;  %v4800_v33 = vld [vmem:[%s4678_s3 + $0x6c] ss:$16 sps:$4 sm:$0xff]  }
 0x131   : > { %3215 = vmatprep.subr.bf16.mxu0 %v3427_v4  ;;  %v3478_v34 = vld [vmem:[%s4678_s3 + $0xc0] ss:$16 sps:$4 sm:$0xff]   ;;  %v4805_v35 = vld [vmem:[%s4678_s3 + $0x68] ss:$16 sps:$4 sm:$0xff]   ;;  %v4809_v36 = vld [vmem:[%s4678_s3 + $0x8c] ss:$16 sps:$4 sm:$0xff]  }
 0x132   : > { %v3437_v37 = vld [vmem:[%s4634_s13 + $0x28] sm:$0xff]   ;;  %v3438_v38 = vld [vmem:[%s4634_s13 + $0x30] sm:$0xff]   ;;  %v3439_v43 = vld [vmem:[%s4634_s13 + $0x38] sm:$0xff]   ;;  %s5459_s13 = sld [smem:[#allocation32_spill]] }
 0x133   : > { %1269 = vmatpush1.bf16.msra.mxu1 %v3454_v15  ;;  %v4815_v39 = vld [vmem:[%s4678_s3 + $0x88] ss:$16 sps:$4 sm:$0xff]   ;;  %v4819_v40 = vld [vmem:[%s4678_s3 + $0xac] ss:$16 sps:$4 sm:$0xff]   ;;  %v3482_v45 = vld [vmem:[%s4678_s3 + $0xe4] ss:$16 sps:$4 sm:$0xff]  }
 0x134   : > { %3216 = vmatpush3.bf16.msra.mxu0 %v3427_v4  ;;  %1270 = vmatprep.subr.bf16.mxu1 %v3458_v16  ;;  %v4823_v41 = vld [vmem:[%s4678_s3 + $0xa8] ss:$16 sps:$4 sm:$0xff]   ;;  %v4827_v42 = vld [vmem:[%s4678_s3 + $0xcc] ss:$16 sps:$4 sm:$0xff]   ;;  %v3484_v47 = vld [vmem:[%s4678_s3 + $0xe0] ss:$16 sps:$4 sm:$0xff]  }
 0x135   : > { %3217 = vmatprep.subr.bf16.mxu0 %v3428_v6  ;;  %v4832_v44 = vld [vmem:[%s4678_s3 + $0xc8] ss:$16 sps:$4 sm:$0xff]   ;;  %v4838_v46 = vld [vmem:[%s4678_s3 + $0xec] ss:$16 sps:$4 sm:$0xff]   ;;  %v984_v10 = vld [vmem:[#allocation3] sm:$0xff] }
 0x136   : > { %v3485_v48 = vld [vmem:[%s4678_s3 + $0xe8] ss:$16 sps:$4 sm:$0xff]   ;;  %v986_v11 = vld [vmem:[#allocation3 + $0x10] sm:$0xff]  ;;  %v988_v16 = vld [vmem:[#allocation3 + $0x20] sm:$0xff] }
 0x137   : > { %1271 = vmatpush1.bf16.msra.mxu1 %v3460_v18  ;;  %v987_v13 = vld [vmem:[#allocation3 + $0x18] sm:$0xff] }
 0x138   : > { %3218 = vmatpush3.bf16.msra.mxu0 %v3428_v6  ;;  %1272 = vmatprep.subr.bf16.mxu1 %v3464_v19  ;;  %p1618_p8 = scmp.eq.s32.totalorder %s5459_s13, 1 }
 0x139   : > { %3219 = vmatprep.subr.bf16.mxu0 %v3429_v7 }
 0x13b   : > { %1273 = vmatpush1.bf16.msra.mxu1 %v3466_v24 }
 0x13c   : > { %3220 = vmatpush3.bf16.msra.mxu0 %v3429_v7  ;;  %1274 = vmatprep.subr.bf16.mxu1 %v3470_v25 }
 0x13d   : > { %3221 = vmatprep.subr.bf16.mxu0 %v3430_v12 }
 0x13f   : > { %1275 = vmatpush1.bf16.msra.mxu1 %v3472_v28 }
 0x140   : > { %3222 = vmatpush3.bf16.msra.mxu0 %v3430_v12  ;;  %1276 = vmatprep.subr.bf16.mxu1 %v3476_v29  ;;  %v985_v12 = vld [vmem:[#allocation3 + $0x8] sm:$0xff] }
 0x141   : > { %3223 = vmatprep.subr.bf16.mxu0 %v3431_v14 }
 0x143   : > { %1277 = vmatpush1.bf16.msra.mxu1 %v3478_v34  ;;  %v992_v34 = vld [vmem:[#allocation3 + $0x40] sm:$0xff] }
 0x144   : > { %3224 = vmatpush3.bf16.msra.mxu0 %v3431_v14  ;;  %1278 = vmatprep.subr.bf16.mxu1 %v3482_v45 }
 0x145   : > { %1377 = vmatprep.subr.bf16.mxu0 %v4767_v17 }
 0x147   : > { %3226 = vmatmul.mubr.bf16.vlgmr.msra.gmra.mrb[0].mxu0 %v3433_v20  ;;  %1279 = vmatpush1.bf16.msra.mxu1 %v3484_v47  ;;  %v999_v47 = vld [vmem:[#allocation3 + $0x78] sm:$0xff] }
 0x148   : > { %3229 = vmatprep.mubr.bf16.mxu0 %v3434_v21  ;;  %1378 = vmatpush1.bf16.msra.mxu0 %v4774_v22 }
 0x149   : > { %1379 = vmatprep.subr.bf16.mxu0 %v4777_v23  ;;  %3241 = vmatprep.subr.bf16.mxu1 %v4767_v17  ;;  %v990_v17 = vld [vmem:[#allocation3 + $0x30] sm:$0xff] }
 0x14c   : > { %1380 = vmatpush1.bf16.msra.mxu0 %v4783_v26 }
 0x14d   : > { %1381 = vmatprep.subr.bf16.mxu0 %v4788_v27 }
 0x14f   : > { %3230 = vmatmul.mubr.bf16.gmra.mrb[4].mxu0 %v3435_v30 }
 0x150   : > { %3233 = vmatprep.mubr.bf16.mxu0 %v3436_v31  ;;  %1382 = vmatpush1.bf16.msra.mxu0 %v4796_v32 }
 0x151   : > { %1383 = vmatprep.subr.bf16.mxu0 %v4800_v33 }
 0x154   : > { %1384 = vmatpush1.bf16.msra.mxu0 %v4805_v35 }
 0x155   : > { %1385 = vmatprep.subr.bf16.mxu0 %v4809_v36 }
 0x157   : > { %3234 = vmatmul.mubr.bf16.gmra.mrb[8].mxu0 %v3437_v37  ;;  %v995_v37 = vld [vmem:[#allocation3 + $0x58] sm:$0xff] }
 0x158   : > { %3237 = vmatprep.mubr.bf16.mxu0 %v3438_v38  ;;  %1386 = vmatpush1.bf16.msra.mxu0 %v4815_v39 }
 0x159   : > { %1387 = vmatprep.subr.bf16.mxu0 %v4819_v40 }
 0x15c   : > { %1388 = vmatpush1.bf16.msra.mxu0 %v4823_v41 }
 0x15d   : > { %1389 = vmatprep.subr.bf16.mxu0 %v4827_v42 }
 0x15f   : > { %3238 = vmatmul.mubr.bf16.gmra.mrb[12].mxu0 %v3439_v43 }
 0x160   : > { %1390 = vmatpush1.bf16.msra.mxu0 %v4832_v44  ;;  %1409 = vmatprep.mubr.bf16.mxu0 %v4161_v49 }
 0x161   : > { %1391 = vmatprep.subr.bf16.mxu0 %v4838_v46 }
 0x164   : > { %1392 = vmatpush1.bf16.msra.mxu0 %v3485_v48 }
 0x21a   : > { %v3227_v50 = vpop.f32.mrb[0].mxu0 }
 0x21b   : > { %v886_v51 = vpop.f32.mrb[1].mxu0 }
 0x21c   : > { %v3228_v52 = vpop.f32.mrb[2].mxu0 }
 0x21d   : > { %v1065_v53 = vpack.c.bf16 %v3228_v52, %v3227_v50  ;;  %v889_v54 = vpop.f32.mrb[3].mxu0 }
 0x21e   : > { %v1064_v55 = vpack.c.bf16 %v889_v54, %v886_v51 }
 0x220   : > { %1297 = vmatmul.mubr.bf16.vlgmr.msra.gmra.mrb[0].mxu1 %v1064_v55  ;;  %1410 = vmatmul.mubr.bf16.vlgmr.msra.gmra.mrb[16].mxu0 %v1064_v55 }
 0x221   : > { %3249 = vmatpush1.bf16.msra.mxu1 %v4774_v22  ;;  %1306 = vmatprep.mubr.bf16.mxu1 %v4161_v49  ;;  %v989_v22 = vld [vmem:[#allocation3 + $0x28] sm:$0xff] }
 0x222   : > { %v3231_v56 = vpop.f32.mrb[4].mxu0  ;;  %3242 = vmatprep.subr.bf16.mxu1 %v4777_v23  ;;  %1419 = vmatprep.mubr.bf16.mxu0 %v4161_v49  ;;  %v991_v23 = vld [vmem:[#allocation3 + $0x38] sm:$0xff] }
 0x223   : > { %v902_v57 = vpop.f32.mrb[5].mxu0 }
 0x224   : > { %v3232_v58 = vpop.f32.mrb[6].mxu0 }
 0x225   : > { %3250 = vmatpush1.bf16.msra.mxu1 %v4783_v26  ;;  %v1067_v59 = vpack.c.bf16 %v3232_v58, %v3231_v56  ;;  %v905_v60 = vpop.f32.mrb[7].mxu0  ;;  %v1000_v58 = vld [vmem:[#allocation3 + $0x80] sm:$0xff] }
 0x226   : > { %v1066_v61 = vpack.c.bf16 %v905_v60, %v902_v57  ;;  %3243 = vmatprep.subr.bf16.mxu1 %v4788_v27  ;;  %v1001_v60 = vld [vmem:[#allocation3 + $0x88] sm:$0xff] }
 0x228   : > { %1307 = vmatmul.mubr.bf16.gmra.mrb[4].mxu1 %v1065_v53  ;;  %1420 = vmatmul.mubr.bf16.gmra.mrb[20].mxu0 %v1065_v53 }
 0x229   : > { %1316 = vmatprep.mubr.bf16.mxu1 %v4161_v49  ;;  %1429 = vmatprep.mubr.bf16.mxu0 %v4161_v49 }
 0x22a   : > { %3251 = vmatpush1.bf16.msra.mxu1 %v4796_v32  ;;  %v3235_v62 = vpop.f32.mrb[8].mxu0 }
 0x22b   : > { %3244 = vmatprep.subr.bf16.mxu1 %v4800_v33  ;;  %v918_v63 = vpop.f32.mrb[9].mxu0 }
 0x22c   : > { %v3236_v0 = vpop.f32.mrb[10].mxu0 }
 0x22d   : > { %v1069_v1 = vpack.c.bf16 %v3236_v0, %v3235_v62  ;;  %v921_v2 = vpop.f32.mrb[11].mxu0  ;;  %v1004_v0 = vld [vmem:[#allocation3 + $0xa0] sm:$0xff] }
 0x22e   : > { %3252 = vmatpush1.bf16.msra.mxu1 %v4805_v35  ;;  %v1068_v3 = vpack.c.bf16 %v921_v2, %v918_v63  ;;  %v994_v35 = vld [vmem:[#allocation3 + $0x50] sm:$0xff] }
 0x22f   : > { %3245 = vmatprep.subr.bf16.mxu1 %v4809_v36  ;;  %v993_v36 = vld [vmem:[#allocation3 + $0x48] sm:$0xff] }
 0x230   : > { %1317 = vmatmul.mubr.bf16.gmra.mrb[8].mxu1 %v1066_v61  ;;  %1430 = vmatmul.mubr.bf16.gmra.mrb[24].mxu0 %v1066_v61  ;;  %v1003_v61 = vld [vmem:[#allocation3 + $0x98] sm:$0xff] }
 0x231   : > { %1326 = vmatprep.mubr.bf16.mxu1 %v4161_v49  ;;  %1439 = vmatprep.mubr.bf16.mxu0 %v4161_v49 }
 0x232   : > { %3253 = vmatpush1.bf16.msra.mxu1 %v4815_v39  ;;  %v3239_v4 = vpop.f32.mrb[12].mxu0 }
 0x233   : > { %3246 = vmatprep.subr.bf16.mxu1 %v4819_v40  ;;  %v934_v5 = vpop.f32.mrb[13].mxu0  ;;  %v996_v40 = vld [vmem:[#allocation3 + $0x60] sm:$0xff] }
 0x234   : > { %v3240_v6 = vpop.f32.mrb[14].mxu0 }
 0x235   : > { %v1071_v7 = vpack.c.bf16 %v3240_v6, %v3239_v4  ;;  %v937_v8 = vpop.f32.mrb[15].mxu0  ;;  %v1005_v6 = vld [vmem:[#allocation3 + $0xa8] sm:$0xff] }
 0x236   : > { %3254 = vmatpush1.bf16.msra.mxu1 %v4823_v41  ;;  %v1070_v9 = vpack.c.bf16 %v937_v8, %v934_v5  ;;  %v998_v41 = vld [vmem:[#allocation3 + $0x70] sm:$0xff] }
 0x237   : > { %3247 = vmatprep.subr.bf16.mxu1 %v4827_v42 }
 0x238   : > { %1327 = vmatmul.mubr.bf16.gmra.mrb[12].mxu1 %v1067_v59  ;;  %1440 = vmatmul.mubr.bf16.gmra.mrb[28].mxu0 %v1067_v59  ;;  %v1002_v59 = vld [vmem:[#allocation3 + $0x90] sm:$0xff] }
 0x239   : > { %1336 = vmatprep.mubr.bf16.mxu1 %v4161_v49  ;;  %1449 = vmatprep.mubr.bf16.mxu0 %v4161_v49 }
 0x23a   : > { %3255 = vmatpush1.bf16.msra.mxu1 %v4832_v44 }
 0x23b   : > { %3248 = vmatprep.subr.bf16.mxu1 %v4838_v46  ;;  %v997_v46 = vld [vmem:[#allocation3 + $0x68] sm:$0xff] }
 0x23e   : > { %3256 = vmatpush1.bf16.msra.mxu1 %v3485_v48 }
 0x240   : > { %1337 = vmatmul.mubr.bf16.gmra.mrb[16].mxu1 %v1068_v3  ;;  %1450 = vmatmul.mubr.bf16.gmra.mrb[32].mxu0 %v1068_v3 }
 0x241   : > { %1346 = vmatprep.mubr.bf16.mxu1 %v4161_v49  ;;  %1459 = vmatprep.mubr.bf16.mxu0 %v4161_v49 }
 0x248   : > { %1347 = vmatmul.mubr.bf16.gmra.mrb[20].mxu1 %v1069_v1  ;;  %1460 = vmatmul.mubr.bf16.gmra.mrb[36].mxu0 %v1069_v1  ;;  %v1006_v1 = vld [vmem:[#allocation3 + $0xb0] sm:$0xff] }
 0x249   : > { %1356 = vmatprep.mubr.bf16.mxu1 %v4161_v49 }
 0x250   : > { %1357 = vmatmul.mubr.bf16.gmra.mrb[24].mxu1 %v1070_v9 }
 0x251   : > { %1366 = vmatprep.mubr.bf16.mxu1 %v4161_v49 }
 0x258   : > { %1367 = vmatmul.mubr.bf16.gmra.mrb[28].mxu1 %v1071_v7 }
 0x259   : > { %1469 = vmatprep.mubr.bf16.mxu1 %v4161_v49 }
 0x260   : > { %1470 = vmatmul.mubr.bf16.vlgmr.msra.gmra.mrb[32].mxu1 %v1070_v9 }
 0x261   : > { %1479 = vmatprep.mubr.bf16.mxu1 %v4161_v49 }
 0x268   : > { %1480 = vmatmul.mubr.bf16.gmra.mrb[36].mxu1 %v1071_v7  ;;  %v1007_v7 = vld [vmem:[#allocation3 + $0xb8] sm:$0xff] }
 0x2f3   : > { %v1298_v14 = vpop.f32.mrb[0].mxu1  ;;  %v1411_v15 = vpop.f32.mrb[16].mxu0 }
 0x2f4   : > { %v1490_v18 = vadd.f32 %v1298_v14, %v984_v10  ;;  %v1492_v19 = vadd.f32 %v1411_v15, %v986_v11  ;;  %v1300_v20 = vpop.f32.mrb[1].mxu1  ;;  %v1413_v21 = vpop.f32.mrb[17].mxu0 }
 0x2f5   : > { %v1491_v24 = vadd.f32 %v1300_v20, %v985_v12  ;;  %v1493_v25 = vadd.f32 %v1413_v21, %v987_v13  ;;  %v1302_v26 = vpop.f32.mrb[2].mxu1  ;;  %v1415_v27 = vpop.f32.mrb[18].mxu0  ;;  %v1009_v20 = vld [vmem:[#allocation3 + $0xc8] sm:$0xff]  ;;  %v1011_v21 = vld [vmem:[#allocation3 + $0xd8] sm:$0xff] }
 0x2f6   : > { %1554 = vst [vmem:[#allocation3] sm:$0xff] %v1490_v18  ;;  %1556 = vst [vmem:[#allocation3 + $0x10] sm:$0xff] %v1492_v19  ;;  %v1494_v28 = vadd.f32 %v1302_v26, %v988_v16  ;;  %v1496_v29 = vadd.f32 %v1415_v27, %v990_v17  ;;  %v1304_v30 = vpop.f32.mrb[3].mxu1  ;;  %v1417_v31 = vpop.f32.mrb[19].mxu0  ;;  %v1008_v18 = vld [vmem:[#allocation3 + $0xc0] sm:$0xff]  ;;  %v1010_v19 = vld [vmem:[#allocation3 + $0xd0] sm:$0xff] }
 0x2f7   : > { %1555 = vst [vmem:[#allocation3 + $0x8] sm:$0xff] %v1491_v24  ;;  %1557 = vst [vmem:[#allocation3 + $0x18] sm:$0xff] %v1493_v25  ;;  %v1495_v32 = vadd.f32 %v1304_v30, %v989_v22  ;;  %v1497_v33 = vadd.f32 %v1417_v31, %v991_v23  ;;  %v1012_v24 = vld [vmem:[#allocation3 + $0xe0] sm:$0xff]  ;;  %v1014_v25 = vld [vmem:[#allocation3 + $0xf0] sm:$0xff] }
 0x2f8   : > { %1558 = vst [vmem:[#allocation3 + $0x20] sm:$0xff] %v1494_v28  ;;  %1560 = vst [vmem:[#allocation3 + $0x30] sm:$0xff] %v1496_v29  ;;  %v1013_v30 = vld [vmem:[#allocation3 + $0xe8] sm:$0xff]  ;;  %v1015_v31 = vld [vmem:[#allocation3 + $0xf8] sm:$0xff] }
 0x2f9   : > { %1559 = vst [vmem:[#allocation3 + $0x28] sm:$0xff] %v1495_v32  ;;  %1561 = vst [vmem:[#allocation3 + $0x38] sm:$0xff] %v1497_v33 }
 0x2fb   : > { %v1308_v38 = vpop.f32.mrb[4].mxu1  ;;  %v1421_v39 = vpop.f32.mrb[20].mxu0 }
 0x2fc   : > { %v1498_v42 = vadd.f32 %v1308_v38, %v992_v34  ;;  %v1500_v43 = vadd.f32 %v1421_v39, %v994_v35  ;;  %v1310_v44 = vpop.f32.mrb[5].mxu1  ;;  %v1423_v45 = vpop.f32.mrb[21].mxu0 }
 0x2fd   : > { %v1499_v48 = vadd.f32 %v1310_v44, %v993_v36  ;;  %v1501_v49 = vadd.f32 %v1423_v45, %v995_v37  ;;  %v1312_v50 = vpop.f32.mrb[6].mxu1  ;;  %v1425_v51 = vpop.f32.mrb[22].mxu0  ;;  %v1017_v44 = vld [vmem:[#allocation3 + $0x108] sm:$0xff]  ;;  %v1019_v45 = vld [vmem:[#allocation3 + $0x118] sm:$0xff] }
 0x2fe   : > { %1562 = vst [vmem:[#allocation3 + $0x40] sm:$0xff] %v1498_v42  ;;  %1564 = vst [vmem:[#allocation3 + $0x50] sm:$0xff] %v1500_v43  ;;  %v1502_v52 = vadd.f32 %v1312_v50, %v996_v40  ;;  %v1504_v53 = vadd.f32 %v1425_v51, %v998_v41  ;;  %v1314_v54 = vpop.f32.mrb[7].mxu1  ;;  %v1427_v55 = vpop.f32.mrb[23].mxu0  ;;  %v1016_v42 = vld [vmem:[#allocation3 + $0x100] sm:$0xff]  ;;  %v1018_v43 = vld [vmem:[#allocation3 + $0x110] sm:$0xff] }
 0x2ff   : > { %1563 = vst [vmem:[#allocation3 + $0x48] sm:$0xff] %v1499_v48  ;;  %1565 = vst [vmem:[#allocation3 + $0x58] sm:$0xff] %v1501_v49  ;;  %v1503_v56 = vadd.f32 %v1314_v54, %v997_v46  ;;  %v1505_v57 = vadd.f32 %v1427_v55, %v999_v47  ;;  %v1020_v48 = vld [vmem:[#allocation3 + $0x120] sm:$0xff]  ;;  %v1022_v49 = vld [vmem:[#allocation3 + $0x130] sm:$0xff] }
 0x300   : > { %1566 = vst [vmem:[#allocation3 + $0x60] sm:$0xff] %v1502_v52  ;;  %1568 = vst [vmem:[#allocation3 + $0x70] sm:$0xff] %v1504_v53  ;;  %v1021_v54 = vld [vmem:[#allocation3 + $0x128] sm:$0xff]  ;;  %v1023_v55 = vld [vmem:[#allocation3 + $0x138] sm:$0xff] }
 0x301   : > { %1567 = vst [vmem:[#allocation3 + $0x68] sm:$0xff] %v1503_v56  ;;  %1569 = vst [vmem:[#allocation3 + $0x78] sm:$0xff] %v1505_v57 }
 0x303   : > { %v1318_v62 = vpop.f32.mrb[8].mxu1  ;;  %v1431_v63 = vpop.f32.mrb[24].mxu0 }
 0x304   : > { %v1506_v2 = vadd.f32 %v1318_v62, %v1000_v58  ;;  %v1508_v3 = vadd.f32 %v1431_v63, %v1002_v59  ;;  %v1320_v4 = vpop.f32.mrb[9].mxu1  ;;  %v1433_v5 = vpop.f32.mrb[25].mxu0 }
 0x305   : > { %v1507_v8 = vadd.f32 %v1320_v4, %v1001_v60  ;;  %v1509_v9 = vadd.f32 %v1433_v5, %v1003_v61  ;;  %v1322_v10 = vpop.f32.mrb[10].mxu1  ;;  %v1435_v11 = vpop.f32.mrb[26].mxu0  ;;  %v1025_v4 = vld [vmem:[#allocation3 + $0x148] sm:$0xff]  ;;  %v1027_v5 = vld [vmem:[#allocation3 + $0x158] sm:$0xff] }
 0x306   : > { %1570 = vst [vmem:[#allocation3 + $0x80] sm:$0xff] %v1506_v2  ;;  %1572 = vst [vmem:[#allocation3 + $0x90] sm:$0xff] %v1508_v3  ;;  %v1510_v12 = vadd.f32 %v1322_v10, %v1004_v0  ;;  %v1512_v13 = vadd.f32 %v1435_v11, %v1006_v1  ;;  %v1324_v14 = vpop.f32.mrb[11].mxu1  ;;  %v1437_v15 = vpop.f32.mrb[27].mxu0  ;;  %v1024_v2 = vld [vmem:[#allocation3 + $0x140] sm:$0xff]  ;;  %v1026_v3 = vld [vmem:[#allocation3 + $0x150] sm:$0xff] }
 0x307   : > { %1571 = vst [vmem:[#allocation3 + $0x88] sm:$0xff] %v1507_v8  ;;  %1573 = vst [vmem:[#allocation3 + $0x98] sm:$0xff] %v1509_v9  ;;  %v1511_v16 = vadd.f32 %v1324_v14, %v1005_v6  ;;  %v1513_v17 = vadd.f32 %v1437_v15, %v1007_v7  ;;  %v1028_v8 = vld [vmem:[#allocation3 + $0x160] sm:$0xff]  ;;  %v1030_v9 = vld [vmem:[#allocation3 + $0x170] sm:$0xff] }
 0x308   : > { %1574 = vst [vmem:[#allocation3 + $0xa0] sm:$0xff] %v1510_v12  ;;  %1576 = vst [vmem:[#allocation3 + $0xb0] sm:$0xff] %v1512_v13  ;;  %v1029_v14 = vld [vmem:[#allocation3 + $0x168] sm:$0xff]  ;;  %v1031_v15 = vld [vmem:[#allocation3 + $0x178] sm:$0xff] }
 0x309   : > { %1575 = vst [vmem:[#allocation3 + $0xa8] sm:$0xff] %v1511_v16  ;;  %1577 = vst [vmem:[#allocation3 + $0xb8] sm:$0xff] %v1513_v17 }
 0x30b   : > { %v1328_v22 = vpop.f32.mrb[12].mxu1  ;;  %v1441_v23 = vpop.f32.mrb[28].mxu0 }
 0x30c   : > { %v1514_v26 = vadd.f32 %v1328_v22, %v1008_v18  ;;  %v1516_v27 = vadd.f32 %v1441_v23, %v1010_v19  ;;  %v1330_v28 = vpop.f32.mrb[13].mxu1  ;;  %v1443_v29 = vpop.f32.mrb[29].mxu0 }
 0x30d   : > { %v1515_v32 = vadd.f32 %v1330_v28, %v1009_v20  ;;  %v1517_v33 = vadd.f32 %v1443_v29, %v1011_v21  ;;  %v1332_v34 = vpop.f32.mrb[14].mxu1  ;;  %v1445_v35 = vpop.f32.mrb[30].mxu0  ;;  %v1036_v29 = vld [vmem:[#allocation3 + $0x1a0] sm:$0xff] }
 0x30e   : > { %1578 = vst [vmem:[#allocation3 + $0xc0] sm:$0xff] %v1514_v26  ;;  %1580 = vst [vmem:[#allocation3 + $0xd0] sm:$0xff] %v1516_v27  ;;  %v1518_v36 = vadd.f32 %v1332_v34, %v1012_v24  ;;  %v1520_v37 = vadd.f32 %v1445_v35, %v1014_v25  ;;  %v1334_v38 = vpop.f32.mrb[15].mxu1  ;;  %v1447_v39 = vpop.f32.mrb[31].mxu0  ;;  %v1032_v26 = vld [vmem:[#allocation3 + $0x180] sm:$0xff]  ;;  %v1033_v27 = vld [vmem:[#allocation3 + $0x188] sm:$0xff] }
 0x30f   : > { %1579 = vst [vmem:[#allocation3 + $0xc8] sm:$0xff] %v1515_v32  ;;  %1581 = vst [vmem:[#allocation3 + $0xd8] sm:$0xff] %v1517_v33  ;;  %v1519_v40 = vadd.f32 %v1334_v38, %v1013_v30  ;;  %v1521_v41 = vadd.f32 %v1447_v39, %v1015_v31  ;;  %v1037_v32 = vld [vmem:[#allocation3 + $0x1a8] sm:$0xff]  ;;  %v1040_v38 = vld [vmem:[#allocation3 + $0x1c0] sm:$0xff] }
 0x310   : > { %1582 = vst [vmem:[#allocation3 + $0xe0] sm:$0xff] %v1518_v36  ;;  %1584 = vst [vmem:[#allocation3 + $0xf0] sm:$0xff] %v1520_v37  ;;  %v1041_v39 = vld [vmem:[#allocation3 + $0x1c8] sm:$0xff] }
 0x311   : > { %1583 = vst [vmem:[#allocation3 + $0xe8] sm:$0xff] %v1519_v40  ;;  %1585 = vst [vmem:[#allocation3 + $0xf8] sm:$0xff] %v1521_v41  ;;  %v1044_v41 = vld [vmem:[#allocation3 + $0x1e0] sm:$0xff] }
 0x313   : > { %v1338_v46 = vpop.f32.mrb[16].mxu1  ;;  %v1451_v47 = vpop.f32.mrb[32].mxu0 }
 0x314   : > { %v1522_v50 = vadd.f32 %v1338_v46, %v1016_v42  ;;  %v1524_v51 = vadd.f32 %v1451_v47, %v1018_v43  ;;  %v1340_v52 = vpop.f32.mrb[17].mxu1  ;;  %v1453_v53 = vpop.f32.mrb[33].mxu0 }
 0x315   : > { %v1523_v56 = vadd.f32 %v1340_v52, %v1017_v44  ;;  %v1525_v57 = vadd.f32 %v1453_v53, %v1019_v45  ;;  %v1342_v58 = vpop.f32.mrb[18].mxu1  ;;  %v1455_v59 = vpop.f32.mrb[34].mxu0  ;;  %v1045_v44 = vld [vmem:[#allocation3 + $0x1e8] sm:$0xff]  ;;  %v1038_v53 = vld [vmem:[#allocation3 + $0x1b0] sm:$0xff] }
 0x316   : > { %1586 = vst [vmem:[#allocation3 + $0x100] sm:$0xff] %v1522_v50  ;;  %1588 = vst [vmem:[#allocation3 + $0x110] sm:$0xff] %v1524_v51  ;;  %v1526_v60 = vadd.f32 %v1342_v58, %v1020_v48  ;;  %v1528_v61 = vadd.f32 %v1455_v59, %v1022_v49  ;;  %v1344_v62 = vpop.f32.mrb[19].mxu1  ;;  %v1457_v63 = vpop.f32.mrb[35].mxu0  ;;  %v1034_v50 = vld [vmem:[#allocation3 + $0x190] sm:$0xff]  ;;  %v1035_v51 = vld [vmem:[#allocation3 + $0x198] sm:$0xff] }
 0x317   : > { %1587 = vst [vmem:[#allocation3 + $0x108] sm:$0xff] %v1523_v56  ;;  %1589 = vst [vmem:[#allocation3 + $0x118] sm:$0xff] %v1525_v57  ;;  %v1527_v0 = vadd.f32 %v1344_v62, %v1021_v54  ;;  %v1529_v1 = vadd.f32 %v1457_v63, %v1023_v55  ;;  %v1039_v56 = vld [vmem:[#allocation3 + $0x1b8] sm:$0xff]  ;;  %v1042_v62 = vld [vmem:[#allocation3 + $0x1d0] sm:$0xff] }
 0x318   : > { %1590 = vst [vmem:[#allocation3 + $0x120] sm:$0xff] %v1526_v60  ;;  %1592 = vst [vmem:[#allocation3 + $0x130] sm:$0xff] %v1528_v61  ;;  %v1043_v63 = vld [vmem:[#allocation3 + $0x1d8] sm:$0xff] }
 0x319   : > { %1591 = vst [vmem:[#allocation3 + $0x128] sm:$0xff] %v1527_v0  ;;  %1593 = vst [vmem:[#allocation3 + $0x138] sm:$0xff] %v1529_v1  ;;  %v1046_v1 = vld [vmem:[#allocation3 + $0x1f0] sm:$0xff] }
 0x31b   : > { %v1348_v6 = vpop.f32.mrb[20].mxu1  ;;  %v1461_v7 = vpop.f32.mrb[36].mxu0 }
 0x31c   : > { %v1530_v10 = vadd.f32 %v1348_v6, %v1024_v2  ;;  %v1532_v11 = vadd.f32 %v1461_v7, %v1026_v3  ;;  %v1350_v12 = vpop.f32.mrb[21].mxu1  ;;  %v1463_v13 = vpop.f32.mrb[37].mxu0 }
 0x31d   : > { %v1531_v16 = vadd.f32 %v1350_v12, %v1025_v4  ;;  %v1533_v17 = vadd.f32 %v1463_v13, %v1027_v5  ;;  %v1352_v18 = vpop.f32.mrb[22].mxu1  ;;  %v1465_v19 = vpop.f32.mrb[38].mxu0  ;;  %v1047_v4 = vld [vmem:[#allocation3 + $0x1f8] sm:$0xff]  ;;  %v4162_v12 = vmov (%p1618_p8), 0   ;;  %v3491_v13 = vld [vmem:[%s4680_s27 + $0x24] ss:$16 sps:$4 sm:$0xff] (%p1618_p8)  }
 0x31e   : > { %1594 = vst [vmem:[#allocation3 + $0x140] sm:$0xff] %v1530_v10  ;;  %1596 = vst [vmem:[#allocation3 + $0x150] sm:$0xff] %v1532_v11  ;;  %v1534_v20 = vadd.f32 %v1352_v18, %v1028_v8  ;;  %v1536_v21 = vadd.f32 %v1465_v19, %v1030_v9  ;;  %v1354_v22 = vpop.f32.mrb[23].mxu1  ;;  %v1467_v23 = vpop.f32.mrb[39].mxu0  ;;  %v3488_v10 = vld [vmem:[%s4680_s27 + $0x4] ss:$16 sps:$4 sm:$0xff] (%p1618_p8)   ;;  %1951 = vmatprep.mubr.bf16.mxu0 (%p1618_p8), %v4162_v12  ;;  %2064 = vmatprep.mubr.bf16.mxu1 (%p1618_p8), %v4162_v12 }
 0x31f   : > { %1595 = vst [vmem:[#allocation3 + $0x148] sm:$0xff] %v1531_v16  ;;  %1597 = vst [vmem:[#allocation3 + $0x158] sm:$0xff] %v1533_v17  ;;  %v1535_v24 = vadd.f32 %v1354_v22, %v1029_v14  ;;  %v1537_v25 = vadd.f32 %v1467_v23, %v1031_v15  ;;  %v3490_v11 = vld [vmem:[%s4680_s27] ss:$16 sps:$4 sm:$0xff] (%p1618_p8)   ;;  %1919 = vmatprep.subr.bf16.mxu0 (%p1618_p8), %v3488_v10  ;;  %v3494_v15 = vld [vmem:[%s4680_s27 + $0x44] ss:$16 sps:$4 sm:$0xff] (%p1618_p8)  }
 0x320   : > { %1598 = vst [vmem:[#allocation3 + $0x160] sm:$0xff] %v1534_v20  ;;  %1600 = vst [vmem:[#allocation3 + $0x170] sm:$0xff] %v1536_v21  ;;  %1920 = vmatpush1.bf16.msra.mxu0 (%p1618_p8), %v3490_v11  ;;  %v3493_v14 = vld [vmem:[%s4680_s27 + $0x20] ss:$16 sps:$4 sm:$0xff] (%p1618_p8)   ;;  %v3499_v16 = vld [vmem:[%s4680_s27 + $0xc] ss:$16 sps:$4 sm:$0xff] (%p1618_p8)  }
 0x321   : > { %1599 = vst [vmem:[#allocation3 + $0x168] sm:$0xff] %v1535_v24  ;;  %1601 = vst [vmem:[#allocation3 + $0x178] sm:$0xff] %v1537_v25  ;;  %1921 = vmatprep.subr.bf16.mxu0 (%p1618_p8), %v3491_v13  ;;  %v3502_v17 = vld [vmem:[%s4680_s27 + $0x8] ss:$16 sps:$4 sm:$0xff] (%p1618_p8)   ;;  %v3496_v18 = vld [vmem:[%s4680_s27 + $0x40] ss:$16 sps:$4 sm:$0xff] (%p1618_p8)   ;;  %2032 = vmatprep.subr.bf16.mxu1 (%p1618_p8), %v3499_v16 }
 0x322   : > { %v3497_v19 = vld [vmem:[%s4680_s27 + $0x64] ss:$16 sps:$4 sm:$0xff] (%p1618_p8)   ;;  %2033 = vmatpush1.bf16.msra.mxu1 (%p1618_p8), %v3502_v17  ;;  %v3505_v20 = vld [vmem:[%s4680_s27 + $0x2c] ss:$16 sps:$4 sm:$0xff] (%p1618_p8)   ;;  %v3508_v21 = vld [vmem:[%s4680_s27 + $0x28] ss:$16 sps:$4 sm:$0xff] (%p1618_p8)  }
 0x323   : > { %v1358_v28 = vpop.f32.mrb[24].mxu1  ;;  %2034 = vmatprep.subr.bf16.mxu1 (%p1618_p8), %v3505_v20  ;;  %v3501_v22 = vld [vmem:[%s4680_s27 + $0x60] ss:$16 sps:$4 sm:$0xff] (%p1618_p8)   ;;  %v3503_v23 = vld [vmem:[%s4680_s27 + $0x84] ss:$16 sps:$4 sm:$0xff] (%p1618_p8)   ;;  %v1656_v10 = vld [vmem:[#allocation3 + $0x8] sm:$0xff] (%p1618_p8) }
 0x324   : > { %v1538_v30 = vadd.f32 %v1358_v28, %v1032_v26  ;;  %v1360_v31 = vpop.f32.mrb[25].mxu1  ;;  %1922 = vmatpush1.bf16.msra.mxu0 (%p1618_p8), %v3493_v14  ;;  %v3511_v24 = vld [vmem:[%s4680_s27 + $0x4c] ss:$16 sps:$4 sm:$0xff] (%p1618_p8)   ;;  %v3514_v25 = vld [vmem:[%s4680_s27 + $0x48] ss:$16 sps:$4 sm:$0xff] (%p1618_p8)   ;;  %v1659_v14 = vld [vmem:[#allocation3 + $0x20] sm:$0xff] (%p1618_p8) }
 0x325   : > { %v1539_v33 = vadd.f32 %v1360_v31, %v1033_v27  ;;  %v1362_v34 = vpop.f32.mrb[26].mxu1  ;;  %1923 = vmatprep.subr.bf16.mxu0 (%p1618_p8), %v3494_v15  ;;  %v3517_v26 = vld [vmem:[%s4680_s27 + $0x6c] ss:$16 sps:$4 sm:$0xff] (%p1618_p8)   ;;  %v3507_v27 = vld [vmem:[%s4680_s27 + $0x80] ss:$16 sps:$4 sm:$0xff] (%p1618_p8)  }
 0x326   : > { %1602 = vst [vmem:[#allocation3 + $0x180] sm:$0xff] %v1538_v30  ;;  %v1542_v35 = vadd.f32 %v1362_v34, %v1036_v29  ;;  %v1364_v36 = vpop.f32.mrb[27].mxu1  ;;  %2035 = vmatpush1.bf16.msra.mxu1 (%p1618_p8), %v3508_v21  ;;  %v3509_v28 = vld [vmem:[%s4680_s27 + $0xa4] ss:$16 sps:$4 sm:$0xff] (%p1618_p8)   ;;  %v3520_v29 = vld [vmem:[%s4680_s27 + $0x68] ss:$16 sps:$4 sm:$0xff] (%p1618_p8)  }
 0x327   : > { %1603 = vst [vmem:[#allocation3 + $0x188] sm:$0xff] %v1539_v33  ;;  %v1543_v37 = vadd.f32 %v1364_v36, %v1037_v32  ;;  %2036 = vmatprep.subr.bf16.mxu1 (%p1618_p8), %v3511_v24  ;;  %v3523_v30 = vld [vmem:[%s4680_s27 + $0x8c] ss:$16 sps:$4 sm:$0xff] (%p1618_p8)   ;;  %v3513_v31 = vld [vmem:[%s4680_s27 + $0xa0] ss:$16 sps:$4 sm:$0xff] (%p1618_p8)  }
 0x328   : > { %1606 = vst [vmem:[#allocation3 + $0x1a0] sm:$0xff] %v1542_v35  ;;  %1924 = vmatpush1.bf16.msra.mxu0 (%p1618_p8), %v3496_v18  ;;  %v3515_v32 = vld [vmem:[%s4680_s27 + $0xc4] ss:$16 sps:$4 sm:$0xff] (%p1618_p8)   ;;  %v3526_v33 = vld [vmem:[%s4680_s27 + $0x88] ss:$16 sps:$4 sm:$0xff] (%p1618_p8)  }
 0x329   : > { %1607 = vst [vmem:[#allocation3 + $0x1a8] sm:$0xff] %v1543_v37  ;;  %1925 = vmatprep.subr.bf16.mxu0 (%p1618_p8), %v3497_v19  ;;  %v3527_v34 = vld [vmem:[%s4680_s27 + $0xac] ss:$16 sps:$4 sm:$0xff] (%p1618_p8)   ;;  %v3519_v35 = vld [vmem:[%s4680_s27 + $0xc0] ss:$16 sps:$4 sm:$0xff] (%p1618_p8)  }
 0x32a   : > { %2037 = vmatpush1.bf16.msra.mxu1 (%p1618_p8), %v3514_v25  ;;  %v3521_v36 = vld [vmem:[%s4680_s27 + $0xe4] ss:$16 sps:$4 sm:$0xff] (%p1618_p8)   ;;  %v3529_v37 = vld [vmem:[%s4680_s27 + $0xa8] ss:$16 sps:$4 sm:$0xff] (%p1618_p8)  }
 0x32b   : > { %v1368_v40 = vpop.f32.mrb[28].mxu1  ;;  %2038 = vmatprep.subr.bf16.mxu1 (%p1618_p8), %v3517_v26  ;;  %v1660_v18 = vld [vmem:[#allocation3 + $0x28] sm:$0xff] (%p1618_p8)  ;;  %v1657_v24 = vld [vmem:[#allocation3 + $0x10] sm:$0xff] (%p1618_p8) }
 0x32c   : > { %v1546_v42 = vadd.f32 %v1368_v40, %v1040_v38  ;;  %v1370_v43 = vpop.f32.mrb[29].mxu1  ;;  %1926 = vmatpush1.bf16.msra.mxu0 (%p1618_p8), %v3501_v22  ;;  %v3530_v38 = vld [vmem:[%s4680_s27 + $0xcc] ss:$16 sps:$4 sm:$0xff] (%p1618_p8)   ;;  %v1623_v40 = vld [vmem:[%s4652_s2] sm:$0xff] (%p1618_p8) }
 0x32d   : > { %v1547_v45 = vadd.f32 %v1370_v43, %v1041_v39  ;;  %v1372_v46 = vpop.f32.mrb[30].mxu1  ;;  %1927 = vmatprep.subr.bf16.mxu0 (%p1618_p8), %v3503_v23  ;;  %v3525_v39 = vld [vmem:[%s4680_s27 + $0xe0] ss:$16 sps:$4 sm:$0xff] (%p1618_p8)   ;;  %v3533_v43 = vld [vmem:[%s4680_s27 + $0xec] ss:$16 sps:$4 sm:$0xff] (%p1618_p8)  }
 0x32e   : > { %1610 = vst [vmem:[#allocation3 + $0x1c0] sm:$0xff] %v1546_v42  ;;  %v1550_v47 = vadd.f32 %v1372_v46, %v1044_v41  ;;  %v1374_v48 = vpop.f32.mrb[31].mxu1  ;;  %2039 = vmatpush1.bf16.msra.mxu1 (%p1618_p8), %v3520_v29  ;;  %v1624_v41 = vld [vmem:[%s4652_s2 + $0x8] sm:$0xff] (%p1618_p8)  ;;  %v1625_v46 = vld [vmem:[%s4652_s2 + $0x10] sm:$0xff] (%p1618_p8) }
 0x32f   : > { %1611 = vst [vmem:[#allocation3 + $0x1c8] sm:$0xff] %v1547_v45  ;;  %v1551_v49 = vadd.f32 %v1374_v48, %v1045_v44  ;;  %2040 = vmatprep.subr.bf16.mxu1 (%p1618_p8), %v3523_v30  ;;  %v3532_v42 = vld [vmem:[%s4680_s27 + $0xc8] ss:$16 sps:$4 sm:$0xff] (%p1618_p8)   ;;  %v1719_v44 = vpack.c.bf16 (%p1618_p8), %v1624_v41, %v1623_v40 }
 0x330   : > { %1614 = vst [vmem:[#allocation3 + $0x1e0] sm:$0xff] %v1550_v47  ;;  %1928 = vmatpush1.bf16.msra.mxu0 (%p1618_p8), %v3507_v27  ;;  %v3535_v45 = vld [vmem:[%s4680_s27 + $0xe8] ss:$16 sps:$4 sm:$0xff] (%p1618_p8)  }
 0x331   : > { %1615 = vst [vmem:[#allocation3 + $0x1e8] sm:$0xff] %v1551_v49  ;;  %1929 = vmatprep.subr.bf16.mxu0 (%p1618_p8), %v3509_v28  ;;  %v1626_v47 = vld [vmem:[%s4652_s2 + $0x18] sm:$0xff] (%p1618_p8)  ;;  %v1627_v49 = vld [vmem:[%s4652_s2 + $0x20] sm:$0xff] (%p1618_p8)  ;;  %v1664_v41 = vld [vmem:[#allocation3 + $0x48] sm:$0xff] (%p1618_p8) }
 0x332   : > { %2041 = vmatpush1.bf16.msra.mxu1 (%p1618_p8), %v3526_v33  ;;  %v1720_v48 = vpack.c.bf16 (%p1618_p8), %v1626_v47, %v1625_v46  ;;  %v1658_v28 = vld [vmem:[#allocation3 + $0x18] sm:$0xff] (%p1618_p8)  ;;  %v1661_v33 = vld [vmem:[#allocation3 + $0x30] sm:$0xff] (%p1618_p8)  ;;  %v1667_v46 = vld [vmem:[#allocation3 + $0x60] sm:$0xff] (%p1618_p8) }
 0x333   : > { %v1471_v52 = vpop.f32.mrb[32].mxu1  ;;  %2042 = vmatprep.subr.bf16.mxu1 (%p1618_p8), %v3527_v34 }
 0x334   : > { %v1540_v54 = vadd.f32 %v1471_v52, %v1034_v50  ;;  %v1473_v55 = vpop.f32.mrb[33].mxu1  ;;  %1930 = vmatpush1.bf16.msra.mxu0 (%p1618_p8), %v3513_v31  ;;  %v1628_v50 = vld [vmem:[%s4652_s2 + $0x28] sm:$0xff] (%p1618_p8)  ;;  %v1629_v52 = vld [vmem:[%s4652_s2 + $0x30] sm:$0xff] (%p1618_p8) }
 0x335   : > { %v1541_v57 = vadd.f32 %v1473_v55, %v1035_v51  ;;  %v1475_v58 = vpop.f32.mrb[34].mxu1  ;;  %1931 = vmatprep.subr.bf16.mxu0 (%p1618_p8), %v3515_v32  ;;  %v1721_v51 = vpack.c.bf16 (%p1618_p8), %v1628_v50, %v1627_v49  ;;  %v1631_v55 = vld [vmem:[%s4652_s2 + $0x40] sm:$0xff] (%p1618_p8) }
 0x336   : > { %1604 = vst [vmem:[#allocation3 + $0x190] sm:$0xff] %v1540_v54  ;;  %v1544_v59 = vadd.f32 %v1475_v58, %v1038_v53  ;;  %v1477_v60 = vpop.f32.mrb[35].mxu1  ;;  %2043 = vmatpush1.bf16.msra.mxu1 (%p1618_p8), %v3529_v37  ;;  %v1630_v53 = vld [vmem:[%s4652_s2 + $0x38] sm:$0xff] (%p1618_p8)  ;;  %v1633_v58 = vld [vmem:[%s4652_s2 + $0x50] sm:$0xff] (%p1618_p8) }
 0x337   : > { %1605 = vst [vmem:[#allocation3 + $0x198] sm:$0xff] %v1541_v57  ;;  %v1545_v61 = vadd.f32 %v1477_v60, %v1039_v56  ;;  %2044 = vmatprep.subr.bf16.mxu1 (%p1618_p8), %v3530_v38  ;;  %v1722_v54 = vpack.c.bf16 (%p1618_p8), %v1630_v53, %v1629_v52  ;;  %v1632_v56 = vld [vmem:[%s4652_s2 + $0x48] sm:$0xff] (%p1618_p8) }
 0x338   : > { %1608 = vst [vmem:[#allocation3 + $0x1b0] sm:$0xff] %v1544_v59  ;;  %1932 = vmatpush1.bf16.msra.mxu0 (%p1618_p8), %v3519_v35  ;;  %v1723_v57 = vpack.c.bf16 (%p1618_p8), %v1632_v56, %v1631_v55  ;;  %v1634_v59 = vld [vmem:[%s4652_s2 + $0x58] sm:$0xff] (%p1618_p8)  ;;  %v1668_v52 = vld [vmem:[#allocation3 + $0x68] sm:$0xff] (%p1618_p8) }
 0x339   : > { %1609 = vst [vmem:[#allocation3 + $0x1b8] sm:$0xff] %v1545_v61  ;;  %1933 = vmatprep.subr.bf16.mxu0 (%p1618_p8), %v3521_v36  ;;  %v1724_v60 = vpack.c.bf16 (%p1618_p8), %v1634_v59, %v1633_v58  ;;  %v1635_v61 = vld [vmem:[%s4652_s2 + $0x60] sm:$0xff] (%p1618_p8) }
 0x33a   : > { %2045 = vmatpush1.bf16.msra.mxu1 (%p1618_p8), %v3532_v42  ;;  %v1663_v36 = vld [vmem:[#allocation3 + $0x40] sm:$0xff] (%p1618_p8) }
 0x33b   : > { %v1481_v0 = vpop.f32.mrb[36].mxu1  ;;  %1622 = sbr.rel (!%p1618_p8) target bundleno = 1198 (0x4ae), region = 84  ;;  %2046 = vmatprep.subr.bf16.mxu1 (%p1618_p8), %v3533_v43 }
 0x33c   : > { %v1548_v2 = vadd.f32 %v1481_v0, %v1042_v62  ;;  %v1483_v3 = vpop.f32.mrb[37].mxu1  ;;  %1934 = vmatpush1.bf16.msra.mxu0 (%p1618_p8), %v3525_v39  ;;  %v1636_v62 = vld [vmem:[%s4652_s2 + $0x68] sm:$0xff] (%p1618_p8)  ;;  %v1637_v0 = vld [vmem:[%s4652_s2 + $0x70] sm:$0xff] (%p1618_p8)  ;;  %v1662_v39 = vld [vmem:[#allocation3 + $0x38] sm:$0xff] (%p1618_p8) }
 0x33d   : > { %v1549_v5 = vadd.f32 %v1483_v3, %v1043_v63  ;;  %v1485_v6 = vpop.f32.mrb[38].mxu1  ;;  %v1725_v63 = vpack.c.bf16 (%p1618_p8), %v1636_v62, %v1635_v61  ;;  %v2211_v3 = vlaneseq (%p1618_p8) }
 0x33e   : > { %1612 = vst [vmem:[#allocation3 + $0x1d0] sm:$0xff] %v1548_v2  ;;  %v1552_v7 = vadd.f32 %v1485_v6, %v1046_v1  ;;  %v1487_v8 = vpop.f32.mrb[39].mxu1  ;;  %2047 = vmatpush1.bf16.msra.mxu1 (%p1618_p8), %v3535_v45  ;;  %v1638_v1 = vld [vmem:[%s4652_s2 + $0x78] sm:$0xff] (%p1618_p8)  ;;  %v2209_v6 = vld [vmem:[%s4673_s5] sm:$0xf] (%p1618_p8) }
 0x33f   : > { %1613 = vst [vmem:[#allocation3 + $0x1d8] sm:$0xff] %v1549_v5  ;;  %v1553_v9 = vadd.f32 %v1487_v8, %v1047_v4  ;;  %1952 = vmatmul.mubr.bf16.vlgmr.msra.gmra.mrb[0].mxu0 (%p1618_p8), %v1719_v44  ;;  %v1726_v2 = vpack.c.bf16 (%p1618_p8), %v1638_v1, %v1637_v0  ;;  %v2212_v4 = vshrl.u32 (%p1618_p8), %v2211_v3, 7  ;;  %v1655_v8 = vld [vmem:[#allocation3] sm:$0xff] (%p1618_p8) }
 0x340   : > { %1616 = vst [vmem:[#allocation3 + $0x1f0] sm:$0xff] %v1552_v7  ;;  %1961 = vmatprep.mubr.bf16.mxu0 (%p1618_p8), %v4162_v12 }
 0x341   : > { %1617 = vst [vmem:[#allocation3 + $0x1f8] sm:$0xff] %v1553_v9  ;;  %2065 = vmatmul.mubr.bf16.vlgmr.msra.gmra.mrb[0].mxu1 (%p1618_p8), %v1719_v44  ;;  %v2213_v5 = vsub.s32 (%p1618_p8), 0, %v2212_v4  ;;  %v2217_v7 = vsub.s32 (%p1618_p8), 1, %v2212_v4  ;;  %v2221_v15 = vsub.s32 (%p1618_p8), 2, %v2212_v4 }
 0x342   : > { %2074 = vmatprep.mubr.bf16.mxu1 %v4162_v12 }
 0x343   : > { %v4942_v9 = vrot.slane %v2209_v6, %v2213_v5  ;;  %v4944_v13 = vrot.slane %v2209_v6, %v2217_v7  ;;  %v4948_v27 = vrot.slane %v2209_v6, %v2221_v15 }
 0x347   : > { %1962 = vmatmul.mubr.bf16.gmra.mrb[4].mxu0 %v1720_v48 }
 0x348   : > { %1971 = vmatprep.mubr.bf16.mxu0 %v4162_v12 }
 0x349   : > { %2075 = vmatmul.mubr.bf16.gmra.mrb[4].mxu1 %v1720_v48 }
 0x34a   : > { %2084 = vmatprep.mubr.bf16.mxu1 %v4162_v12 }
 0x34f   : > { %1972 = vmatmul.mubr.bf16.gmra.mrb[8].mxu0 %v1721_v51 }
 0x350   : > { %1981 = vmatprep.mubr.bf16.mxu0 %v4162_v12 }
 0x351   : > { %2085 = vmatmul.mubr.bf16.gmra.mrb[8].mxu1 %v1721_v51 }
 0x352   : > { %2094 = vmatprep.mubr.bf16.mxu1 %v4162_v12 }
 0x357   : > { %1982 = vmatmul.mubr.bf16.gmra.mrb[12].mxu0 %v1722_v54 }
 0x358   : > { %1991 = vmatprep.mubr.bf16.mxu0 %v4162_v12 }
 0x359   : > { %2095 = vmatmul.mubr.bf16.gmra.mrb[12].mxu1 %v1722_v54 }
 0x35a   : > { %2104 = vmatprep.mubr.bf16.mxu1 %v4162_v12 }
 0x35f   : > { %1992 = vmatmul.mubr.bf16.gmra.mrb[16].mxu0 %v1723_v57 }
 0x360   : > { %2001 = vmatprep.mubr.bf16.mxu0 %v4162_v12 }
 0x361   : > { %2105 = vmatmul.mubr.bf16.gmra.mrb[16].mxu1 %v1723_v57 }
 0x362   : > { %2114 = vmatprep.mubr.bf16.mxu1 %v4162_v12 }
 0x367   : > { %2002 = vmatmul.mubr.bf16.gmra.mrb[20].mxu0 %v1724_v60 }
 0x368   : > { %2011 = vmatprep.mubr.bf16.mxu0 %v4162_v12 }
 0x369   : > { %2115 = vmatmul.mubr.bf16.gmra.mrb[20].mxu1 %v1724_v60 }
 0x36a   : > { %2124 = vmatprep.mubr.bf16.mxu1 %v4162_v12 }
 0x36f   : > { %2012 = vmatmul.mubr.bf16.gmra.mrb[24].mxu0 %v1725_v63 }
 0x370   : > { %2021 = vmatprep.mubr.bf16.mxu0 %v4162_v12 }
 0x371   : > { %2125 = vmatmul.mubr.bf16.gmra.mrb[24].mxu1 %v1725_v63 }
 0x372   : > { %2134 = vmatprep.mubr.bf16.mxu1 %v4162_v12  ;;  %v2225_v12 = vsub.s32 3, %v2212_v4 }
 0x374   : > { %v4951_v32 = vrot.slane %v2209_v6, %v2225_v12 }
 0x377   : > { %2022 = vmatmul.mubr.bf16.gmra.mrb[28].mxu0 %v1726_v2 }
 0x379   : > { %2135 = vmatmul.mubr.bf16.gmra.mrb[28].mxu1 %v1726_v2  ;;  %v1666_v2 = vld [vmem:[#allocation3 + $0x58] sm:$0xff] }
 0x412   : > { %v1953_v11 = vpop.f32.mrb[0].mxu0 }
 0x413   : > { %v2145_v16 = vadd.f32 %v1953_v11, %v1655_v8  ;;  %v1955_v17 = vpop.f32.mrb[1].mxu0  ;;  %v1671_v8 = vld [vmem:[#allocation3 + $0x80] sm:$0xff] }
 0x414   : > { %v2146_v19 = vadd.f32 %v1955_v17, %v1656_v10  ;;  %v1957_v20 = vpop.f32.mrb[2].mxu0  ;;  %v2066_v31 = vpop.f32.mrb[0].mxu1 }
 0x415   : > { %v2231_v21 = vadd.f32 %v4942_v9, %v2145_v16  ;;  %v2149_v22 = vadd.f32 %v1957_v20, %v1659_v14  ;;  %v1959_v23 = vpop.f32.mrb[3].mxu0  ;;  %v2147_v37 = vadd.f32 %v2066_v31, %v1657_v24  ;;  %v2068_v38 = vpop.f32.mrb[1].mxu1  ;;  %v1672_v14 = vld [vmem:[#allocation3 + $0x88] sm:$0xff] }
 0x416   : > { %v2232_v25 = vadd.f32 %v4944_v13, %v2146_v19  ;;  %v2150_v26 = vadd.f32 %v1959_v23, %v1660_v18  ;;  %v2148_v42 = vadd.f32 %v2068_v38, %v1658_v28  ;;  %v2070_v43 = vpop.f32.mrb[2].mxu1 }
 0x417   : > { %v3129_v29 = vmul.f32 -1.442695, %v2231_v21  ;;  %v2235_v30 = vadd.f32 %v4942_v9, %v2149_v22  ;;  %v2233_v47 = vadd.f32 %v4948_v27, %v2147_v37  ;;  %v2151_v48 = vadd.f32 %v2070_v43, %v1661_v33  ;;  %v2072_v49 = vpop.f32.mrb[3].mxu1  ;;  %v1675_v22 = vld [vmem:[#allocation3 + $0xa0] sm:$0xff] }
 0x418   : > { %v3130_v34 = vmul.f32 -1.442695, %v2232_v25  ;;  %v2236_v35 = vadd.f32 %v4944_v13, %v2150_v26  ;;  %v2234_v53 = vadd.f32 %v4951_v32, %v2148_v42  ;;  %v2152_v54 = vadd.f32 %v2072_v49, %v1662_v39 }
 0x419   : > { %3536 = vpow2.f32 %v3129_v29  ;;  %v3132_v40 = vmul.f32 -1.442695, %v2235_v30  ;;  %v3131_v57 = vmul.f32 -1.442695, %v2233_v47  ;;  %v2237_v58 = vadd.f32 %v4948_v27, %v2151_v48  ;;  %v1676_v29 = vld [vmem:[#allocation3 + $0xa8] sm:$0xff] }
 0x41a   : > { %3538 = vpow2.f32 %v3130_v34  ;;  %v3133_v44 = vmul.f32 -1.442695, %v2236_v35  ;;  %v1963_v45 = vpop.f32.mrb[4].mxu0  ;;  %v2238_v62 = vadd.f32 %v4951_v32, %v2152_v54  ;;  %v1665_v35 = vld [vmem:[#allocation3 + $0x50] sm:$0xff] }
 0x41b   : > { %3540 = vpow2.f32 %v3132_v40  ;;  %v2153_v50 = vadd.f32 %v1963_v45, %v1663_v36  ;;  %v1965_v51 = vpop.f32.mrb[5].mxu0  ;;  %v3134_v1 = vmul.f32 -1.442695, %v2237_v58  ;;  %v1669_v40 = vld [vmem:[#allocation3 + $0x70] sm:$0xff] }
 0x41c   : > { %3542 = vpow2.f32 %v3133_v44  ;;  %v2154_v55 = vadd.f32 %v1965_v51, %v1664_v41  ;;  %v1967_v56 = vpop.f32.mrb[6].mxu0  ;;  %v2076_v5 = vpop.f32.mrb[4].mxu1 }
 0x41d   : > { %v2239_v59 = vadd.f32 %v4942_v9, %v2153_v50  ;;  %v2157_v60 = vadd.f32 %v1967_v56, %v1667_v46  ;;  %v1969_v61 = vpop.f32.mrb[7].mxu0  ;;  %3544 = vtanh.f32 %v2234_v53  ;;  %v2078_v10 = vpop.f32.mrb[5].mxu1  ;;  %v2155_v48 = vadd.f32 %v2076_v5, %v1665_v35 }
 0x41e   : > { %v2240_v63 = vadd.f32 %v4944_v13, %v2154_v55  ;;  %v2158_v0 = vadd.f32 %v1969_v61, %v1668_v52  ;;  %3546 = vpow2.f32 %v3131_v57  ;;  %v2156_v15 = vadd.f32 %v2078_v10, %v1666_v2  ;;  %v2080_v16 = vpop.f32.mrb[6].mxu1 }
 0x41f   : > { %v3135_v3 = vmul.f32 -1.442695, %v2239_v59  ;;  %v2243_v4 = vadd.f32 %v4942_v9, %v2157_v60  ;;  %3548 = vtanh.f32 %v2238_v62  ;;  %v4962_v12 = vpop.f32.mrb[7].mxu1  ;;  %v2159_v52 = vadd.f32 %v2080_v16, %v1669_v40  ;;  %v1639_v16 = vld [vmem:[%s4658_s18] sm:$0xff] }
 0x420   : > { %v3136_v6 = vmul.f32 -1.442695, %v2240_v63  ;;  %v2244_v7 = vadd.f32 %v4944_v13, %v2158_v0  ;;  %3550 = vpow2.f32 %v3134_v1  ;;  %v2242_v23 = vadd.f32 %v4951_v32, %v2156_v15  ;;  %v1679_v1 = vld [vmem:[#allocation3 + $0xc0] sm:$0xff] }
 0x421   : > { %3552 = vpow2.f32 %v3135_v3  ;;  %v3138_v11 = vmul.f32 -1.442695, %v2243_v4  ;;  %v2241_v0 = vadd.f32 %v4948_v27, %v2155_v48  ;;  %v2245_v5 = vadd.f32 %v4948_v27, %v2159_v52 }
 0x422   : > { %3554 = vpow2.f32 %v3136_v6  ;;  %v3139_v17 = vmul.f32 -1.442695, %v2244_v7  ;;  %v1973_v18 = vpop.f32.mrb[8].mxu0  ;;  %v1680_v6 = vld [vmem:[#allocation3 + $0xc8] sm:$0xff] }
 0x423   : > { %v3537_v19 = vpop.eup %3536  ;;  %3556 = vpow2.f32 %v3138_v11  ;;  %v2161_v20 = vadd.f32 %v1973_v18, %v1671_v8  ;;  %v1975_v21 = vpop.f32.mrb[9].mxu0 }
 0x424   : > { %v3539_v24 = vpop.eup %3538  ;;  %v2439_v25 = vadd.f32 1.0, %v3537_v19  ;;  %3558 = vpow2.f32 %v3139_v17  ;;  %v2162_v26 = vadd.f32 %v1975_v21, %v1672_v14  ;;  %v1977_v28 = vpop.f32.mrb[10].mxu0  ;;  %v1683_v14 = vld [vmem:[#allocation3 + $0xe0] sm:$0xff]  ;;  %v1670_v19 = vld [vmem:[#allocation3 + $0x78] sm:$0xff] }
 0x425   : > { %v3541_v30 = vpop.eup %3540  ;;  %v2440_v31 = vadd.f32 1.0, %v3539_v24  ;;  %v2247_v33 = vadd.f32 %v4942_v9, %v2161_v20  ;;  %v1979_v34 = vpop.f32.mrb[11].mxu0  ;;  %3560 = vtanh.f32 %v2242_v23  ;;  %v2165_v39 = vadd.f32 %v1977_v28, %v1675_v22  ;;  %v1640_v28 = vld [vmem:[%s4658_s18 + $0x8] sm:$0xff] }
 0x426   : > { %v3543_v36 = vpop.eup %3542  ;;  %3562 = vrcp.f32 %v2439_v25  ;;  %v2442_v37 = vadd.f32 1.0, %v3541_v30  ;;  %v2248_v38 = vadd.f32 %v4944_v13, %v2162_v26  ;;  %v2166_v44 = vadd.f32 %v1979_v34, %v1676_v29  ;;  %v4967_v45 = vpop.f32.mrb[8].mxu1 }
 0x427   : > { %v3545_v41 = vpop.eup %3544  ;;  %3564 = vrcp.f32 %v2440_v31  ;;  %v2443_v42 = vadd.f32 1.0, %v3543_v36  ;;  %v3141_v43 = vmul.f32 -1.442695, %v2247_v33  ;;  %v4969_v49 = vpop.f32.mrb[9].mxu1  ;;  %v2251_v55 = vadd.f32 %v4942_v9, %v2165_v39 }
 0x428   : > { %v3547_v46 = vpop.eup %3546  ;;  %3566 = vrcp.f32 %v2442_v37  ;;  %v3142_v47 = vmul.f32 -1.442695, %v2248_v38  ;;  %v4971_v53 = vpop.f32.mrb[10].mxu1  ;;  %v2252_v60 = vadd.f32 %v4944_v13, %v2166_v44  ;;  %v3137_v23 = vmul.f32 -1.442695, %v2241_v0 }
 0x429   : > { %v3549_v50 = vpop.eup %3548  ;;  %3568 = vrcp.f32 %v2443_v42  ;;  %v2441_v51 = vadd.f32 1.0, %v3547_v46  ;;  %v4974_v57 = vpop.f32.mrb[11].mxu1  ;;  %v3144_v11 = vmul.f32 -1.442695, %v2251_v55  ;;  %v3140_v30 = vmul.f32 -1.442695, %v2245_v5 }
 0x42a   : > { %v3551_v54 = vpop.eup %3550  ;;  %3570 = vpow2.f32 %v3141_v43  ;;  %v1983_v56 = vpop.f32.mrb[12].mxu0  ;;  %v3145_v18 = vmul.f32 -1.442695, %v2252_v60  ;;  %v2160_v36 = vadd.f32 %v4962_v12, %v1670_v19  ;;  %v1684_v12 = vld [vmem:[#allocation3 + $0xe8] sm:$0xff] }
 0x42b   : > { %v3553_v58 = vpop.eup %3552  ;;  %3572 = vrcp.f32 %v2441_v51  ;;  %v2444_v59 = vadd.f32 1.0, %v3551_v54  ;;  %v1985_v61 = vpop.f32.mrb[13].mxu0  ;;  %v2169_v20 = vadd.f32 %v1983_v56, %v1679_v1  ;;  %v1673_v54 = vld [vmem:[#allocation3 + $0x90] sm:$0xff] }
 0x42c   : > { %v3555_v62 = vpop.eup %3554  ;;  %v2445_v63 = vadd.f32 1.0, %v3553_v58  ;;  %3574 = vpow2.f32 %v3142_v47  ;;  %v1987_v2 = vpop.f32.mrb[14].mxu0  ;;  %v2170_v24 = vadd.f32 %v1985_v61, %v1680_v6  ;;  %v1641_v61 = vld [vmem:[%s4658_s18 + $0x10] sm:$0xff]  ;;  %v2163_v5 = vadd.f32 %v4967_v45, %v1673_v54 }
 0x42d   : > { %v3557_v3 = vpop.eup %3556  ;;  %v2446_v4 = vadd.f32 1.0, %v3555_v62  ;;  %3576 = vrcp.f32 %v2444_v59  ;;  %v1989_v7 = vpop.f32.mrb[15].mxu0  ;;  %v2173_v31 = vadd.f32 %v1987_v2, %v1683_v14  ;;  %v2255_v42 = vadd.f32 %v4942_v9, %v2169_v20  ;;  %v1677_v1 = vld [vmem:[#allocation3 + $0xb0] sm:$0xff] }
 0x42e   : > { %v3559_v8 = vpop.eup %3558  ;;  %3578 = vrcp.f32 %v2445_v63  ;;  %v2448_v10 = vadd.f32 1.0, %v3557_v3  ;;  %v4982_v21 = vpop.f32.mrb[12].mxu1  ;;  %v2256_v47 = vadd.f32 %v4944_v13, %v2170_v24  ;;  %v2246_v59 = vadd.f32 %v4951_v32, %v2160_v36 }
 0x42f   : > { %v4979_v15 = vpop.eup %3560  ;;  %3580 = vrcp.f32 %v2446_v4  ;;  %v2449_v17 = vadd.f32 1.0, %v3559_v8  ;;  %v4984_v25 = vpop.f32.mrb[13].mxu1  ;;  %v3147_v63 = vmul.f32 -1.442695, %v2255_v42  ;;  %v2174_v0 = vadd.f32 %v1989_v7, %v1684_v12  ;;  %v1691_v12 = vld [vmem:[#allocation3 + $0x120] sm:$0xff] }
 0x430   : > { %v3563_v22 = vpop.eup %3562  ;;  %3582 = vrcp.f32 %v2448_v10  ;;  %v4987_v33 = vpop.f32.mrb[14].mxu1  ;;  %v3148_v4 = vmul.f32 -1.442695, %v2256_v47 }
 0x431   : > { %v3565_v26 = vpop.eup %3564  ;;  %3584 = vrcp.f32 %v2449_v17  ;;  %v2615_v29 = vmul.f32 %v3563_v22, %v3545_v41  ;;  %v4992_v38 = vpop.f32.mrb[15].mxu1  ;;  %v1674_v17 = vld [vmem:[#allocation3 + $0x98] sm:$0xff]  ;;  %v2260_v22 = vadd.f32 %v4944_v13, %v2174_v0 }
 0x432   : > { %v3567_v34 = vpop.eup %3566  ;;  %v2599_v35 = vmul.f32 %v3565_v26, %v1639_v16  ;;  %3586 = vpow2.f32 %v3144_v11  ;;  %v4990_v37 = vpop.f32.mrb[16].mxu0 }
 0x433   : > { %v3569_v39 = vpop.eup %3568  ;;  %v2616_v40 = vmul.f32 %v3567_v34, %v3549_v50  ;;  %3588 = vpow2.f32 %v3145_v18  ;;  %v4995_v43 = vpop.f32.mrb[17].mxu0  ;;  %v2259_v50 = vadd.f32 %v4942_v9, %v2173_v31  ;;  %v2167_v18 = vadd.f32 %v4971_v53, %v1677_v1  ;;  %v1687_v34 = vld [vmem:[#allocation3 + $0x100] sm:$0xff] }
 0x434   : > { %v3571_v41 = vpop.eup %3570  ;;  %v2600_v44 = vmul.f32 %v3569_v39, %v1640_v28  ;;  %v2631_v46 = vadd.f32 %v2615_v29, %v2599_v35  ;;  %3590 = vpow2.f32 %v3137_v23  ;;  %v4998_v48 = vpop.f32.mrb[18].mxu0  ;;  %v1678_v23 = vld [vmem:[#allocation3 + $0xb8] sm:$0xff]  ;;  %v2249_v28 = vadd.f32 %v4948_v27, %v2163_v5 }
 0x435   : > { %v5000_v51 = vpop.eup %3572  ;;  %v2451_v52 = vadd.f32 1.0, %v3571_v41  ;;  %3592 = vpow2.f32 %v3140_v30  ;;  %v5003_v55 = vpop.f32.mrb[19].mxu0  ;;  %v3150_v11 = vmul.f32 -1.442695, %v2259_v50  ;;  %v2164_v31 = vadd.f32 %v4969_v49, %v1674_v17  ;;  %v1688_v41 = vld [vmem:[#allocation3 + $0x108] sm:$0xff]  ;;  %v1642_v50 = vld [vmem:[%s4658_s18 + $0x18] sm:$0xff] }
 0x436   : > { %v3575_v56 = vpop.eup %3574  ;;  %3594 = vtanh.f32 %v2631_v46  ;;  %2695 = vst [vmem:[%s4684_s4] sm:$0xff] %v2631_v46  ;;  %v2632_v58 = vadd.f32 %v2616_v40, %v2600_v44  ;;  %v5010_v2 = vpop.f32.mrb[16].mxu1  ;;  %v2253_v40 = vadd.f32 %v4948_v27, %v2167_v18  ;;  %v2168_v42 = vadd.f32 %v4974_v57, %v1678_v23 }
 0x437   : > { %v5007_v60 = vpop.eup %3576  ;;  %3596 = vrcp.f32 %v2451_v52  ;;  %v2452_v62 = vadd.f32 1.0, %v3575_v56  ;;  %v5014_v6 = vpop.f32.mrb[17].mxu1  ;;  %v3151_v47 = vmul.f32 -1.442695, %v2260_v22  ;;  %v3143_v56 = vmul.f32 -1.442695, %v2249_v28 }
 0x438   : > { %v3579_v3 = vpop.eup %3578  ;;  %3598 = vtanh.f32 %v2632_v58  ;;  %2696 = vst [vmem:[%s4684_s4 + $0x8] sm:$0xff] %v2632_v58  ;;  %v5017_v14 = vpop.f32.mrb[18].mxu1  ;;  %v2177_v58 = vadd.f32 %v4990_v37, %v1687_v34  ;;  %v2178_v0 = vadd.f32 %v4995_v43, %v1688_v41  ;;  %v2254_v37 = vadd.f32 %v4951_v32, %v2168_v42  ;;  %v1685_v41 = vld [vmem:[#allocation3 + $0xf0] sm:$0xff] }
 0x439   : > { %v3581_v8 = vpop.eup %3580  ;;  %3600 = vrcp.f32 %v2452_v62  ;;  %v2617_v10 = vmul.f32 %v3579_v3, %v4979_v15  ;;  %v5024_v20 = vpop.f32.mrb[19].mxu1  ;;  %v2181_v5 = vadd.f32 %v4998_v48, %v1691_v12 }
 0x43a   : > { %v5019_v16 = vpop.eup %3582  ;;  %v2601_v7 = vmul.f32 %v3581_v8, %v1641_v61  ;;  %3602 = vtanh.f32 %v2246_v59  ;;  %v5022_v19 = vpop.f32.mrb[20].mxu0  ;;  %v1692_v59 = vld [vmem:[#allocation3 + $0x128] sm:$0xff]  ;;  %v1681_v8 = vld [vmem:[#allocation3 + $0xd0] sm:$0xff]  ;;  %v2263_v48 = vadd.f32 %v4942_v9, %v2177_v58 }
 0x43b   : > { %v3585_v45 = vpop.eup %3584  ;;  %3604 = vpow2.f32 %v3147_v63  ;;  %v5027_v15 = vpop.f32.mrb[21].mxu0  ;;  %v2250_v63 = vadd.f32 %v4951_v32, %v2164_v31  ;;  %v2182_v17 = vadd.f32 %v5003_v55, %v1692_v59 }
 0x43c   : > { %v3587_v24 = vpop.eup %3586  ;;  %v2633_v26 = vadd.f32 %v2617_v10, %v2601_v7  ;;  %3606 = vpow2.f32 %v3148_v4  ;;  %v5030_v29 = vpop.f32.mrb[22].mxu0  ;;  %v3146_v4 = vmul.f32 -1.442695, %v2253_v40  ;;  %v2602_v7 = vmul.f32 %v3585_v45, %v1642_v50 }
 0x43d   : > { %v3589_v53 = vpop.eup %3588  ;;  %v2454_v30 = vadd.f32 1.0, %v3587_v24  ;;  %3608 = vpow2.f32 %v3150_v11  ;;  %v5033_v35 = vpop.f32.mrb[23].mxu0  ;;  %v2264_v45 = vadd.f32 %v4944_v13, %v2178_v0 }
 0x43e   : > { %v3591_v36 = vpop.eup %3590  ;;  %v2455_v39 = vadd.f32 1.0, %v3589_v53  ;;  %3610 = vtanh.f32 %v2633_v26  ;;  %2697 = vst [vmem:[%s4684_s4 + $0x10] sm:$0xff] %v2633_v26  ;;  %v5038_v52 = vpop.f32.mrb[20].mxu1 }
 0x43f   : > { %v3593_v44 = vpop.eup %3592  ;;  %3612 = vrcp.f32 %v2454_v30  ;;  %v2447_v46 = vadd.f32 1.0, %v3591_v36  ;;  %v5042_v61 = vpop.f32.mrb[21].mxu1  ;;  %v2267_v30 = vadd.f32 %v4942_v9, %v2181_v5 }
 0x440   : > { %v3595_v49 = vpop.eup %3594  ;;  %3614 = vrcp.f32 %v2455_v39  ;;  %v2450_v54 = vadd.f32 1.0, %v3593_v44  ;;  %v5049_v1 = vpop.f32.mrb[22].mxu1  ;;  %v2268_v39 = vadd.f32 %v4944_v13, %v2182_v17 }
 0x441   : > { %v5044_v62 = vpop.eup %3596  ;;  %v2663_v57 = vmul.f32 %v3595_v49, %v5000_v51  ;;  %3616 = vrcp.f32 %v2447_v46  ;;  %v5055_v11 = vpop.f32.mrb[23].mxu1 }
 0x442   : > { %v3599_v3 = vpop.eup %3598  ;;  %3618 = vrcp.f32 %v2450_v54  ;;  %v5053_v10 = vpop.f32.mrb[24].mxu0  ;;  %v3156_v54 = vmul.f32 -1.442695, %v2267_v30  ;;  %v3157_v0 = vmul.f32 -1.442695, %v2268_v39 }
 0x443   : > { %v5057_v51 = vpop.eup %3600  ;;  %2679 = vst [vmem:[%s4682_s1] sm:$0xff] %v2663_v57  ;;  %v2664_v43 = vmul.f32 %v3599_v3, %v5007_v60  ;;  %3620 = vpow2.f32 %v3151_v47  ;;  %v5062_v18 = vpop.f32.mrb[25].mxu0  ;;  %v2171_v60 = vadd.f32 %v4982_v21, %v1681_v8  ;;  %v3153_v21 = vmul.f32 -1.442695, %v2263_v48 }
 0x444   : > { %v3603_v22 = vpop.eup %3602  ;;  %3622 = vpow2.f32 %v3143_v56  ;;  %v5065_v23 = vpop.f32.mrb[26].mxu0  ;;  %v3154_v47 = vmul.f32 -1.442695, %v2264_v45  ;;  %v1682_v56 = vld [vmem:[#allocation3 + $0xd8] sm:$0xff]  ;;  %v2175_v3 = vadd.f32 %v4987_v33, %v1685_v41 }
 0x445   : > { %v3605_v24 = vpop.eup %3604  ;;  %2680 = vst [vmem:[%s4682_s1 + $0x8] sm:$0xff] %v2664_v43  ;;  %v2618_v26 = vmul.f32 %v3603_v22, %v5019_v16  ;;  %3624 = vtanh.f32 %v2250_v63  ;;  %v5071_v28 = vpop.f32.mrb[27].mxu0  ;;  %v2257_v12 = vadd.f32 %v4948_v27, %v2171_v60  ;;  %v1643_v63 = vld [vmem:[%s4658_s18 + $0x20] sm:$0xff]  ;;  %v1644_v22 = vld [vmem:[%s4658_s18 + $0x28] sm:$0xff] }
 0x446   : > { %v3607_v55 = vpop.eup %3606  ;;  %v2457_v53 = vadd.f32 1.0, %v3605_v24  ;;  %3626 = vpow2.f32 %v3146_v4  ;;  %v5075_v16 = vpop.f32.mrb[24].mxu1  ;;  %v1686_v4 = vld [vmem:[#allocation3 + $0xf8] sm:$0xff]  ;;  %v2172_v24 = vadd.f32 %v4984_v25, %v1682_v56  ;;  %v2603_v33 = vmul.f32 %v5057_v51, %v1643_v63 }
 0x447   : > { %v3609_v31 = vpop.eup %3608  ;;  %v2634_v34 = vadd.f32 %v2618_v26, %v2602_v7  ;;  %v2458_v36 = vadd.f32 1.0, %v3607_v55  ;;  %3628 = vtanh.f32 %v2254_v37  ;;  %v5077_v44 = vpop.f32.mrb[25].mxu1  ;;  %v1695_v7 = vld [vmem:[#allocation3 + $0x140] sm:$0xff]  ;;  %v3149_v48 = vmul.f32 -1.442695, %v2257_v12 }
 0x448   : > { %v3611_v40 = vpop.eup %3610  ;;  %3630 = vrcp.f32 %v2457_v53  ;;  %v2460_v42 = vadd.f32 1.0, %v3609_v31  ;;  %v5081_v49 = vpop.f32.mrb[26].mxu1  ;;  %v2176_v55 = vadd.f32 %v4992_v38, %v1686_v4  ;;  %v1696_v53 = vld [vmem:[#allocation3 + $0x148] sm:$0xff]  ;;  %v2258_v41 = vadd.f32 %v4951_v32, %v2172_v24  ;;  %v1699_v12 = vld [vmem:[#allocation3 + $0x160] sm:$0xff]  ;;  %v1689_v4 = vld [vmem:[#allocation3 + $0x110] sm:$0xff] }
 0x449   : > { %v3613_v46 = vpop.eup %3612  ;;  %3632 = vtanh.f32 %v2634_v34  ;;  %2698 = vst [vmem:[%s4684_s4 + $0x18] sm:$0xff] %v2634_v34  ;;  %v5085_v59 = vpop.f32.mrb[27].mxu1  ;;  %v2261_v34 = vadd.f32 %v4948_v27, %v2175_v3 }
 0x44a   : > { %v3615_v50 = vpop.eup %3614  ;;  %3634 = vrcp.f32 %v2458_v36  ;;  %v5083_v58 = vpop.f32.mrb[28].mxu0  ;;  %v2185_v36 = vadd.f32 %v5022_v19, %v1695_v7  ;;  %v2262_v3 = vadd.f32 %v4951_v32, %v2176_v55  ;;  %v1693_v55 = vld [vmem:[#allocation3 + $0x130] sm:$0xff] }
 0x44b   : > { %v3617_v57 = vpop.eup %3616  ;;  %3636 = vrcp.f32 %v2460_v42  ;;  %v5089_v37 = vpop.f32.mrb[29].mxu0 }
 0x44c   : > { %v3619_v5 = vpop.eup %3618  ;;  %v2665_v8 = vmul.f32 %v3617_v57, %v3611_v40  ;;  %3638 = vpow2.f32 %v3153_v21  ;;  %v5091_v43 = vpop.f32.mrb[30].mxu0  ;;  %v2604_v40 = vmul.f32 %v3615_v50, %v1644_v22  ;;  %v1700_v57 = vld [vmem:[#allocation3 + $0x168] sm:$0xff] }
 0x44d   : > { %v3621_v17 = vpop.eup %3620  ;;  %3640 = vpow2.f32 %v3154_v47  ;;  %v5095_v26 = vpop.f32.mrb[31].mxu0  ;;  %v2186_v47 = vadd.f32 %v5027_v15, %v1696_v53  ;;  %v2271_v15 = vadd.f32 %v4942_v9, %v2185_v36  ;;  %v2190_v24 = vadd.f32 %v5033_v35, %v1700_v57 }
 0x44e   : > { %v3623_v45 = vpop.eup %3622  ;;  %2681 = vst [vmem:[%s4682_s1 + $0x10] sm:$0xff] %v2665_v8  ;;  %v2461_v60 = vadd.f32 1.0, %v3621_v17  ;;  %3642 = vpow2.f32 %v3156_v54  ;;  %v5102_v39 = vpop.f32.mrb[28].mxu1 }
 0x44f   : > { %v3625_v30 = vpop.eup %3624  ;;  %v2453_v31 = vadd.f32 1.0, %v3623_v45  ;;  %3644 = vpow2.f32 %v3157_v0  ;;  %v5105_v42 = vpop.f32.mrb[29].mxu1  ;;  %v3152_v0 = vmul.f32 -1.442695, %v2261_v34  ;;  %v1690_v34 = vld [vmem:[#allocation3 + $0x118] sm:$0xff] }
 0x450   : > { %v3627_v25 = vpop.eup %3626  ;;  %3646 = vrcp.f32 %v2461_v60  ;;  %v2619_v51 = vmul.f32 %v3625_v30, %v5044_v62  ;;  %v5109_v54 = vpop.f32.mrb[30].mxu1 }
 0x451   : > { %v3629_v21 = vpop.eup %3628  ;;  %3648 = vrcp.f32 %v2453_v31  ;;  %v2456_v38 = vadd.f32 1.0, %v3627_v25  ;;  %v5113_v62 = vpop.f32.mrb[31].mxu1 }
 0x452   : > { %v5111_v19 = vpop.eup %3630  ;;  %v2635_v56 = vadd.f32 %v2619_v51, %v2603_v33  ;;  %v2620_v50 = vmul.f32 %v3629_v21, %v3613_v46  ;;  %3650 = vpow2.f32 %v3149_v48  ;;  %v2189_v46 = vadd.f32 %v5030_v29, %v1699_v12  ;;  %v1645_v12 = vld [vmem:[%s4658_s18 + $0x30] sm:$0xff] }
 0x453   : > { %v3633_v63 = vpop.eup %3632  ;;  %3652 = vrcp.f32 %v2456_v38  ;;  %v2272_v48 = vadd.f32 %v4944_v13, %v2186_v47  ;;  %v2179_v33 = vadd.f32 %v5010_v2, %v1689_v4  ;;  %v3159_v29 = vmul.f32 -1.442695, %v2271_v15  ;;  %v1694_v15 = vld [vmem:[#allocation3 + $0x138] sm:$0xff] }
 0x454   : > { %v3635_v8 = vpop.eup %3634  ;;  %v2666_v7 = vmul.f32 %v3633_v63, %v3619_v5  ;;  %3654 = vtanh.f32 %v2635_v56  ;;  %2699 = vst [vmem:[%s4684_s4 + $0x20] sm:$0xff] %v2635_v56  ;;  %v2636_v17 = vadd.f32 %v2620_v50, %v2604_v40  ;;  %v2275_v31 = vadd.f32 %v4942_v9, %v2189_v46  ;;  %v1646_v46 = vld [vmem:[%s4658_s18 + $0x38] sm:$0xff] }
 0x455   : > { %v5119_v22 = vpop.eup %3636  ;;  %3656 = vtanh.f32 %v2258_v41  ;;  %v3160_v25 = vmul.f32 -1.442695, %v2272_v48  ;;  %v2276_v40 = vadd.f32 %v4944_v13, %v2190_v24  ;;  %v2265_v21 = vadd.f32 %v4948_v27, %v2179_v33  ;;  %v1703_v41 = vld [vmem:[#allocation3 + $0x180] sm:$0xff] }
 0x456   : > { %v3639_v45 = vpop.eup %3638  ;;  %2682 = vst [vmem:[%s4682_s1 + $0x18] sm:$0xff] %v2666_v7  ;;  %3658 = vtanh.f32 %v2636_v17  ;;  %2700 = vst [vmem:[%s4684_s4 + $0x28] sm:$0xff] %v2636_v17  ;;  %v2183_v38 = vadd.f32 %v5017_v14, %v1693_v55  ;;  %v2180_v56 = vadd.f32 %v5014_v6, %v1690_v34  ;;  %v3162_v57 = vmul.f32 -1.442695, %v2275_v31  ;;  %v1704_v7 = vld [vmem:[#allocation3 + $0x188] sm:$0xff]  ;;  %v1707_v55 = vld [vmem:[#allocation3 + $0x1a0] sm:$0xff] }
 0x457   : > { %v3641_v60 = vpop.eup %3640  ;;  %v2463_v5 = vadd.f32 1.0, %v3639_v45  ;;  %3660 = vpow2.f32 %v3152_v0  ;;  %v2193_v4 = vadd.f32 %v5053_v10, %v1703_v41  ;;  %v2605_v14 = vmul.f32 %v3635_v8, %v1645_v12 }
 0x458   : > { %v3643_v53 = vpop.eup %3642  ;;  %v2464_v30 = vadd.f32 1.0, %v3641_v60  ;;  %3662 = vtanh.f32 %v2262_v3  ;;  %v3163_v3 = vmul.f32 -1.442695, %v2276_v40  ;;  %v3155_v48 = vmul.f32 -1.442695, %v2265_v21 }
 0x459   : > { %v3645_v36 = vpop.eup %3644  ;;  %3664 = vrcp.f32 %v2463_v5  ;;  %v2466_v35 = vadd.f32 1.0, %v3643_v53  ;;  %v2269_v24 = vadd.f32 %v4948_v27, %v2183_v38  ;;  %v2266_v33 = vadd.f32 %v4951_v32, %v2180_v56 }
 0x45a   : > { %v3647_v51 = vpop.eup %3646  ;;  %3666 = vrcp.f32 %v2464_v30  ;;  %v2467_v2 = vadd.f32 1.0, %v3645_v36  ;;  %v2184_v10 = vadd.f32 %v5024_v20, %v1694_v15  ;;  %v2194_v8 = vadd.f32 %v5062_v18, %v1704_v7  ;;  %v1647_v7 = vld [vmem:[%s4658_s18 + $0x40] sm:$0xff] }
 0x45b   : > { %v3649_v47 = vpop.eup %3648  ;;  %3668 = vrcp.f32 %v2466_v35  ;;  %v2606_v30 = vmul.f32 %v3647_v51, %v1646_v46  ;;  %v2279_v31 = vadd.f32 %v4942_v9, %v2193_v4  ;;  %v2197_v18 = vadd.f32 %v5065_v23, %v1707_v55  ;;  %v1698_v46 = vld [vmem:[#allocation3 + $0x158] sm:$0xff] }
 0x45c   : > { %v3651_v50 = vpop.eup %3650  ;;  %3670 = vrcp.f32 %v2467_v2  ;;  %v2270_v2 = vadd.f32 %v4951_v32, %v2184_v10  ;;  %v2280_v21 = vadd.f32 %v4944_v13, %v2194_v8  ;;  %v1711_v10 = vld [vmem:[#allocation3 + $0x1c0] sm:$0xff] }
 0x45d   : > { %v3653_v63 = vpop.eup %3652  ;;  %v2459_v0 = vadd.f32 1.0, %v3651_v50  ;;  %3672 = vpow2.f32 %v3159_v29  ;;  %v2283_v50 = vadd.f32 %v4942_v9, %v2197_v18 }
 0x45e   : > { %v3655_v17 = vpop.eup %3654  ;;  %3674 = vpow2.f32 %v3160_v25  ;;  %v1708_v25 = vld [vmem:[#allocation3 + $0x1a8] sm:$0xff] }
 0x45f   : > { %v3657_v6 = vpop.eup %3656  ;;  %v2667_v45 = vmul.f32 %v3655_v17, %v3649_v47  ;;  %3676 = vrcp.f32 %v2459_v0  ;;  %v3165_v47 = vmul.f32 -1.442695, %v2279_v31  ;;  %v2198_v12 = vadd.f32 %v5071_v28, %v1708_v25  ;;  %v1648_v31 = vld [vmem:[%s4658_s18 + $0x48] sm:$0xff]  ;;  %v1702_v25 = vld [vmem:[#allocation3 + $0x178] sm:$0xff] }
 0x460   : > { %v3659_v60 = vpop.eup %3658  ;;  %v2621_v5 = vmul.f32 %v3657_v6, %v5111_v19  ;;  %3678 = vpow2.f32 %v3162_v57  ;;  %v3158_v19 = vmul.f32 -1.442695, %v2269_v24  ;;  %v1701_v57 = vld [vmem:[#allocation3 + $0x170] sm:$0xff] }
 0x461   : > { %v3661_v53 = vpop.eup %3660  ;;  %2683 = vst [vmem:[%s4682_s1 + $0x20] sm:$0xff] %v2667_v45  ;;  %v2668_v29 = vmul.f32 %v3659_v60, %v3653_v63  ;;  %3680 = vpow2.f32 %v3163_v3  ;;  %v3166_v3 = vmul.f32 -1.442695, %v2280_v21  ;;  %v2284_v28 = vadd.f32 %v4944_v13, %v2198_v12  ;;  %v1715_v21 = vld [vmem:[#allocation3 + $0x1e0] sm:$0xff] }
 0x462   : > { %v3663_v34 = vpop.eup %3662  ;;  %v2637_v36 = vadd.f32 %v2621_v5, %v2605_v14  ;;  %v2462_v35 = vadd.f32 1.0, %v3661_v53  ;;  %3682 = vpow2.f32 %v3155_v48  ;;  %v2191_v48 = vadd.f32 %v5049_v1, %v1701_v57 }
 0x463   : > { %v3665_v40 = vpop.eup %3664  ;;  %2684 = vst [vmem:[%s4682_s1 + $0x28] sm:$0xff] %v2668_v29  ;;  %v2622_v20 = vmul.f32 %v3663_v34, %v5119_v22  ;;  %3684 = vtanh.f32 %v2266_v33  ;;  %v1697_v22 = vld [vmem:[#allocation3 + $0x150] sm:$0xff]  ;;  %v3168_v45 = vmul.f32 -1.442695, %v2283_v50  ;;  %v3169_v53 = vmul.f32 -1.442695, %v2284_v28 }
 0x464   : > { %v3667_v51 = vpop.eup %3666  ;;  %3686 = vtanh.f32 %v2637_v36  ;;  %2701 = vst [vmem:[%s4684_s4 + $0x30] sm:$0xff] %v2637_v36  ;;  %v2187_v15 = vadd.f32 %v5038_v52, %v1697_v22  ;;  %v1712_v29 = vld [vmem:[#allocation3 + $0x1c8] sm:$0xff]  ;;  %v2277_v36 = vadd.f32 %v4948_v27, %v2191_v48  ;;  %v2192_v57 = vadd.f32 %v5055_v11, %v1702_v25 }
 0x465   : > { %v5147_v38 = vpop.eup %3668  ;;  %3688 = vrcp.f32 %v2462_v35  ;;  %v2638_v41 = vadd.f32 %v2622_v20, %v2606_v30  ;;  %v2607_v60 = vmul.f32 %v3667_v51, %v1647_v7  ;;  %v2188_v30 = vadd.f32 %v5042_v61, %v1698_v46  ;;  %v1716_v22 = vld [vmem:[#allocation3 + $0x1e8] sm:$0xff] }
 0x466   : > { %v3671_v56 = vpop.eup %3670  ;;  %3690 = vpow2.f32 %v3158_v19  ;;  %v2273_v52 = vadd.f32 %v4948_v27, %v2187_v15  ;;  %v2201_v20 = vadd.f32 %v5083_v58, %v1711_v10  ;;  %v2202_v61 = vadd.f32 %v5089_v37, %v1712_v29 }
 0x467   : > { %v3673_v23 = vpop.eup %3672  ;;  %3692 = vtanh.f32 %v2638_v41  ;;  %2702 = vst [vmem:[%s4684_s4 + $0x38] sm:$0xff] %v2638_v41  ;;  %v2274_v12 = vadd.f32 %v4951_v32, %v2188_v30  ;;  %v3164_v58 = vmul.f32 -1.442695, %v2277_v36  ;;  %v1649_v30 = vld [vmem:[%s4658_s18 + $0x50] sm:$0xff] }
 0x468   : > { %v3675_v63 = vpop.eup %3674  ;;  %v2469_v0 = vadd.f32 1.0, %v3673_v23  ;;  %3694 = vtanh.f32 %v2270_v2  ;;  %v3161_v2 = vmul.f32 -1.442695, %v2273_v52  ;;  %v2288_v7 = vadd.f32 %v4944_v13, %v2202_v61  ;;  %v1713_v36 = vld [vmem:[#allocation3 + $0x1d0] sm:$0xff] }
 0x469   : > { %v3677_v4 = vpop.eup %3676  ;;  %v2470_v17 = vadd.f32 1.0, %v3675_v63  ;;  %3696 = vpow2.f32 %v3165_v47  ;;  %v2608_v47 = vmul.f32 %v3671_v56, %v1648_v31  ;;  %v2287_v56 = vadd.f32 %v4942_v9, %v2201_v20 }
 0x46a   : > { %v3679_v14 = vpop.eup %3678  ;;  %3698 = vrcp.f32 %v2469_v0  ;;  %v2205_v0 = vadd.f32 %v5091_v43, %v1715_v21  ;;  %v2203_v21 = vadd.f32 %v5102_v39, %v1713_v36 }
 0x46b   : > { %v3681_v24 = vpop.eup %3680  ;;  %3700 = vrcp.f32 %v2470_v17  ;;  %v2472_v6 = vadd.f32 1.0, %v3679_v14  ;;  %v2206_v17 = vadd.f32 %v5095_v26, %v1716_v22  ;;  %v1717_v22 = vld [vmem:[#allocation3 + $0x1f0] sm:$0xff] }
 0x46c   : > { %v3683_v33 = vpop.eup %3682  ;;  %v2473_v5 = vadd.f32 1.0, %v3681_v24  ;;  %3702 = vpow2.f32 %v3166_v3  ;;  %v1705_v3 = vld [vmem:[#allocation3 + $0x190] sm:$0xff]  ;;  %v3171_v24 = vmul.f32 -1.442695, %v2287_v56  ;;  %v2289_v39 = vadd.f32 %v4948_v27, %v2203_v21 }
 0x46d   : > { %v3685_v8 = vpop.eup %3684  ;;  %3704 = vrcp.f32 %v2472_v6  ;;  %v2465_v55 = vadd.f32 1.0, %v3683_v33  ;;  %v2195_v46 = vadd.f32 %v5075_v16, %v1705_v3  ;;  %v2291_v6 = vadd.f32 %v4942_v9, %v2205_v0  ;;  %v1714_v0 = vld [vmem:[#allocation3 + $0x1d8] sm:$0xff] }
 0x46e   : > { %v3687_v1 = vpop.eup %3686  ;;  %3706 = vrcp.f32 %v2473_v5  ;;  %v2623_v34 = vmul.f32 %v3685_v8, %v3665_v40  ;;  %v3172_v33 = vmul.f32 -1.442695, %v2288_v7  ;;  %v1706_v5 = vld [vmem:[#allocation3 + $0x198] sm:$0xff] }
 0x46f   : > { %v3689_v35 = vpop.eup %3688  ;;  %v2669_v19 = vmul.f32 %v3687_v1, %v3677_v4  ;;  %3708 = vrcp.f32 %v2465_v55  ;;  %v2281_v16 = vadd.f32 %v4948_v27, %v2195_v46  ;;  %v1710_v55 = vld [vmem:[#allocation3 + $0x1b8] sm:$0xff]  ;;  %v3174_v9 = vmul.f32 -1.442695, %v2291_v6 }
 0x470   : > { %v3691_v18 = vpop.eup %3690  ;;  %v2639_v51 = vadd.f32 %v2623_v34, %v2607_v60  ;;  %3710 = vpow2.f32 %v3168_v45  ;;  %v1709_v45 = vld [vmem:[#allocation3 + $0x1b0] sm:$0xff]  ;;  %v2292_v60 = vadd.f32 %v4944_v13, %v2206_v17  ;;  %v2196_v1 = vadd.f32 %v5077_v44, %v1706_v5 }
 0x471   : > { %v3693_v41 = vpop.eup %3692  ;;  %2685 = vst [vmem:[%s4682_s1 + $0x30] sm:$0xff] %v2669_v19  ;;  %v2468_v40 = vadd.f32 1.0, %v3691_v18  ;;  %3712 = vpow2.f32 %v3169_v53  ;;  %v2199_v8 = vadd.f32 %v5081_v49, %v1709_v45  ;;  %v2200_v49 = vadd.f32 %v5085_v59, %v1710_v55  ;;  %v1652_v55 = vld [vmem:[%s4658_s18 + $0x68] sm:$0xff] }
 0x472   : > { %v3695_v23 = vpop.eup %3694  ;;  %v2670_v50 = vmul.f32 %v3693_v41, %v3689_v35  ;;  %3714 = vtanh.f32 %v2639_v51  ;;  %2703 = vst [vmem:[%s4684_s4 + $0x40] sm:$0xff] %v2639_v51  ;;  %v3175_v34 = vmul.f32 -1.442695, %v2292_v60  ;;  %v3167_v18 = vmul.f32 -1.442695, %v2281_v16 }
 0x473   : > { %v3697_v63 = vpop.eup %3696  ;;  %3716 = vrcp.f32 %v2468_v40  ;;  %v2624_v37 = vmul.f32 %v3695_v23, %v5147_v38  ;;  %v2278_v38 = vadd.f32 %v4951_v32, %v2192_v57  ;;  %v2285_v51 = vadd.f32 %v4948_v27, %v2199_v8 }
 0x474   : > { %v3699_v15 = vpop.eup %3698  ;;  %2686 = vst [vmem:[%s4682_s1 + $0x38] sm:$0xff] %v2670_v50  ;;  %v2475_v4 = vadd.f32 1.0, %v3697_v63  ;;  %3718 = vpow2.f32 %v3161_v2  ;;  %v2282_v61 = vadd.f32 %v4951_v32, %v2196_v1  ;;  %v2286_v59 = vadd.f32 %v4951_v32, %v2200_v49 }
 0x475   : > { %v3701_v28 = vpop.eup %3700  ;;  %v2640_v11 = vadd.f32 %v2624_v37, %v2608_v47  ;;  %3720 = vtanh.f32 %v2274_v12  ;;  %v1650_v47 = vld [vmem:[%s4658_s18 + $0x58] sm:$0xff]  ;;  %v3170_v57 = vmul.f32 -1.442695, %v2285_v51 }
 0x476   : > { %v3703_v14 = vpop.eup %3702  ;;  %3722 = vrcp.f32 %v2475_v4  ;;  %v2609_v20 = vmul.f32 %v3701_v28, %v1649_v30 }
 0x477   : > { %v5174_v43 = vpop.eup %3704  ;;  %3724 = vtanh.f32 %v2640_v11  ;;  %2704 = vst [vmem:[%s4684_s4 + $0x48] sm:$0xff] %v2640_v11  ;;  %v2476_v48 = vadd.f32 1.0, %v3703_v14  ;;  %v2204_v11 = vadd.f32 %v5105_v42, %v1714_v0  ;;  %v1718_v14 = vld [vmem:[#allocation3 + $0x1f8] sm:$0xff] }
 0x478   : > { %v3707_v26 = vpop.eup %3706  ;;  %3726 = vpow2.f32 %v3164_v58 }
 0x479   : > { %v3709_v52 = vpop.eup %3708  ;;  %3728 = vrcp.f32 %v2476_v48  ;;  %v2610_v37 = vmul.f32 %v3707_v26, %v1650_v47  ;;  %v1651_v26 = vld [vmem:[%s4658_s18 + $0x60] sm:$0xff]  ;;  %v2290_v60 = vadd.f32 %v4951_v32, %v2204_v11 }
 0x47a   : > { %v3711_v10 = vpop.eup %3710  ;;  %3730 = vtanh.f32 %v2278_v38 }
 0x47b   : > { %v3713_v53 = vpop.eup %3712  ;;  %v2478_v29 = vadd.f32 1.0, %v3711_v10  ;;  %3732 = vpow2.f32 %v3171_v24  ;;  %v3173_v24 = vmul.f32 -1.442695, %v2289_v39 }
 0x47c   : > { %v3715_v31 = vpop.eup %3714  ;;  %v2479_v13 = vadd.f32 1.0, %v3713_v53  ;;  %3734 = vpow2.f32 %v3172_v33 }
 0x47d   : > { %v3717_v35 = vpop.eup %3716  ;;  %v2671_v19 = vmul.f32 %v3715_v31, %v3709_v52  ;;  %3736 = vrcp.f32 %v2478_v29 }
 0x47e   : > { %v3719_v25 = vpop.eup %3718  ;;  %3738 = vrcp.f32 %v2479_v13 }
 0x47f   : > { %v3721_v2 = vpop.eup %3720  ;;  %2687 = vst [vmem:[%s4682_s1 + $0x40] sm:$0xff] %v2671_v19  ;;  %v2471_v44 = vadd.f32 1.0, %v3719_v25  ;;  %3740 = vpow2.f32 %v3174_v9 }
 0x480   : > { %v3723_v41 = vpop.eup %3722  ;;  %v2625_v40 = vmul.f32 %v3721_v2, %v3699_v15  ;;  %3742 = vpow2.f32 %v3175_v34  ;;  %v2207_v15 = vadd.f32 %v5109_v54, %v1717_v22 }
 0x481   : > { %v3725_v12 = vpop.eup %3724  ;;  %3744 = vrcp.f32 %v2471_v44 }
 0x482   : > { %v3727_v23 = vpop.eup %3726  ;;  %v2672_v50 = vmul.f32 %v3725_v12, %v3717_v35  ;;  %v2641_v58 = vadd.f32 %v2625_v40, %v2609_v20  ;;  %3746 = vpow2.f32 %v3167_v18  ;;  %v2293_v54 = vadd.f32 %v4948_v27, %v2207_v15  ;;  %v1653_v18 = vld [vmem:[%s4658_s18 + $0x70] sm:$0xff] }
 0x483   : > { %v3729_v63 = vpop.eup %3728  ;;  %v2474_v56 = vadd.f32 1.0, %v3727_v23  ;;  %3748 = vtanh.f32 %v2282_v61 }
 0x484   : > { %v3731_v3 = vpop.eup %3730  ;;  %2688 = vst [vmem:[%s4682_s1 + $0x48] sm:$0xff] %v2672_v50  ;;  %3750 = vtanh.f32 %v2641_v58  ;;  %2705 = vst [vmem:[%s4684_s4 + $0x50] sm:$0xff] %v2641_v58  ;;  %v2611_v16 = vmul.f32 %v3729_v63, %v1651_v26  ;;  %v3176_v8 = vmul.f32 -1.442695, %v2293_v54 }
 0x485   : > { %v3733_v4 = vpop.eup %3732  ;;  %3752 = vrcp.f32 %v2474_v56  ;;  %v2626_v7 = vmul.f32 %v3731_v3, %v5174_v43  ;;  %v2208_v43 = vadd.f32 %v5113_v62, %v1718_v14 }
 0x486   : > { %v3735_v17 = vpop.eup %3734  ;;  %v2481_v28 = vadd.f32 1.0, %v3733_v4  ;;  %3754 = vpow2.f32 %v3170_v57 }
 0x487   : > { %v3737_v38 = vpop.eup %3736  ;;  %v2642_v46 = vadd.f32 %v2626_v7, %v2610_v37  ;;  %v2482_v48 = vadd.f32 1.0, %v3735_v17  ;;  %3756 = vtanh.f32 %v2286_v59  ;;  %v2294_v30 = vadd.f32 %v4951_v32, %v2208_v43 }
 0x488   : > { %v3739_v6 = vpop.eup %3738  ;;  %3758 = vrcp.f32 %v2481_v28 }
 0x489   : > { %v3741_v45 = vpop.eup %3740  ;;  %3760 = vtanh.f32 %v2642_v46  ;;  %2706 = vst [vmem:[%s4684_s4 + $0x58] sm:$0xff] %v2642_v46  ;;  %v2612_v13 = vmul.f32 %v3739_v6, %v1652_v55 }
 0x48a   : > { %v3743_v33 = vpop.eup %3742  ;;  %3762 = vrcp.f32 %v2482_v48  ;;  %v2484_v42 = vadd.f32 1.0, %v3741_v45 }
 0x48b   : > { %v3745_v5 = vpop.eup %3744  ;;  %v2485_v52 = vadd.f32 1.0, %v3743_v33  ;;  %3764 = vpow2.f32 %v3173_v24 }
 0x48c   : > { %v3747_v10 = vpop.eup %3746  ;;  %3766 = vrcp.f32 %v2484_v42 }
 0x48d   : > { %v3749_v27 = vpop.eup %3748  ;;  %3768 = vrcp.f32 %v2485_v52  ;;  %v2477_v53 = vadd.f32 1.0, %v3747_v10 }
 0x48e   : > { %v3751_v62 = vpop.eup %3750  ;;  %v2627_v29 = vmul.f32 %v3749_v27, %v3723_v41  ;;  %3770 = vtanh.f32 %v2290_v60  ;;  %v1654_v41 = vld [vmem:[%s4658_s18 + $0x78] sm:$0xff] }
 0x48f   : > { %v3753_v9 = vpop.eup %3752  ;;  %v2673_v1 = vmul.f32 %v3751_v62, %v3745_v5  ;;  %3772 = vrcp.f32 %v2477_v53 }
 0x490   : > { %v3755_v31 = vpop.eup %3754  ;;  %v2643_v34 = vadd.f32 %v2627_v29, %v2611_v16  ;;  %3774 = vpow2.f32 %v3176_v8 }
 0x491   : > { %v3757_v36 = vpop.eup %3756  ;;  %2689 = vst [vmem:[%s4682_s1 + $0x50] sm:$0xff] %v2673_v1  ;;  %v2480_v35 = vadd.f32 1.0, %v3755_v31  ;;  %3776 = vtanh.f32 %v2294_v30 }
 0x492   : > { %v3759_v19 = vpop.eup %3758  ;;  %3778 = vtanh.f32 %v2643_v34  ;;  %2707 = vst [vmem:[%s4684_s4 + $0x60] sm:$0xff] %v2643_v34  ;;  %v2628_v32 = vmul.f32 %v3757_v36, %v3737_v38 }
 0x493   : > { %v3761_v49 = vpop.eup %3760  ;;  %3780 = vrcp.f32 %v2480_v35 }
 0x494   : > { %v3763_v25 = vpop.eup %3762  ;;  %v2674_v20 = vmul.f32 %v3761_v49, %v3753_v9  ;;  %v2644_v51 = vadd.f32 %v2628_v32, %v2612_v13 }
 0x495   : > { %v3765_v2 = vpop.eup %3764  ;;  %v2613_v21 = vmul.f32 %v3763_v25, %v1653_v18 }
 0x496   : > { %v3767_v44 = vpop.eup %3766  ;;  %2690 = vst [vmem:[%s4682_s1 + $0x58] sm:$0xff] %v2674_v20  ;;  %3782 = vtanh.f32 %v2644_v51  ;;  %2708 = vst [vmem:[%s4684_s4 + $0x68] sm:$0xff] %v2644_v51  ;;  %v2483_v47 = vadd.f32 1.0, %v3765_v2 }
 0x497   : > { %v3769_v61 = vpop.eup %3768 }
 0x498   : > { %v3771_v40 = vpop.eup %3770  ;;  %v2614_v23 = vmul.f32 %v3769_v61, %v1654_v41  ;;  %3784 = vrcp.f32 %v2483_v47 }
 0x499   : > { %v3773_v12 = vpop.eup %3772  ;;  %v2629_v59 = vmul.f32 %v3771_v40, %v3759_v19 }
 0x49a   : > { %v3775_v22 = vpop.eup %3774 }
 0x49b   : > { %v3777_v50 = vpop.eup %3776  ;;  %v2645_v58 = vadd.f32 %v2629_v59, %v2613_v21  ;;  %v2486_v57 = vadd.f32 1.0, %v3775_v22 }
 0x49c   : > { %v3779_v63 = vpop.eup %3778  ;;  %v2630_v37 = vmul.f32 %v3777_v50, %v3767_v44 }
 0x49d   : > { %v2675_v56 = vmul.f32 %v3779_v63, %v3773_v12  ;;  %3786 = vtanh.f32 %v2645_v58  ;;  %2709 = vst [vmem:[%s4684_s4 + $0x70] sm:$0xff] %v2645_v58  ;;  %v3781_v0 = vpop.eup %3780 }
 0x49e   : > { %v2646_v39 = vadd.f32 %v2630_v37, %v2614_v23  ;;  %3788 = vrcp.f32 %v2486_v57 }
 0x49f   : > { %2691 = vst [vmem:[%s4682_s1 + $0x60] sm:$0xff] %v2675_v56 }
 0x4a0   : > { %v3783_v3 = vpop.eup %3782  ;;  %3790 = vtanh.f32 %v2646_v39  ;;  %2710 = vst [vmem:[%s4684_s4 + $0x78] sm:$0xff] %v2646_v39 }
 0x4a1   : > { %v2676_v15 = vmul.f32 %v3783_v3, %v3781_v0 }
 0x4a2   : > { %v3785_v4 = vpop.eup %3784 }
 0x4a3   : > { %2692 = vst [vmem:[%s4682_s1 + $0x68] sm:$0xff] %v2676_v15 }
 0x4a7   : > { %v3787_v7 = vpop.eup %3786 }
 0x4a8   : > { %v2677_v17 = vmul.f32 %v3787_v7, %v3785_v4  ;;  %v3789_v28 = vpop.eup %3788 }
 0x4aa   : > { %v3791_v11 = vpop.eup %3790  ;;  %2693 = vst [vmem:[%s4682_s1 + $0x70] sm:$0xff] %v2677_v17 }
 0x4ab   : > { %v2678_v14 = vmul.f32 %v3791_v11, %v3789_v28 }
 0x4ad   : > { %2694 = vst [vmem:[%s4682_s1 + $0x78] sm:$0xff] %v2678_v14 }
 0x4ae PF: > { %s5460_s7 = sld [smem:[#allocation33_spill]]  ;;  %s5461_s0 = sld [smem:[#allocation40_spill]] }
 0x4af   : > { %s5462_s17 = sld [smem:[#allocation49_spill]]  ;;  %s2732_s10 = sshll.u32 %s4682_s1, 4  ;;  %s5224_s10 = int_to_ptr.vmem [resolvable:$true] %s2732_s10 }
 0x4b0   : > { %s2712_s15 = scalar_lea.sflag [#allocation8], %s4649_s29  ;;  %s3954_s12 = scalar_lea.vmem %s5224_s10, 2048 }
 0x4b1   : > { %p3955_p9 = scmp.ne.s32.totalorder %s5224_s10, %s3954_s12  ;;  %s4163_s8 = smov [#allocation15]  }
 0x4b2   : > { %s3958_s14 = sshll.u32 %s4163_s8, 4  ;;  %s3959_s14 = int_to_ptr.vmem [resolvable:$false] %s3958_s14 }
 0x4b3   : > { %s3960_s5 = scalar_lea.vmem %s3959_s14, 4096  ;;  %p3961_p12 = scmp.lt.s32.totalorder %s5224_s10, %s3959_s14 }
 0x4b4   : > { %s3191_s2 = sshll.u32 %s5460_s7, 11  ;;  %p5464_p7 = scmp.ne.s32.totalorder %s5461_s0, 0 }
 0x4b5   : > { %s5463_s30 = smov %s5462_s17  ;;  %s5221_s19 = scalar_lea.hbm %s5462_s17, %s3191_s2 }
 0x4b6   : > { %p3956_p6 = pnand %p3955_p9, %p5464_p7  ;;  %p3962_p3 = scmp.lt.s32.totalorder %s3960_s5, %s3954_s12 }
 0x4b8   : > { %p3957_p1 = pneg %p3956_p6  ;;  %p3963_p13 = por %p3962_p3, %p3961_p12 }
 0x4ba   : > { %p3964_p5 = pnand %p3963_p13, %p3957_p1 }
 0x4bc   : > { %3967 = shalt.err (!%p3964_p5)
}
 0x4bd   : > { %s3968_s1 = scalar_lea.hbm %s5221_s19, 2048  ;;  %s3972_s28 = scalar_lea.hbm %s5463_s30, 4096 }
 0x4be   : > { %p3969_p10 = scmp.ne.s32.totalorder %s5221_s19, %s3968_s1  ;;  %p3973_p0 = scmp.lt.u32.totalorder %s5221_s19, %s5463_s30 }
 0x4bf   : > { %p3974_p2 = scmp.lt.u32.totalorder %s3972_s28, %s3968_s1  ;;  %p3976_p9 = scmp.lt.u32.totalorder %s3968_s1, %s5221_s19 }
 0x4c0   : > { %p3970_p4 = pnand %p3969_p10, %p5464_p7 }
 0x4c1   : > { %p3975_p8 = por %p3974_p2, %p3973_p0 }
 0x4c2   : > { %p3971_p11 = pneg %p3970_p4 }
 0x4c3   : > { %p3977_p6 = por %p3976_p9, %p3975_p8 }
 0x4c5   : > { %p3978_p1 = pnand %p3977_p6, %p3971_p11 }
 0x4c7   : > { %3981 = shalt.err (!%p3978_p1)
}
 0x4c8   : > { %s4164_s3 = smov 128   ;;  %s4165_s27 = smov 8  }
 0x4c9   : > { %3269 = dma.vmem_to_hbm [thread:$0]  (%p5464_p7), %s5224_s10, 2048, %s5221_s19, %s2712_s15, %s4164_s3, %s4164_s3, %s4165_s27  }
 0x4ca   : > { %s5465_s9 = sld [smem:[#allocation50_spill]]  ;;  %s2750_s12 = sshll.u32 %s4684_s4, 4  ;;  %s5261_s12 = int_to_ptr.vmem [resolvable:$true] %s2750_s12 }
 0x4cb   : > { %s2717_s8 = scalar_lea.sflag [#allocation17], %s4649_s29  ;;  %s3982_s14 = scalar_lea.vmem %s5261_s12, 2048 }
 0x4cc   : > { %p3983_p12 = scmp.ne.s32.totalorder %s5261_s12, %s3982_s14  ;;  %s4166_s5 = smov [#allocation16]  }
 0x4cd   : > { %s3986_s19 = sshll.u32 %s4166_s5, 4  ;;  %s3987_s19 = int_to_ptr.vmem [resolvable:$false] %s3986_s19 }
 0x4ce   : > { %p3984_p3 = pnand %p3983_p12, %p5464_p7  ;;  %s3988_s7 = scalar_lea.vmem %s3987_s19, 4096 }
 0x4cf   : > { %p3989_p5 = scmp.lt.s32.totalorder %s5261_s12, %s3987_s19  ;;  %p3990_p10 = scmp.lt.s32.totalorder %s3988_s7, %s3982_s14 }
 0x4d0   : > { %s5258_s17 = scalar_lea.hbm %s5465_s9, %s3191_s2  ;;  %p3985_p13 = pneg %p3984_p3 }
 0x4d1   : > { %p3991_p4 = por %p3990_p10, %p3989_p5 }
 0x4d3   : > { %p3992_p11 = pnand %p3991_p4, %p3985_p13 }
 0x4d5   : > { %3995 = shalt.err (!%p3992_p11)
}
 0x4d6   : > { %s3996_s4 = scalar_lea.hbm %s5258_s17, 2048  ;;  %s4000_s15 = scalar_lea.hbm %s5465_s9, 4096 }
 0x4d7   : > { %p3997_p0 = scmp.ne.s32.totalorder %s5258_s17, %s3996_s4  ;;  %p4001_p9 = scmp.lt.u32.totalorder %s5258_s17, %s5465_s9 }
 0x4d8   : > { %p4002_p6 = scmp.lt.u32.totalorder %s4000_s15, %s3996_s4  ;;  %p4004_p12 = scmp.lt.u32.totalorder %s3996_s4, %s5258_s17 }
 0x4d9   : > { %p3998_p2 = pnand %p3997_p0, %p5464_p7 }
 0x4da   : > { %p4003_p1 = por %p4002_p6, %p4001_p9 }
 0x4db   : > { %p3999_p8 = pneg %p3998_p2 }
 0x4dc   : > { %p4005_p3 = por %p4004_p12, %p4003_p1 }
 0x4de   : > { %p4006_p13 = pnand %p4005_p3, %p3999_p8 }
 0x4e0   : > { %4009 = shalt.err (!%p4006_p13)
}
 0x4e1   : > { %3270 = dma.vmem_to_hbm [thread:$0]  (%p5464_p7), %s5261_s12, 2048, %s5258_s17, %s2717_s8, %s4164_s3, %s4164_s3, %s4165_s27  }
 0x4e2 PF: > { %s5466_s22 = sld [smem:[#allocation27_spill]]  ;;  %s5467_s28 = sld [smem:[#allocation41_spill]] }
 0x4e3   : > { %p3299_p5 = scmp.ge.s32.totalorder %s4146_s26, 2 }
 0x4e8   : > { %s2765_s23 = sand.u32 1, %s5466_s22   ;;  %p5468_p10 = scmp.ne.s32.totalorder %s5467_s28, 0 }
 0x4e9   : > { %s2766_s16 = scalar_lea.sflag [#allocation8], %s2765_s23 }
 0x4ea   : > { %p3292_p4 = pnand %p3299_p5, %p5468_p10 }
 0x4ec   : > { %4085 = dma.done.wait (!%p3292_p4), %s2766_s16, 2048  }
 0x4ed   : > { %4087 = vsyncadd (!%p3292_p4), %s2766_s16, 4294965248  ;;  %s2775_s0 = scalar_lea.sflag [#allocation17], %s2765_s23 }
 0x4ee   : > { %4089 = dma.done.wait (!%p3292_p4), %s2775_s0, 2048  }
 0x4ef   : > { %4091 = vsyncadd (!%p3292_p4), %s2775_s0, 4294965248  ;;  %s41_s26 = sadd.s32 1, %s4146_s26   ;;  %s5470_s0 = sld [smem:[#allocation28_spill]] }
 0x4f0   : > { %p5295_p11 = scmp.ge.s32.totalorder %s41_s26, 6   ;;  %s5471_s14 = sld [smem:[#allocation29_spill]] }
 0x4f1   : > { %s5472_s15 = sld [smem:[#allocation38_spill]]  ;;  %s5473_s16 = sld [smem:[#allocation30_spill]] }
 0x4f2   : > { %s5474_s17 = sld [smem:[#allocation31_spill]]  ;;  %s5475_s18 = sld [smem:[#allocation37_spill]] }
 0x4f3   : > { %s5476_s3 = sld [smem:[#allocation42_spill]]  ;;  %s5477_s27 = sld [smem:[#allocation34_spill]] }
 0x4f4   : > { %s5478_s13 = sld [smem:[#allocation35_spill]]  ;;  %s5479_s19 = smov %s4122_s20 }
 0x4f5   : > { %s5480_s20 = smov %s4126_s21  ;;  %s5482_s22 = smov %s4138_s24 }
 0x4f6   : > { %s5483_s23 = smov %s4142_s25  ;;  %40 = sbr.rel (!%p5295_p11) target bundleno = 33 (0x21), region = 180 }
 0x4f9   : > { %s5481_s21 = smov %s5476_s3  ;;  %s5484_s24 = smov %s5477_s27 }
 0x4fa   : > { %s5485_s25 = smov %s5478_s13 }
 0x4fd   :  { %2780 = vsyncpa [#allocation7], 1 }
 0x4fe   :  { %2782 = vsyncpa [#allocation7 + $0x1], 1 }
 0x4ff   :  { %2783 = vsyncpa [#allocation10], 1 }
 0x500   :  { %2785 = vsyncpa [#allocation10 + $0x1], 1 }
 0x501   :  { %2786 = vsyncpa [#allocation13], 1 }
 0x502   :  { %2788 = vsyncpa [#allocation13 + $0x1], 1 }
 0x503   :  { %2789 = vsyncpa [#allocation8], 1 }
 0x504   :  { %2791 = vsyncpa [#allocation8 + $0x1], 1 }
 0x505   :  { %2792 = vsyncpa [#allocation17], 1 }
 0x506   :  { %2794 = vsyncpa [#allocation17 + $0x1], 1 }

</bundles_post_ra>
